<compile_context>
chip_gen: v6e
topology: v6e:2x2x1
jax: 0.10.0
libtpu: 0.0.40
codegen_flags: <defaults>
</compile_context>

<pallas_src>
import jax
import jax.numpy as jnp
from jax.experimental import pallas as pl
from jax.experimental.pallas import tpu as pltpu


def local_op_kernel(x_ref, w1_ref, b1_ref, w2_ref, b2_ref, o_ref):
    rows, _cin = x_ref.shape          # rows = tn * nsample
    cout, tn = o_ref.shape
    s = rows // tn                    # nsample

    # Cast to the matmul dtype on the VMEM tile (no extra HBM pass in wrapper).
    xb = x_ref[...].astype(w1_ref.dtype)

    # conv1 (1x1, no bias) == channel matmul; BN1 scale already folded into W1.
    h = jnp.dot(xb, w1_ref[...], preferred_element_type=jnp.float32)
    h = jnp.maximum(h + b1_ref[...], 0.0)

    # conv2 (1x1, no bias) + folded BN2 scale; bias + ReLU in f32.
    z = jnp.dot(h.astype(w2_ref.dtype), w2_ref[...],
                preferred_element_type=jnp.float32)
    z = jnp.maximum(z + b2_ref[...], 0.0)

    # torch.max(x, 3)[0]: reduce over the nsample axis (sublane-only reshape,
    # no lane-boundary crossing), then emit the block channel-major (Cout, tn)
    # so stores are lane-dense.
    zmax = jnp.max(z.reshape(tn, s, cout), axis=1)      # (tn, Cout)
    o_ref[...] = zmax.T.astype(o_ref.dtype)             # (Cout, tn)


def _pick_point_tile(n, s, cin, cout, in_bytes, mm_bytes, out_bytes,
                     max_points=512, vmem_budget=24 << 20):
    """Largest multiple-of-128 divisor of n that fits the VMEM budget.

    The output block's lane dim is the point tile, so it must be a multiple of
    128 or the full npoint extent to satisfy the (8,128) tiling rule and keep
    stores unmasked.
    """
    def est(tn):
        rows = tn * s
        return (2 * rows * cin * in_bytes          # x slab, double-buffered
                + rows * cout * 4 * 2              # h and z f32 intermediates
                + 2 * cout * tn * out_bytes        # output block, double-buffered
                + 2 * (cin * cout + cout * cout) * mm_bytes)  # weights

    cand = sorted((t for t in range(128, max_points + 1, 128) if n % t == 0),
                  reverse=True)
    for t in cand:
        if est(t) <= vmem_budget:
            return t
    if cand:
        return cand[-1]   # smallest aligned candidate (correct; may be tight)
    return n              # no 128-multiple divisor: use the full extent


def local_op_forward(x, w1, w2, bn1, bn2, *, eps=1e-5, max_point_tile=512,
                     matmul_dtype=None):
    """x: (B, npoint, nsample, Cin).  Returns (B, Cout, npoint) in x.dtype.

    matmul_dtype: dtype fed to the MXU (e.g. jnp.bfloat16 on v6e/v7x);
    accumulation and the BN-bias/ReLU/max epilogue stay float32.
    """
    B, N, S, Cin = x.shape
    Cout = w1.shape[0]
    out_dtype = x.dtype
    mm_dtype = out_dtype if matmul_dtype is None else matmul_dtype

    # Fold BatchNorm (inference / running-stats form) into the weights.
    # Conv has no bias, so the per-channel scale commutes into the weight
    # columns; only a per-channel bias remains for the kernel epilogue.
    # TODO(synk): PyTorch's default training-mode BN uses batch statistics;
    # here BN is applied in eval mode with the module's running stats.
    g1, be1, m1, v1 = bn1
    g2, be2, m2, v2 = bn2
    s1 = g1 / jnp.sqrt(v1 + eps)
    s2 = g2 / jnp.sqrt(v2 + eps)
    w1m = (w1.reshape(Cout, Cin).T * s1[None, :]).astype(mm_dtype)    # (Cin, Cout)
    w2m = (w2.reshape(Cout, Cout).T * s2[None, :]).astype(mm_dtype)   # (Cout, Cout)
    b1v = (be1 - m1 * s1).reshape(1, Cout).astype(jnp.float32)
    b2v = (be2 - m2 * s2).reshape(1, Cout).astype(jnp.float32)

    in_bytes = jnp.dtype(x.dtype).itemsize
    mm_bytes = jnp.dtype(mm_dtype).itemsize
    out_bytes = jnp.dtype(out_dtype).itemsize
    tn = _pick_point_tile(N, S, Cin, Cout, in_bytes, mm_bytes, out_bytes,
                          max_points=max_point_tile)

    xf = x.reshape(B, N * S, Cin)    # free row-major reshape, no dtype cast

    return pl.pallas_call(
        local_op_kernel,
        out_shape=jax.ShapeDtypeStruct((B, Cout, N), out_dtype),
        grid_spec=pltpu.PrefetchScalarGridSpec(
            num_scalar_prefetch=0,
            grid=(B, N // tn),
            in_specs=[
                # x row slab: (tn*nsample, Cin) dense rectangle per step
                pl.BlockSpec((None, tn * S, Cin), lambda b, j: (b, j, 0)),
                # weights / biases: constant index_map -> stay VMEM-resident
                pl.BlockSpec((Cin, Cout), lambda b, j: (0, 0)),
                pl.BlockSpec((1, Cout), lambda b, j: (0, 0)),
                pl.BlockSpec((Cout, Cout), lambda b, j: (0, 0)),
                pl.BlockSpec((1, Cout), lambda b, j: (0, 0)),
            ],
            # lane-dense, already in the PyTorch (B, Cout, npoint) layout
            out_specs=pl.BlockSpec((None, Cout, tn), lambda b, j: (b, 0, j)),
        ),
        compiler_params=pltpu.CompilerParams(
            dimension_semantics=("parallel", "parallel")),
    )(xf, w1m, b1v, w2m, b2v)


def _reference(x, w1, w2, bn1, bn2, eps=1e-5):
    """Pure-JAX reference of the same (eval-mode BN) semantics."""
    Cout = w1.shape[0]
    Cin = w1.shape[1]
    g1, be1, m1, v1 = bn1
    g2, be2, m2, v2 = bn2
    h = jnp.einsum("bnsc,oc->bnso", x, w1.reshape(Cout, Cin))
    h = jnp.maximum((h - m1) / jnp.sqrt(v1 + eps) * g1 + be1, 0.0)
    z = jnp.einsum("bnsc,oc->bnso", h, w2.reshape(Cout, Cout))
    z = jnp.maximum((z - m2) / jnp.sqrt(v2 + eps) * g2 + be2, 0.0)
    return jnp.max(z, axis=2).transpose(0, 2, 1)  # (B, Cout, npoint)


if __name__ == "__main__":
    in_channels, out_channels = 64, 128
    B, npoint, nsample = 2, 128, 8

    key = jax.random.PRNGKey(0)
    kx, kw1, kw2, kg1, kb1, kg2, kb2 = jax.random.split(key, 7)

    x = jax.random.normal(kx, (B, npoint, nsample, in_channels), jnp.float32)

    # Conv2d weights (kernel_size=1, bias=False): (Cout, Cin, 1, 1) / (Cout, Cout, 1, 1)
    w1 = jax.random.normal(kw1, (out_channels, in_channels, 1, 1), jnp.float32) * 0.1
    w2 = jax.random.normal(kw2, (out_channels, out_channels, 1, 1), jnp.float32) * 0.1

    # BatchNorm2d params + running stats (deterministic, non-trivial values)
    bn1 = (1.0 + 0.1 * jax.random.normal(kg1, (out_channels,), jnp.float32),  # gamma
           0.1 * jax.random.normal(kb1, (out_channels,), jnp.float32),        # beta
           jnp.linspace(-0.05, 0.05, out_channels, dtype=jnp.float32),        # running_mean
           jnp.linspace(0.9, 1.1, out_channels, dtype=jnp.float32))           # running_var
    bn2 = (1.0 + 0.1 * jax.random.normal(kg2, (out_channels,), jnp.float32),
           0.1 * jax.random.normal(kb2, (out_channels,), jnp.float32),
           jnp.linspace(-0.02, 0.02, out_channels, dtype=jnp.float32),
           jnp.linspace(0.95, 1.05, out_channels, dtype=jnp.float32))

    ref = _reference(x, w1, w2, bn1, bn2)

    # f32 matmul path (exact vs reference up to fold/rounding order)
    out = local_op_forward(x, w1, w2, bn1, bn2)
    out = jax.block_until_ready(out)
    assert out.shape == (B, out_channels, npoint), out.shape
    assert jnp.allclose(out, ref, rtol=1e-3, atol=1e-3), "f32 mismatch vs reference"

    # bf16-MXU path (v6e/v7x recommendation): bf16 operands (cast in-kernel),
    # f32 accumulation and f32 epilogue -> looser tolerance vs the f32 reference.
    out_bf16 = local_op_forward(x, w1, w2, bn1, bn2, matmul_dtype=jnp.bfloat16)
    out_bf16 = jax.block_until_ready(out_bf16)
    assert out_bf16.shape == (B, out_channels, npoint), out_bf16.shape
    assert jnp.allclose(out_bf16, ref, rtol=3e-2, atol=3e-2), "bf16 mismatch vs reference"

    print("KERNEL_OK")
</pallas_src>

<mosaic_0001>
module attributes {stable_mosaic.version = 11 : i64} {
  func.func @local_op_kernel(%arg0: i32, %arg1: i32, %arg2: memref<1x1024x64xf32, #tpu.memory_space<vmem>>, %arg3: memref<64x128xf32, #tpu.memory_space<vmem>>, %arg4: memref<1x128xf32, #tpu.memory_space<vmem>>, %arg5: memref<128x128xf32, #tpu.memory_space<vmem>>, %arg6: memref<1x128xf32, #tpu.memory_space<vmem>>, %arg7: memref<1x128x128xf32, #tpu.memory_space<vmem>>) attributes {dimension_semantics = [#tpu.dimension_semantics<parallel>, #tpu.dimension_semantics<parallel>], iteration_bounds = array<i64: 2, 1>, scalar_prefetch = 0 : i64, scratch_operands = 0 : i64, tpu.core_type = #tpu.core_type<tc>, window_params = [{transform_indices = @transform_0, window_bounds = array<i64: 1, 1024, 64>}, {pipeline_mode = #tpu.pipeline_mode<synchronous>, transform_indices = @transform_1, window_bounds = array<i64: 64, 128>}, {pipeline_mode = #tpu.pipeline_mode<synchronous>, transform_indices = @transform_2, window_bounds = array<i64: 1, 128>}, {pipeline_mode = #tpu.pipeline_mode<synchronous>, transform_indices = @transform_3, window_bounds = array<i64: 128, 128>}, {pipeline_mode = #tpu.pipeline_mode<synchronous>, transform_indices = @transform_4, window_bounds = array<i64: 1, 128>}, {transform_indices = @transform_5, window_bounds = array<i64: 1, 128, 128>}]} {
    %c0 = arith.constant 0 : index
    %c0_0 = arith.constant 0 : index
    %c0_1 = arith.constant 0 : index
    %0 = vector.load %arg2[%c0, %c0_0, %c0_1] : memref<1x1024x64xf32, #tpu.memory_space<vmem>>, vector<1x1024x64xf32>
    %1 = vector.shape_cast %0 : vector<1x1024x64xf32> to vector<1024x64xf32>
    %c0_2 = arith.constant 0 : index
    %c0_3 = arith.constant 0 : index
    %2 = vector.load %arg3[%c0_2, %c0_3] : memref<64x128xf32, #tpu.memory_space<vmem>>, vector<64x128xf32>
    %cst = arith.constant dense<0.000000e+00> : vector<1024x128xf32>
    %3 = tpu.matmul %1, %2, %cst {dimension_numbers = #tpu.dot_dimension_numbers<[1], [0], [0], [1], [0, 0, 1, 1], [], []>} : vector<1024x64xf32>, vector<64x128xf32>, vector<1024x128xf32> -> vector<1024x128xf32>
    %c0_4 = arith.constant 0 : index
    %c0_5 = arith.constant 0 : index
    %4 = vector.load %arg4[%c0_4, %c0_5] : memref<1x128xf32, #tpu.memory_space<vmem>>, vector<1x128xf32>
    %5 = vector.broadcast %4 : vector<1x128xf32> to vector<1024x128xf32>
    %6 = arith.addf %3, %5 : vector<1024x128xf32>
    %cst_6 = arith.constant 0.000000e+00 : f32
    %7 = vector.broadcast %cst_6 : f32 to vector<1024x128xf32>
    %8 = arith.maximumf %6, %7 : vector<1024x128xf32>
    %c0_7 = arith.constant 0 : index
    %c0_8 = arith.constant 0 : index
    %9 = vector.load %arg5[%c0_7, %c0_8] : memref<128x128xf32, #tpu.memory_space<vmem>>, vector<128x128xf32>
    %cst_9 = arith.constant dense<0.000000e+00> : vector<1024x128xf32>
    %10 = tpu.matmul %8, %9, %cst_9 {dimension_numbers = #tpu.dot_dimension_numbers<[1], [0], [0], [1], [0, 0, 1, 1], [], []>} : vector<1024x128xf32>, vector<128x128xf32>, vector<1024x128xf32> -> vector<1024x128xf32>
    %c0_10 = arith.constant 0 : index
    %c0_11 = arith.constant 0 : index
    %11 = vector.load %arg6[%c0_10, %c0_11] : memref<1x128xf32, #tpu.memory_space<vmem>>, vector<1x128xf32>
    %12 = vector.broadcast %11 : vector<1x128xf32> to vector<1024x128xf32>
    %13 = arith.addf %10, %12 : vector<1024x128xf32>
    %cst_12 = arith.constant 0.000000e+00 : f32
    %14 = vector.broadcast %cst_12 : f32 to vector<1024x128xf32>
    %15 = arith.maximumf %13, %14 : vector<1024x128xf32>
    %16 = vector.shape_cast %15 : vector<1024x128xf32> to vector<128x8x128xf32>
    %cst_13 = arith.constant dense<0xFF800000> : vector<128x128xf32>
    %17 = vector.multi_reduction <maximumf>, %16, %cst_13 [1] : vector<128x8x128xf32> to vector<128x128xf32>
    %18 = tpu.transpose %17, [1, 0] : vector<128x128xf32> -> vector<128x128xf32>
    %c0_14 = arith.constant 0 : index
    %c0_15 = arith.constant 0 : index
    %c0_16 = arith.constant 0 : index
    %19 = vector.load %arg7[%c0_14, %c0_15, %c0_16] : memref<1x128x128xf32, #tpu.memory_space<vmem>>, vector<1x128x128xf32>
    %20 = vector.shape_cast %19 : vector<1x128x128xf32> to vector<128x128xf32>
    %21 = vector.shape_cast %18 : vector<128x128xf32> to vector<1x128x128xf32>
    tpu.vector_store %arg7[%c0_14, %c0_15, %c0_16], %21 {strides = array<i32>} : memref<1x128x128xf32, #tpu.memory_space<vmem>>, vector<1x128x128xf32>,
    return
  }
  func.func @transform_0(%arg0: i32, %arg1: i32) -> (i32, i32, i32) {
    %c0_i32 = arith.constant 0 : i32
    %c0_i32_0 = arith.constant 0 : i32
    return %arg0, %arg1, %c0_i32 : i32, i32, i32
  }
  func.func @transform_1(%arg0: i32, %arg1: i32) -> (i32, i32) {
    %c0_i32 = arith.constant 0 : i32
    %c0_i32_0 = arith.constant 0 : i32
    %c0_i32_1 = arith.constant 0 : i32
    return %c0_i32, %c0_i32_0 : i32, i32
  }
  func.func @transform_2(%arg0: i32, %arg1: i32) -> (i32, i32) {
    %c0_i32 = arith.constant 0 : i32
    %c0_i32_0 = arith.constant 0 : i32
    %c0_i32_1 = arith.constant 0 : i32
    return %c0_i32, %c0_i32_0 : i32, i32
  }
  func.func @transform_3(%arg0: i32, %arg1: i32) -> (i32, i32) {
    %c0_i32 = arith.constant 0 : i32
    %c0_i32_0 = arith.constant 0 : i32
    %c0_i32_1 = arith.constant 0 : i32
    return %c0_i32, %c0_i32_0 : i32, i32
  }
  func.func @transform_4(%arg0: i32, %arg1: i32) -> (i32, i32) {
    %c0_i32 = arith.constant 0 : i32
    %c0_i32_0 = arith.constant 0 : i32
    %c0_i32_1 = arith.constant 0 : i32
    return %c0_i32, %c0_i32_0 : i32, i32
  }
  func.func @transform_5(%arg0: i32, %arg1: i32) -> (i32, i32, i32) {
    %c0_i32 = arith.constant 0 : i32
    %c0_i32_0 = arith.constant 0 : i32
    return %arg0, %c0_i32, %arg1 : i32, i32, i32
  }
}

</mosaic_0001>

<bundles_post_ra>
// kernel: tpu_custom_call.1
= control target key start
LH: loop header
LB: loop body
LE: loop exit
PB: predicated region body
PF: predicated region fallthrough
CT: control target
= control target key end

     0   :  { %10 = vsyncpa [#allocation3], 0  ;;  %s6171_s0 = inlined_call_operand.vmem [shape: f32[2,1024,64], index: 0, kind: input, shape index: {}]   ;;  %s6172_s1 = inlined_call_operand.vmem [shape: f32[64,128], index: 1, kind: input, shape index: {}]   ;;  %s6173_s2 = inlined_call_operand.vmem [shape: f32[1,128], index: 2, kind: input, shape index: {}]   ;;  %s6174_s3 = inlined_call_operand.vmem [shape: f32[128,128], index: 3, kind: input, shape index: {}]   ;;  %s6175_s4 = inlined_call_operand.vmem [shape: f32[1,128], index: 4, kind: input, shape index: {}]   ;;  %s6176_s5 = inlined_call_operand.hbm [shape: f32[2,128,128], index: 5, kind: output, shape index: {}]  }
   0x1   :  { %12 = vsyncpa [#allocation3 + $0x1], 0  ;;  %s4702_s18 = smov 0   ;;  %s4704_s19 = smov 0  }
   0x2   :  { %s4706_s20 = smov 0   ;;  %s4708_s21 = smov 0  }
   0x3   :  { %s4710_s22 = smov 0   ;;  %s4712_s23 = smov 0  }
   0x4 LB: > { %s3642_s24 = sadd.s32 4294967295, %s4667_s23   ;;  %s3643_s25 = sadd.s32 4294967294, %s4667_s23   ;;  %s4667_s23 = sphi %s4712_s23, %s18_s23   ;;  %s4663_s22 = sphi %s4710_s22, %s6184_s22   ;;  %s4659_s21 = sphi %s4708_s21, %s6183_s21   ;;  %s4655_s20 = sphi %s4706_s20, %s6182_s20   ;;  %s4651_s19 = sphi %s4704_s19, %s6181_s19   ;;  %s4647_s18 = sphi %s4702_s18, %s6180_s18  }
   0x5   : > { %s30_s26 = sadd.s32 1, %s4663_s22  ;;  %s151_s27 = sadd.s32 1, %s4655_s20 }
   0x6   : > { %p32_p0 = scmp.ge.s32.totalorder %s30_s26, 2  ;;  %p161_p1 = scmp.ne.s32.totalorder %s4655_s20, %s4651_s19 }
   0x7   : > { %p162_p2 = scmp.eq.s32.totalorder %s3642_s24, 1  ;;  %p167_p3 = scmp.ne.s32.totalorder %s4651_s19, %s4647_s18 }
   0x8   : > { %s6186_s26 = smov (%p32_p0, %s30_s26), 0  ;;  %p168_p5 = scmp.eq.s32.totalorder %s3643_s25, 1 }
   0x9   : > { %p4742_p4 = por %p162_p2, %p161_p1  ;;  %s146_s29 = ssub.s32 %s4663_s22, %s6186_s26 }
   0xa   : > { %p3646_p6 = scmp.ge.s32.totalorder %s4667_s23, 1  ;;  %p149_p7 = scmp.eq.s32.totalorder %s146_s29, 0 }
   0xb   : > { %p4749_p8 = por %p168_p5, %p167_p3  ;;  %p211_p9 = scmp.lt.s32.totalorder %s4667_s23, 3 }
   0xc   : > { %s4755_s6 = scalar_select %p149_p7, %s4655_s20, %s151_s27  }
   0xd   : > { %p212_p10 = pnand %p3646_p6, %p211_p9 }
   0xe   : > { %p244_p11 = scmp.lt.s32.totalorder (!%p212_p10), %s4659_s21, 1  ;;  %s240_s12 = sand.u32 (!%p212_p10), 1, %s4651_s19  }
   0xf   : > { %215 = sbr.rel (%p212_p10) target bundleno = 881 (0x371), region = 40  ;;  %s3786_s15 = sshll.u32 (!%p212_p10), %s4659_s21, 11 }
  0x10   : > { %s6126_s27 = scalar_lea.sflag (!%p212_p10), [#allocation3], %s240_s12 }
  0x14   : > { %v388_v0 = vld [vmem:[%s6172_s1 + $0x38] sm:$0xff]  ;;  %v387_v1 = vld [vmem:[%s6172_s1 + $0x30] sm:$0xff]  ;;  %v386_v2 = vld [vmem:[%s6172_s1 + $0x28] sm:$0xff]  ;;  %s245_s13 = scalar_select %p244_p11, %s4659_s21, 1  ;;  %vm396_vm0 = vcmask 523264   ;;  %vm3366_vm1 = vcmask 1041409  }
  0x15   : > { %4067 = vmatprep.subr.mxu0 %v388_v0  ;;  %v385_v3 = vld [vmem:[%s6172_s1 + $0x20] sm:$0xff]  ;;  %v384_v4 = vld [vmem:[%s6172_s1 + $0x18] sm:$0xff]  ;;  %v383_v6 = vld [vmem:[%s6172_s1 + $0x10] sm:$0xff]  ;;  %vm3368_vm2 = vcmask 1042434   ;;  %vm3370_vm3 = vcmask 1043459   ;;  %vm3372_vm4 = vcmask 1044484  }
  0x16   : > { %4068 = vmatpush3.msra.mxu0 %v388_v0  ;;  %s3785_s16 = sshll.u32 %s245_s13, 10  ;;  %v382_v7 = vld [vmem:[%s6172_s1 + $0x8] sm:$0xff]  ;;  %v381_v8 = vld [vmem:[%s6172_s1] sm:$0xff]  ;;  %v1629_v17 = vld [vmem:[%s6174_s3 + $0x78] sm:$0xff]  ;;  %vm3374_vm5 = vcmask 1045509   ;;  %vm3376_vm6 = vcmask 1046534  }
  0x17   : > { %4069 = vmatprep.subr.mxu0 %v387_v1  ;;  %s4774_s25 = scalar_lea.vmem %s6171_s0, %s3785_s16  ;;  %4499 = vmatprep.subr.mxu1 %v1629_v17  ;;  %v1628_v19 = vld [vmem:[%s6174_s3 + $0x70] sm:$0xff]  ;;  %v1627_v28 = vld [vmem:[%s6174_s3 + $0x68] sm:$0xff]  ;;  %v1626_v37 = vld [vmem:[%s6174_s3 + $0x60] sm:$0xff]  ;;  %vm3378_vm7 = vcmask 1047559   ;;  %s3647_s13 = sshll.u32 %s240_s12, 7 }
  0x18   : > { %4070 = vmatpush3.msra.mxu0 %v387_v1  ;;  %v253_v5 = vld [vmem:[%s4774_s25] sm:$0xff]  ;;  %v254_v9 = vld [vmem:[%s4774_s25 + $0x8] sm:$0xff]  ;;  %v255_v10 = vld [vmem:[%s4774_s25 + $0x10] sm:$0xff]  ;;  %4515 = vmatpush3.msra.mxu1 %v1629_v17  ;;  %s6097_s14 = scalar_lea.vmem [#allocation2], %s3647_s13  ;;  %s4669_s21 = smov [#allocation2]  }
  0x19   : > { %4071 = vmatprep.subr.mxu0 %v386_v2  ;;  %4083 = vmatprep.mubr.msk.f32.mxu0 %vm396_vm0, %v253_v5  ;;  %v256_v11 = vld [vmem:[%s4774_s25 + $0x18] sm:$0xff]  ;;  %v257_v12 = vld [vmem:[%s4774_s25 + $0x20] sm:$0xff]  ;;  %v258_v13 = vld [vmem:[%s4774_s25 + $0x28] sm:$0xff]  ;;  %s3564_s16 = sshll.u32 %s6097_s14, 4  ;;  %s4595_s7 = sshll.u32 %s4669_s21, 4  ;;  %s6121_s16 = int_to_ptr.vmem [resolvable:$true] %s3564_s16  ;;  %s4596_s7 = int_to_ptr.vmem [resolvable:$false] %s4595_s7 }
  0x1a   : > { %4072 = vmatpush3.msra.mxu0 %v386_v2  ;;  %v259_v14 = vld [vmem:[%s4774_s25 + $0x30] sm:$0xff]  ;;  %v260_v15 = vld [vmem:[%s4774_s25 + $0x38] sm:$0xff]  ;;  %v261_v16 = vld [vmem:[%s4774_s25 + $0x40] sm:$0xff]  ;;  %4500 = vmatprep.subr.mxu1 %v1628_v19  ;;  %s4591_s29 = scalar_lea.vmem %s6121_s16, 2048  ;;  %s4597_s8 = scalar_lea.vmem %s4596_s7, 4096 }
  0x1b   : > { %4073 = vmatprep.subr.mxu0 %v385_v3  ;;  %v262_v18 = vld [vmem:[%s4774_s25 + $0x48] sm:$0xff]  ;;  %v263_v20 = vld [vmem:[%s4774_s25 + $0x50] sm:$0xff]  ;;  %4516 = vmatpush3.msra.mxu1 %v1628_v19  ;;  %v264_v21 = vld [vmem:[%s4774_s25 + $0x58] sm:$0xff]  ;;  %p4592_p12 = scmp.ne.s32.totalorder %s6121_s16, %s4591_s29  ;;  %p4598_p1 = scmp.lt.s32.totalorder %s6121_s16, %s4596_s7 }
  0x1c   : > { %4074 = vmatpush3.msra.mxu0 %v385_v3  ;;  %v265_v22 = vld [vmem:[%s4774_s25 + $0x60] sm:$0xff]  ;;  %v266_v23 = vld [vmem:[%s4774_s25 + $0x68] sm:$0xff]  ;;  %v267_v24 = vld [vmem:[%s4774_s25 + $0x70] sm:$0xff]  ;;  %4501 = vmatprep.subr.mxu1 %v1627_v28  ;;  %p4599_p2 = scmp.lt.s32.totalorder %s4597_s8, %s4591_s29 }
  0x1d   : > { %4075 = vmatprep.subr.mxu0 %v384_v4  ;;  %v268_v25 = vld [vmem:[%s4774_s25 + $0x78] sm:$0xff]  ;;  %v269_v26 = vld [vmem:[%s4774_s25 + $0x80] sm:$0xff]  ;;  %v270_v27 = vld [vmem:[%s4774_s25 + $0x88] sm:$0xff]  ;;  %4517 = vmatpush3.msra.mxu1 %v1627_v28  ;;  %p4593_p13 = pnand %p4592_p12, %p4742_p4 }
  0x1e   : > { %4076 = vmatpush3.msra.mxu0 %v384_v4  ;;  %v271_v29 = vld [vmem:[%s4774_s25 + $0x90] sm:$0xff]  ;;  %v272_v30 = vld [vmem:[%s4774_s25 + $0x98] sm:$0xff]  ;;  %v273_v31 = vld [vmem:[%s4774_s25 + $0xa0] sm:$0xff]  ;;  %4502 = vmatprep.subr.mxu1 %v1626_v37  ;;  %p4600_p3 = por %p4599_p2, %p4598_p1 }
  0x1f   : > { %4077 = vmatprep.subr.mxu0 %v383_v6  ;;  %v274_v32 = vld [vmem:[%s4774_s25 + $0xa8] sm:$0xff]  ;;  %v275_v33 = vld [vmem:[%s4774_s25 + $0xb0] sm:$0xff]  ;;  %v276_v34 = vld [vmem:[%s4774_s25 + $0xb8] sm:$0xff]  ;;  %4518 = vmatpush3.msra.mxu1 %v1626_v37  ;;  %p4594_p0 = pneg %p4593_p13 }
  0x20   : > { %4078 = vmatpush3.msra.mxu0 %v383_v6  ;;  %v277_v35 = vld [vmem:[%s4774_s25 + $0xc0] sm:$0xff]  ;;  %v278_v36 = vld [vmem:[%s4774_s25 + $0xc8] sm:$0xff]  ;;  %v279_v38 = vld [vmem:[%s4774_s25 + $0xd0] sm:$0xff] }
  0x21   : > { %4079 = vmatprep.subr.mxu0 %v382_v7  ;;  %v280_v39 = vld [vmem:[%s4774_s25 + $0xd8] sm:$0xff]  ;;  %v281_v40 = vld [vmem:[%s4774_s25 + $0xe0] sm:$0xff]  ;;  %v282_v41 = vld [vmem:[%s4774_s25 + $0xe8] sm:$0xff]  ;;  %p4601_p5 = pnand %p4600_p3, %p4594_p0 }
  0x22   : > { %4080 = vmatpush3.msra.mxu0 %v382_v7  ;;  %v283_v42 = vld [vmem:[%s4774_s25 + $0xf0] sm:$0xff]  ;;  %v1625_v43 = vld [vmem:[%s6174_s3 + $0x58] sm:$0xff]  ;;  %v285_v46 = vld [vmem:[%s4774_s25 + $0x100] sm:$0xff] }
  0x23   : > { %4081 = vmatprep.subr.mxu0 %v381_v8  ;;  %4503 = vmatprep.subr.mxu1 %v1625_v43  ;;  %v1624_v44 = vld [vmem:[%s6174_s3 + $0x50] sm:$0xff]  ;;  %v284_v45 = vld [vmem:[%s4774_s25 + $0xf8] sm:$0xff]  ;;  %v1623_v47 = vld [vmem:[%s6174_s3 + $0x48] sm:$0xff] }
  0x24   : > { %4082 = vmatpush3.msra.mxu0 %v381_v8  ;;  %4519 = vmatpush3.msra.mxu1 %v1625_v43  ;;  %v1622_v48 = vld [vmem:[%s6174_s3 + $0x40] sm:$0xff]  ;;  %v286_v49 = vld [vmem:[%s4774_s25 + $0x108] sm:$0xff]  ;;  %v287_v50 = vld [vmem:[%s4774_s25 + $0x110] sm:$0xff] }
  0x25   : > { %4084 = vmatmul.mubr.msk.f32.vlgmr.msra.gmra.mxu0 %vm396_vm0, %v254_v9  ;;  %4275 = vmatprep.subr.mxu0 %v1629_v17  ;;  %v1621_v51 = vld [vmem:[%s6174_s3 + $0x38] sm:$0xff]  ;;  %v1620_v53 = vld [vmem:[%s6174_s3 + $0x30] sm:$0xff]  ;;  %v289_v54 = vld [vmem:[%s4774_s25 + $0x120] sm:$0xff] }
  0x26   : > { %4086 = vmatprep.mubr.msk.f32.mxu0 %vm396_vm0, %v255_v10  ;;  %4276 = vmatpush3.msra.mxu0 %v1629_v17  ;;  %v288_v52 = vld [vmem:[%s4774_s25 + $0x118] sm:$0xff]  ;;  %v1619_v55 = vld [vmem:[%s6174_s3 + $0x28] sm:$0xff]  ;;  %v1618_v57 = vld [vmem:[%s6174_s3 + $0x20] sm:$0xff] }
  0x27   : > { %4277 = vmatprep.subr.mxu0 %v1628_v19  ;;  %4504 = vmatprep.subr.mxu1 %v1624_v44  ;;  %v290_v56 = vld [vmem:[%s4774_s25 + $0x128] sm:$0xff]  ;;  %v291_v58 = vld [vmem:[%s4774_s25 + $0x130] sm:$0xff]  ;;  %v1617_v59 = vld [vmem:[%s6174_s3 + $0x18] sm:$0xff] }
  0x28   : > { %4278 = vmatpush3.msra.mxu0 %v1628_v19  ;;  %4520 = vmatpush3.msra.mxu1 %v1624_v44  ;;  %v292_v60 = vld [vmem:[%s4774_s25 + $0x138] sm:$0xff]  ;;  %v1616_v61 = vld [vmem:[%s6174_s3 + $0x10] sm:$0xff]  ;;  %v293_v62 = vld [vmem:[%s4774_s25 + $0x140] sm:$0xff] }
  0x29   : > { %4087 = vmatmul.mubr.msk.f32.gmra.mxu0 %vm396_vm0, %v256_v11  ;;  %4279 = vmatprep.subr.mxu0 %v1627_v28  ;;  %v1615_v63 = vld [vmem:[%s6174_s3 + $0x8] sm:$0xff]  ;;  %v1614_v1 = vld [vmem:[%s6174_s3] sm:$0xff]  ;;  %v295_v2 = vld [vmem:[%s4774_s25 + $0x150] sm:$0xff] }
  0x2a   : > { %4089 = vmatprep.mubr.msk.f32.mxu0 %vm396_vm0, %v257_v12  ;;  %4280 = vmatpush3.msra.mxu0 %v1627_v28  ;;  %v294_v0 = vld [vmem:[%s4774_s25 + $0x148] sm:$0xff]  ;;  %v296_v3 = vld [vmem:[%s4774_s25 + $0x158] sm:$0xff]  ;;  %v297_v4 = vld [vmem:[%s4774_s25 + $0x160] sm:$0xff] }
  0x2b   : > { %4281 = vmatprep.subr.mxu0 %v1626_v37  ;;  %4505 = vmatprep.subr.mxu1 %v1623_v47  ;;  %v298_v5 = vld [vmem:[%s4774_s25 + $0x168] sm:$0xff]  ;;  %v299_v6 = vld [vmem:[%s4774_s25 + $0x170] sm:$0xff]  ;;  %v300_v7 = vld [vmem:[%s4774_s25 + $0x178] sm:$0xff] }
  0x2c   : > { %4282 = vmatpush3.msra.mxu0 %v1626_v37  ;;  %4521 = vmatpush3.msra.mxu1 %v1623_v47  ;;  %v301_v8 = vld [vmem:[%s4774_s25 + $0x180] sm:$0xff]  ;;  %v302_v9 = vld [vmem:[%s4774_s25 + $0x188] sm:$0xff]  ;;  %v303_v10 = vld [vmem:[%s4774_s25 + $0x190] sm:$0xff] }
  0x2d   : > { %4090 = vmatmul.mubr.msk.f32.gmra.mxu0 %vm396_vm0, %v258_v13  ;;  %4283 = vmatprep.subr.mxu0 %v1625_v43  ;;  %v304_v11 = vld [vmem:[%s4774_s25 + $0x198] sm:$0xff]  ;;  %v305_v12 = vld [vmem:[%s4774_s25 + $0x1a0] sm:$0xff]  ;;  %v306_v13 = vld [vmem:[%s4774_s25 + $0x1a8] sm:$0xff] }
  0x2e   : > { %4092 = vmatprep.mubr.msk.f32.mxu0 %vm396_vm0, %v259_v14  ;;  %4284 = vmatpush3.msra.mxu0 %v1625_v43  ;;  %v307_v14 = vld [vmem:[%s4774_s25 + $0x1b0] sm:$0xff]  ;;  %v310_v17 = vld [vmem:[%s4774_s25 + $0x1c8] sm:$0xff]  ;;  %v312_v19 = vld [vmem:[%s4774_s25 + $0x1d8] sm:$0xff] }
  0x2f   : > { %4506 = vmatprep.subr.mxu1 %v1622_v48  ;;  %4285 = vmatprep.subr.mxu0 %v1624_v44  ;;  %v321_v28 = vld [vmem:[%s4774_s25 + $0x220] sm:$0xff]  ;;  %v330_v37 = vld [vmem:[%s4774_s25 + $0x268] sm:$0xff]  ;;  %v336_v43 = vld [vmem:[%s4774_s25 + $0x298] sm:$0xff] }
  0x30   : > { %4522 = vmatpush3.msra.mxu1 %v1622_v48  ;;  %4286 = vmatpush3.msra.mxu0 %v1624_v44  ;;  %v337_v44 = vld [vmem:[%s4774_s25 + $0x2a0] sm:$0xff] }
  0x31   : > { %4093 = vmatmul.mubr.msk.f32.gmra.mxu0 %vm396_vm0, %v260_v15  ;;  %4507 = vmatprep.subr.mxu1 %v1621_v51  ;;  %v308_v15 = vld [vmem:[%s4774_s25 + $0x1b8] sm:$0xff] }
  0x32   : > { %4095 = vmatprep.mubr.msk.f32.mxu0 %vm396_vm0, %v261_v16  ;;  %4523 = vmatpush3.msra.mxu1 %v1621_v51  ;;  %v309_v16 = vld [vmem:[%s4774_s25 + $0x1c0] sm:$0xff] }
  0x33   : > { %4508 = vmatprep.subr.mxu1 %v1620_v53  ;;  %4287 = vmatprep.subr.mxu0 %v1623_v47 }
  0x34   : > { %4524 = vmatpush3.msra.mxu1 %v1620_v53  ;;  %4288 = vmatpush3.msra.mxu0 %v1623_v47  ;;  %v340_v47 = vld [vmem:[%s4774_s25 + $0x2b8] sm:$0xff] }
  0x35   : > { %4096 = vmatmul.mubr.msk.f32.gmra.mxu0 %vm396_vm0, %v262_v18  ;;  %4509 = vmatprep.subr.mxu1 %v1619_v55  ;;  %v311_v18 = vld [vmem:[%s4774_s25 + $0x1d0] sm:$0xff] }
  0x36   : > { %4098 = vmatprep.mubr.msk.f32.mxu0 %vm396_vm0, %v263_v20  ;;  %4525 = vmatpush3.msra.mxu1 %v1619_v55  ;;  %v313_v20 = vld [vmem:[%s4774_s25 + $0x1e0] sm:$0xff] }
  0x37   : > { %4510 = vmatprep.subr.mxu1 %v1618_v57  ;;  %4289 = vmatprep.subr.mxu0 %v1622_v48 }
  0x38   : > { %4526 = vmatpush3.msra.mxu1 %v1618_v57  ;;  %4290 = vmatpush3.msra.mxu0 %v1622_v48  ;;  %v341_v48 = vld [vmem:[%s4774_s25 + $0x2c0] sm:$0xff] }
  0x39   : > { %4099 = vmatmul.mubr.msk.f32.gmra.mxu0 %vm396_vm0, %v264_v21  ;;  %4511 = vmatprep.subr.mxu1 %v1617_v59  ;;  %v314_v21 = vld [vmem:[%s4774_s25 + $0x1e8] sm:$0xff] }
  0x3a   : > { %4101 = vmatprep.mubr.msk.f32.mxu0 %vm396_vm0, %v265_v22  ;;  %4527 = vmatpush3.msra.mxu1 %v1617_v59  ;;  %v315_v22 = vld [vmem:[%s4774_s25 + $0x1f0] sm:$0xff] }
  0x3b   : > { %4512 = vmatprep.subr.mxu1 %v1616_v61  ;;  %4291 = vmatprep.subr.mxu0 %v1621_v51 }
  0x3c   : > { %4528 = vmatpush3.msra.mxu1 %v1616_v61  ;;  %4292 = vmatpush3.msra.mxu0 %v1621_v51  ;;  %v344_v51 = vld [vmem:[%s4774_s25 + $0x2d8] sm:$0xff] }
  0x3d   : > { %4102 = vmatmul.mubr.msk.f32.gmra.mxu0 %vm396_vm0, %v266_v23  ;;  %4513 = vmatprep.subr.mxu1 %v1615_v63  ;;  %v316_v23 = vld [vmem:[%s4774_s25 + $0x1f8] sm:$0xff] }
  0x3e   : > { %4104 = vmatprep.mubr.msk.f32.mxu0 %vm396_vm0, %v267_v24  ;;  %4529 = vmatpush3.msra.mxu1 %v1615_v63  ;;  %v317_v24 = vld [vmem:[%s4774_s25 + $0x200] sm:$0xff] }
  0x3f   : > { %4514 = vmatprep.subr.mxu1 %v1614_v1  ;;  %4293 = vmatprep.subr.mxu0 %v1620_v53 }
  0x40   : > { %4530 = vmatpush3.msra.mxu1 %v1614_v1  ;;  %4294 = vmatpush3.msra.mxu0 %v1620_v53  ;;  %v346_v53 = vld [vmem:[%s4774_s25 + $0x2e8] sm:$0xff] }
  0x41   : > { %4105 = vmatmul.mubr.msk.f32.gmra.mxu0 %vm396_vm0, %v268_v25  ;;  %4295 = vmatprep.subr.mxu0 %v1619_v55  ;;  %v318_v25 = vld [vmem:[%s4774_s25 + $0x208] sm:$0xff] }
  0x42   : > { %4107 = vmatprep.mubr.msk.f32.mxu0 %vm396_vm0, %v269_v26  ;;  %4296 = vmatpush3.msra.mxu0 %v1619_v55  ;;  %v319_v26 = vld [vmem:[%s4774_s25 + $0x210] sm:$0xff]  ;;  %v348_v55 = vld [vmem:[%s4774_s25 + $0x2f8] sm:$0xff] }
  0x43   : > { %4297 = vmatprep.subr.mxu0 %v1618_v57 }
  0x44   : > { %4298 = vmatpush3.msra.mxu0 %v1618_v57  ;;  %v350_v57 = vld [vmem:[%s4774_s25 + $0x308] sm:$0xff] }
  0x45   : > { %4108 = vmatmul.mubr.msk.f32.gmra.mxu0 %vm396_vm0, %v270_v27  ;;  %4299 = vmatprep.subr.mxu0 %v1617_v59  ;;  %v320_v27 = vld [vmem:[%s4774_s25 + $0x218] sm:$0xff] }
  0x46   : > { %4110 = vmatprep.mubr.msk.f32.mxu0 %vm396_vm0, %v271_v29  ;;  %4300 = vmatpush3.msra.mxu0 %v1617_v59  ;;  %v322_v29 = vld [vmem:[%s4774_s25 + $0x228] sm:$0xff] }
  0x47   : > { %4301 = vmatprep.subr.mxu0 %v1616_v61 }
  0x48   : > { %4302 = vmatpush3.msra.mxu0 %v1616_v61 }
  0x49   : > { %4111 = vmatmul.mubr.msk.f32.gmra.mxu0 %vm396_vm0, %v272_v30  ;;  %4303 = vmatprep.subr.mxu0 %v1615_v63  ;;  %v323_v30 = vld [vmem:[%s4774_s25 + $0x230] sm:$0xff] }
  0x4a   : > { %4113 = vmatprep.mubr.msk.f32.mxu0 %vm396_vm0, %v273_v31  ;;  %4304 = vmatpush3.msra.mxu0 %v1615_v63  ;;  %v324_v31 = vld [vmem:[%s4774_s25 + $0x238] sm:$0xff] }
  0x4b   : > { %4305 = vmatprep.subr.mxu0 %v1614_v1 }
  0x4c   : > { %4306 = vmatpush3.msra.mxu0 %v1614_v1 }
  0x4d   : > { %4114 = vmatmul.mubr.msk.f32.gmra.mxu0 %vm396_vm0, %v274_v32  ;;  %v325_v32 = vld [vmem:[%s4774_s25 + $0x240] sm:$0xff] }
  0x4e   : > { %4116 = vmatprep.mubr.msk.f32.mxu0 %vm396_vm0, %v275_v33  ;;  %v326_v33 = vld [vmem:[%s4774_s25 + $0x248] sm:$0xff] }
  0x51   : > { %4117 = vmatmul.mubr.msk.f32.gmra.mxu0 %vm396_vm0, %v276_v34  ;;  %v327_v34 = vld [vmem:[%s4774_s25 + $0x250] sm:$0xff] }
  0x52   : > { %4119 = vmatprep.mubr.msk.f32.mxu0 %vm396_vm0, %v277_v35  ;;  %v328_v35 = vld [vmem:[%s4774_s25 + $0x258] sm:$0xff] }
  0x55   : > { %4120 = vmatmul.mubr.msk.f32.gmra.mxu0 %vm396_vm0, %v278_v36  ;;  %v329_v36 = vld [vmem:[%s4774_s25 + $0x260] sm:$0xff] }
  0x56   : > { %4122 = vmatprep.mubr.msk.f32.mxu0 %vm396_vm0, %v279_v38  ;;  %v331_v38 = vld [vmem:[%s4774_s25 + $0x270] sm:$0xff] }
  0x59   : > { %4123 = vmatmul.mubr.msk.f32.gmra.mxu0 %vm396_vm0, %v280_v39  ;;  %v332_v39 = vld [vmem:[%s4774_s25 + $0x278] sm:$0xff] }
  0x5a   : > { %4125 = vmatprep.mubr.msk.f32.mxu0 %vm396_vm0, %v281_v40  ;;  %v333_v40 = vld [vmem:[%s4774_s25 + $0x280] sm:$0xff] }
  0x5d   : > { %4126 = vmatmul.mubr.msk.f32.gmra.mxu0 %vm396_vm0, %v282_v41  ;;  %v334_v41 = vld [vmem:[%s4774_s25 + $0x288] sm:$0xff] }
  0x5e   : > { %4128 = vmatprep.mubr.msk.f32.mxu0 %vm396_vm0, %v283_v42  ;;  %v335_v42 = vld [vmem:[%s4774_s25 + $0x290] sm:$0xff] }
  0x61   : > { %4129 = vmatmul.mubr.msk.f32.gmra.mxu0 %vm396_vm0, %v284_v45  ;;  %v338_v45 = vld [vmem:[%s4774_s25 + $0x2a8] sm:$0xff] }
  0x62   : > { %4131 = vmatprep.mubr.msk.f32.mxu0 %vm396_vm0, %v285_v46  ;;  %v339_v46 = vld [vmem:[%s4774_s25 + $0x2b0] sm:$0xff] }
  0x65   : > { %4132 = vmatmul.mubr.msk.f32.gmra.mxu0 %vm396_vm0, %v286_v49  ;;  %v342_v49 = vld [vmem:[%s4774_s25 + $0x2c8] sm:$0xff] }
  0x66   : > { %4134 = vmatprep.mubr.msk.f32.mxu0 %vm396_vm0, %v287_v50  ;;  %v343_v50 = vld [vmem:[%s4774_s25 + $0x2d0] sm:$0xff] }
  0x69   : > { %4135 = vmatmul.mubr.msk.f32.gmra.mxu0 %vm396_vm0, %v288_v52  ;;  %v345_v52 = vld [vmem:[%s4774_s25 + $0x2e0] sm:$0xff] }
  0x6a   : > { %4137 = vmatprep.mubr.msk.f32.mxu0 %vm396_vm0, %v289_v54  ;;  %v347_v54 = vld [vmem:[%s4774_s25 + $0x2f0] sm:$0xff] }
  0x6d   : > { %4138 = vmatmul.mubr.msk.f32.gmra.mxu0 %vm396_vm0, %v290_v56  ;;  %v349_v56 = vld [vmem:[%s4774_s25 + $0x300] sm:$0xff] }
  0x6e   : > { %4140 = vmatprep.mubr.msk.f32.mxu0 %vm396_vm0, %v291_v58  ;;  %v351_v58 = vld [vmem:[%s4774_s25 + $0x310] sm:$0xff] }
  0x71   : > { %4141 = vmatmul.mubr.msk.f32.gmra.mxu0 %vm396_vm0, %v292_v60  ;;  %v352_v60 = vld [vmem:[%s4774_s25 + $0x318] sm:$0xff] }
  0x72   : > { %4143 = vmatprep.mubr.msk.f32.mxu0 %vm396_vm0, %v293_v62  ;;  %v353_v62 = vld [vmem:[%s4774_s25 + $0x320] sm:$0xff] }
  0x75   : > { %4144 = vmatmul.mubr.msk.f32.gmra.mxu0 %vm396_vm0, %v294_v0  ;;  %v354_v0 = vld [vmem:[%s4774_s25 + $0x328] sm:$0xff] }
  0x76   : > { %4146 = vmatprep.mubr.msk.f32.mxu0 %vm396_vm0, %v295_v2  ;;  %v355_v2 = vld [vmem:[%s4774_s25 + $0x330] sm:$0xff] }
  0x79   : > { %4147 = vmatmul.mubr.msk.f32.gmra.mxu0 %vm396_vm0, %v296_v3 }
  0x7a   : > { %4149 = vmatprep.mubr.msk.f32.mxu0 %vm396_vm0, %v297_v4  ;;  %v5052_v4 = vld [vmem:[%s6173_s2] ss:$0 sm:$0xff] }
  0x7d   : > { %4150 = vmatmul.mubr.msk.f32.gmra.mxu0 %vm396_vm0, %v298_v5  ;;  %v356_v5 = vld [vmem:[%s4774_s25 + $0x338] sm:$0xff] }
  0x7e   : > { %4152 = vmatprep.mubr.msk.f32.mxu0 %vm396_vm0, %v299_v6 }
  0x81   : > { %4153 = vmatmul.mubr.msk.f32.gmra.mxu0 %vm396_vm0, %v300_v7 }
  0x82   : > { %4155 = vmatprep.mubr.msk.f32.mxu0 %vm396_vm0, %v301_v8  ;;  %v357_v8 = vld [vmem:[%s4774_s25 + $0x340] sm:$0xff] }
  0x85   : > { %4156 = vmatmul.mubr.msk.f32.gmra.mxu0 %vm396_vm0, %v302_v9 }
  0x86   : > { %4158 = vmatprep.mubr.msk.f32.mxu0 %vm396_vm0, %v303_v10 }
  0x89   : > { %4159 = vmatmul.mubr.msk.f32.gmra.mxu0 %vm396_vm0, %v304_v11 }
  0x8a   : > { %4161 = vmatprep.mubr.msk.f32.mxu0 %vm396_vm0, %v305_v12  ;;  %v358_v12 = vld [vmem:[%s4774_s25 + $0x348] sm:$0xff] }
  0x8d   : > { %4162 = vmatmul.mubr.msk.f32.gmra.mxu0 %vm396_vm0, %v306_v13 }
  0x8e   : > { %4164 = vmatprep.mubr.msk.f32.mxu0 %vm396_vm0, %v307_v14 }
  0x91   : > { %4165 = vmatmul.mubr.msk.f32.gmra.mxu0 %vm396_vm0, %v308_v15 }
  0x92   : > { %4167 = vmatprep.mubr.msk.f32.mxu0 %vm396_vm0, %v309_v16  ;;  %v359_v16 = vld [vmem:[%s4774_s25 + $0x350] sm:$0xff] }
  0x95   : > { %4168 = vmatmul.mubr.msk.f32.gmra.mxu0 %vm396_vm0, %v310_v17 }
  0x96   : > { %4170 = vmatprep.mubr.msk.f32.mxu0 %vm396_vm0, %v311_v18 }
  0x99   : > { %4171 = vmatmul.mubr.msk.f32.gmra.mxu0 %vm396_vm0, %v312_v19 }
  0x9a   : > { %4173 = vmatprep.mubr.msk.f32.mxu0 %vm396_vm0, %v313_v20  ;;  %v360_v20 = vld [vmem:[%s4774_s25 + $0x358] sm:$0xff] }
  0x9d   : > { %4174 = vmatmul.mubr.msk.f32.gmra.mxu0 %vm396_vm0, %v314_v21 }
  0x9e   : > { %4176 = vmatprep.mubr.msk.f32.mxu0 %vm396_vm0, %v315_v22 }
  0xa1   : > { %4177 = vmatmul.mubr.msk.f32.gmra.mxu0 %vm396_vm0, %v316_v23 }
  0xa2   : > { %4179 = vmatprep.mubr.msk.f32.mxu0 %vm396_vm0, %v317_v24  ;;  %v361_v24 = vld [vmem:[%s4774_s25 + $0x360] sm:$0xff] }
  0xa5   : > { %4180 = vmatmul.mubr.msk.f32.gmra.mxu0 %vm396_vm0, %v318_v25 }
  0xa6   : > { %4182 = vmatprep.mubr.msk.f32.mxu0 %vm396_vm0, %v319_v26 }
  0xa9   : > { %4183 = vmatmul.mubr.msk.f32.gmra.mxu0 %vm396_vm0, %v320_v27 }
  0xaa   : > { %4185 = vmatprep.mubr.msk.f32.mxu0 %vm396_vm0, %v321_v28  ;;  %v362_v28 = vld [vmem:[%s4774_s25 + $0x368] sm:$0xff] }
  0xad   : > { %4186 = vmatmul.mubr.msk.f32.gmra.mxu0 %vm396_vm0, %v322_v29 }
  0xae   : > { %4188 = vmatprep.mubr.msk.f32.mxu0 %vm396_vm0, %v323_v30 }
  0xb1   : > { %4189 = vmatmul.mubr.msk.f32.gmra.mxu0 %vm396_vm0, %v324_v31 }
  0xb2   : > { %4191 = vmatprep.mubr.msk.f32.mxu0 %vm396_vm0, %v325_v32  ;;  %v363_v32 = vld [vmem:[%s4774_s25 + $0x370] sm:$0xff] }
  0xb5   : > { %4192 = vmatmul.mubr.msk.f32.gmra.mxu0 %vm396_vm0, %v326_v33 }
  0xb6   : > { %4194 = vmatprep.mubr.msk.f32.mxu0 %vm396_vm0, %v327_v34 }
  0xb9   : > { %4195 = vmatmul.mubr.msk.f32.gmra.mxu0 %vm396_vm0, %v328_v35 }
  0xba   : > { %4197 = vmatprep.mubr.msk.f32.mxu0 %vm396_vm0, %v329_v36  ;;  %v364_v36 = vld [vmem:[%s4774_s25 + $0x378] sm:$0xff] }
  0xbd   : > { %4198 = vmatmul.mubr.msk.f32.gmra.mxu0 %vm396_vm0, %v330_v37 }
  0xbe   : > { %4200 = vmatprep.mubr.msk.f32.mxu0 %vm396_vm0, %v331_v38 }
  0xc1   : > { %4201 = vmatmul.mubr.msk.f32.gmra.mxu0 %vm396_vm0, %v332_v39 }
  0xc2   : > { %4203 = vmatprep.mubr.msk.f32.mxu0 %vm396_vm0, %v333_v40  ;;  %v365_v40 = vld [vmem:[%s4774_s25 + $0x380] sm:$0xff] }
  0xc5   : > { %4204 = vmatmul.mubr.msk.f32.gmra.mxu0 %vm396_vm0, %v334_v41 }
  0xc6   : > { %4206 = vmatprep.mubr.msk.f32.mxu0 %vm396_vm0, %v335_v42 }
  0xc9   : > { %4207 = vmatmul.mubr.msk.f32.gmra.mxu0 %vm396_vm0, %v336_v43 }
  0xca   : > { %4209 = vmatprep.mubr.msk.f32.mxu0 %vm396_vm0, %v337_v44  ;;  %v366_v44 = vld [vmem:[%s4774_s25 + $0x388] sm:$0xff] }
  0xcd   : > { %4210 = vmatmul.mubr.msk.f32.gmra.mxu0 %vm396_vm0, %v338_v45 }
  0xce   : > { %4212 = vmatprep.mubr.msk.f32.mxu0 %vm396_vm0, %v339_v46 }
  0xd1   : > { %4213 = vmatmul.mubr.msk.f32.gmra.mxu0 %vm396_vm0, %v340_v47 }
  0xd2   : > { %4215 = vmatprep.mubr.msk.f32.mxu0 %vm396_vm0, %v341_v48  ;;  %v367_v48 = vld [vmem:[%s4774_s25 + $0x390] sm:$0xff] }
  0xd5   : > { %4216 = vmatmul.mubr.msk.f32.gmra.mxu0 %vm396_vm0, %v342_v49 }
  0xd6   : > { %4218 = vmatprep.mubr.msk.f32.mxu0 %vm396_vm0, %v343_v50 }
  0xd9   : > { %4219 = vmatmul.mubr.msk.f32.gmra.mxu0 %vm396_vm0, %v344_v51 }
  0xda   : > { %4221 = vmatprep.mubr.msk.f32.mxu0 %vm396_vm0, %v345_v52  ;;  %v368_v52 = vld [vmem:[%s4774_s25 + $0x398] sm:$0xff] }
  0xdd   : > { %4222 = vmatmul.mubr.msk.f32.gmra.mxu0 %vm396_vm0, %v346_v53 }
  0xde   : > { %4224 = vmatprep.mubr.msk.f32.mxu0 %vm396_vm0, %v347_v54 }
  0xe1   : > { %4225 = vmatmul.mubr.msk.f32.gmra.mxu0 %vm396_vm0, %v348_v55 }
  0xe2   : > { %4227 = vmatprep.mubr.msk.f32.mxu0 %vm396_vm0, %v349_v56  ;;  %v369_v56 = vld [vmem:[%s4774_s25 + $0x3a0] sm:$0xff] }
  0xe5   : > { %v5032_v59 = vpop.f32.mrf.mxu0  ;;  %4228 = vmatmul.mubr.msk.f32.gmra.mxu0 %vm396_vm0, %v350_v57 }
  0xe6   : > { %4230 = vmatprep.mubr.msk.f32.mxu0 %vm396_vm0, %v351_v58 }
  0xe7   : > { %v5037_v61 = vpop.f32.mrf.mxu0 }
  0xe9   : > { %v5040_v63 = vpop.f32.mrf.mxu0  ;;  %4231 = vmatmul.mubr.msk.f32.gmra.mxu0 %vm396_vm0, %v352_v60 }
  0xea   : > { %4233 = vmatprep.mubr.msk.f32.mxu0 %vm396_vm0, %v353_v62  ;;  %v370_v62 = vld [vmem:[%s4774_s25 + $0x3a8] sm:$0xff] }
  0xeb   : > { %v5045_v1 = vpop.f32.mrf.mxu0 }
  0xed   : > { %v4091_v3 = vpop.f32.mrf.mxu0  ;;  %4234 = vmatmul.mubr.msk.f32.gmra.mxu0 %vm396_vm0, %v354_v0 }
  0xee   : > { %4236 = vmatprep.mubr.msk.f32.mxu0 %vm396_vm0, %v355_v2  ;;  %v873_v6 = vadd.f32 %v4091_v3, %v5052_v4 }
  0xef   : > { %v867_v7 = vpop.f32.mrf.mxu0 }
  0xf0   : > { %v868_v9 = vadd.f32 %v5052_v4, %v867_v7  ;;  %v1491_v13 = vmax.f32 %v873_v6, 0.0 }
  0xf1   : > { %v4094_v10 = vpop.f32.mrf.mxu0  ;;  %4237 = vmatmul.mubr.msk.f32.gmra.mxu0 %vm396_vm0, %v356_v5  ;;  %v371_v5 = vld [vmem:[%s4774_s25 + $0x3b0] sm:$0xff] }
  0xf2   : > { %4239 = vmatprep.mubr.msk.f32.mxu0 %vm396_vm0, %v357_v8  ;;  %v1490_v11 = vmax.f32 %v868_v9, 0.0  ;;  %v883_v14 = vadd.f32 %v4094_v10, %v5052_v4  ;;  %v372_v9 = vld [vmem:[%s4774_s25 + $0x3b8] sm:$0xff] }
  0xf3   : > { %v877_v15 = vpop.f32.mrf.mxu0 }
  0xf4   : > { %v878_v17 = vadd.f32 %v5052_v4, %v877_v15  ;;  %4313 = vmatprep.mubr.f32.mxu1 %v1490_v11  ;;  %v1493_v21 = vmax.f32 %v883_v14, 0.0 }
  0xf5   : > { %v4097_v18 = vpop.f32.mrf.mxu0  ;;  %4240 = vmatmul.mubr.msk.f32.gmra.mxu0 %vm396_vm0, %v358_v12  ;;  %4314 = vmatmul.mubr.f32.vlgmr.msra.gmra.mxu1 %v1491_v13  ;;  %v373_v13 = vld [vmem:[%s4774_s25 + $0x3c0] sm:$0xff] }
  0xf6   : > { %v1492_v19 = vmax.f32 %v878_v17, 0.0  ;;  %4242 = vmatprep.mubr.msk.f32.mxu0 %vm396_vm0, %v359_v16  ;;  %v893_v22 = vadd.f32 %v4097_v18, %v5052_v4  ;;  %v374_v17 = vld [vmem:[%s4774_s25 + $0x3c8] sm:$0xff] }
  0xf7   : > { %v887_v23 = vpop.f32.mrf.mxu0 }
  0xf8   : > { %v888_v25 = vadd.f32 %v5052_v4, %v887_v23  ;;  %4316 = vmatprep.mubr.f32.mxu1 %v1492_v19  ;;  %v1495_v29 = vmax.f32 %v893_v22, 0.0 }
  0xf9   : > { %v4100_v26 = vpop.f32.mrf.mxu0  ;;  %4243 = vmatmul.mubr.msk.f32.gmra.mxu0 %vm396_vm0, %v360_v20  ;;  %4317 = vmatmul.mubr.f32.gmra.mxu1 %v1493_v21  ;;  %v375_v21 = vld [vmem:[%s4774_s25 + $0x3d0] sm:$0xff] }
  0xfa   : > { %v1494_v27 = vmax.f32 %v888_v25, 0.0  ;;  %4245 = vmatprep.mubr.msk.f32.mxu0 %vm396_vm0, %v361_v24  ;;  %v903_v30 = vadd.f32 %v4100_v26, %v5052_v4  ;;  %v376_v25 = vld [vmem:[%s4774_s25 + $0x3d8] sm:$0xff] }
  0xfb   : > { %v897_v31 = vpop.f32.mrf.mxu0 }
  0xfc   : > { %v898_v33 = vadd.f32 %v5052_v4, %v897_v31  ;;  %4319 = vmatprep.mubr.f32.mxu1 %v1494_v27  ;;  %v1497_v37 = vmax.f32 %v903_v30, 0.0 }
  0xfd   : > { %v4103_v34 = vpop.f32.mrf.mxu0  ;;  %4246 = vmatmul.mubr.msk.f32.gmra.mxu0 %vm396_vm0, %v362_v28  ;;  %4320 = vmatmul.mubr.f32.gmra.mxu1 %v1495_v29  ;;  %v377_v29 = vld [vmem:[%s4774_s25 + $0x3e0] sm:$0xff] }
  0xfe   : > { %v1496_v35 = vmax.f32 %v898_v33, 0.0  ;;  %4248 = vmatprep.mubr.msk.f32.mxu0 %vm396_vm0, %v363_v32  ;;  %v913_v38 = vadd.f32 %v4103_v34, %v5052_v4  ;;  %v378_v33 = vld [vmem:[%s4774_s25 + $0x3e8] sm:$0xff] }
  0xff   : > { %v907_v39 = vpop.f32.mrf.mxu0 }
 0x100   : > { %v908_v41 = vadd.f32 %v5052_v4, %v907_v39  ;;  %4322 = vmatprep.mubr.f32.mxu1 %v1496_v35  ;;  %v1499_v45 = vmax.f32 %v913_v38, 0.0  ;;  %v848_v38 = vadd.f32 %v5052_v4, %v5037_v61  ;;  %v858_v61 = vadd.f32 %v5052_v4, %v5045_v1 }
 0x101   : > { %v4106_v42 = vpop.f32.mrf.mxu0  ;;  %4249 = vmatmul.mubr.msk.f32.gmra.mxu0 %vm396_vm0, %v364_v36  ;;  %4323 = vmatmul.mubr.f32.gmra.mxu1 %v1497_v37  ;;  %v379_v37 = vld [vmem:[%s4774_s25 + $0x3f0] sm:$0xff] }
 0x102   : > { %v1498_v43 = vmax.f32 %v908_v41, 0.0  ;;  %4251 = vmatprep.mubr.msk.f32.mxu0 %vm396_vm0, %v365_v40  ;;  %v923_v46 = vadd.f32 %v4106_v42, %v5052_v4  ;;  %v380_v42 = vld [vmem:[%s4774_s25 + $0x3f8] sm:$0xff]  ;;  %s6119_s25 = scalar_lea.hbm %s6176_s5, %s3786_s15 }
 0x103   : > { %v917_v47 = vpop.f32.mrf.mxu0 }
 0x104   : > { %v918_v49 = vadd.f32 %v5052_v4, %v917_v47  ;;  %4325 = vmatprep.mubr.f32.mxu1 %v1498_v43  ;;  %v1501_v53 = vmax.f32 %v923_v46, 0.0  ;;  %v853_v43 = vadd.f32 %v5032_v59, %v5052_v4  ;;  %v1486_v47 = vmax.f32 %v848_v38, 0.0 }
 0x105   : > { %v4109_v50 = vpop.f32.mrf.mxu0  ;;  %4252 = vmatmul.mubr.msk.f32.gmra.mxu0 %vm396_vm0, %v366_v44  ;;  %4326 = vmatmul.mubr.f32.gmra.mxu1 %v1499_v45  ;;  %v863_v59 = vadd.f32 %v5040_v63, %v5052_v4 }
 0x106   : > { %v1500_v51 = vmax.f32 %v918_v49, 0.0  ;;  %4254 = vmatprep.mubr.msk.f32.mxu0 %vm396_vm0, %v367_v48  ;;  %v933_v54 = vadd.f32 %v4109_v50, %v5052_v4 }
 0x107   : > { %v927_v55 = vpop.f32.mrf.mxu0 }
 0x108   : > { %v928_v57 = vadd.f32 %v5052_v4, %v927_v55  ;;  %4328 = vmatprep.mubr.f32.mxu1 %v1500_v51  ;;  %v1503_v0 = vmax.f32 %v933_v54, 0.0  ;;  %v1487_v51 = vmax.f32 %v853_v43, 0.0  ;;  %v1488_v55 = vmax.f32 %v858_v61, 0.0 }
 0x109   : > { %v4112_v58 = vpop.f32.mrf.mxu0  ;;  %4255 = vmatmul.mubr.msk.f32.gmra.mxu0 %vm396_vm0, %v368_v52  ;;  %4329 = vmatmul.mubr.f32.gmra.mxu1 %v1501_v53 }
 0x10a   : > { %v1502_v60 = vmax.f32 %v928_v57, 0.0  ;;  %4257 = vmatprep.mubr.msk.f32.mxu0 %vm396_vm0, %v369_v56  ;;  %v943_v2 = vadd.f32 %v4112_v58, %v5052_v4  ;;  %v1489_v58 = vmax.f32 %v863_v59, 0.0 }
 0x10b   : > { %v937_v3 = vpop.f32.mrf.mxu0 }
 0x10c   : > { %v938_v6 = vadd.f32 %v5052_v4, %v937_v3  ;;  %4331 = vmatprep.mubr.f32.mxu1 %v1502_v60  ;;  %v1505_v10 = vmax.f32 %v943_v2, 0.0 }
 0x10d   : > { %v4115_v7 = vpop.f32.mrf.mxu0  ;;  %4258 = vmatmul.mubr.msk.f32.gmra.mxu0 %vm396_vm0, %v370_v62  ;;  %4332 = vmatmul.mubr.f32.gmra.mxu1 %v1503_v0 }
 0x10e   : > { %v1504_v8 = vmax.f32 %v938_v6, 0.0  ;;  %4260 = vmatprep.mubr.msk.f32.mxu0 %vm396_vm0, %v371_v5  ;;  %v953_v11 = vadd.f32 %v4115_v7, %v5052_v4 }
 0x10f   : > { %v947_v12 = vpop.f32.mrf.mxu0 }
 0x110   : > { %v948_v14 = vadd.f32 %v5052_v4, %v947_v12  ;;  %4334 = vmatprep.mubr.f32.mxu1 %v1504_v8  ;;  %v1507_v18 = vmax.f32 %v953_v11, 0.0 }
 0x111   : > { %v4118_v15 = vpop.f32.mrf.mxu0  ;;  %4261 = vmatmul.mubr.msk.f32.gmra.mxu0 %vm396_vm0, %v372_v9  ;;  %4335 = vmatmul.mubr.f32.gmra.mxu1 %v1505_v10 }
 0x112   : > { %v1506_v16 = vmax.f32 %v948_v14, 0.0  ;;  %4263 = vmatprep.mubr.msk.f32.mxu0 %vm396_vm0, %v373_v13  ;;  %v963_v19 = vadd.f32 %v4118_v15, %v5052_v4 }
 0x113   : > { %v957_v20 = vpop.f32.mrf.mxu0 }
 0x114   : > { %v958_v22 = vadd.f32 %v5052_v4, %v957_v20  ;;  %4337 = vmatprep.mubr.f32.mxu1 %v1506_v16  ;;  %v1509_v26 = vmax.f32 %v963_v19, 0.0 }
 0x115   : > { %v4121_v23 = vpop.f32.mrf.mxu0  ;;  %4264 = vmatmul.mubr.msk.f32.gmra.mxu0 %vm396_vm0, %v374_v17  ;;  %4338 = vmatmul.mubr.f32.gmra.mxu1 %v1507_v18 }
 0x116   : > { %v1508_v24 = vmax.f32 %v958_v22, 0.0  ;;  %4266 = vmatprep.mubr.msk.f32.mxu0 %vm396_vm0, %v375_v21  ;;  %v973_v27 = vadd.f32 %v4121_v23, %v5052_v4 }
 0x117   : > { %v967_v28 = vpop.f32.mrf.mxu0 }
 0x118   : > { %v968_v30 = vadd.f32 %v5052_v4, %v967_v28  ;;  %4340 = vmatprep.mubr.f32.mxu1 %v1508_v24  ;;  %v1511_v34 = vmax.f32 %v973_v27, 0.0 }
 0x119   : > { %v4124_v31 = vpop.f32.mrf.mxu0  ;;  %4267 = vmatmul.mubr.msk.f32.gmra.mxu0 %vm396_vm0, %v376_v25  ;;  %4341 = vmatmul.mubr.f32.gmra.mxu1 %v1509_v26 }
 0x11a   : > { %v1510_v32 = vmax.f32 %v968_v30, 0.0  ;;  %4269 = vmatprep.mubr.msk.f32.mxu0 %vm396_vm0, %v377_v29  ;;  %v983_v35 = vadd.f32 %v4124_v31, %v5052_v4 }
 0x11b   : > { %v977_v36 = vpop.f32.mrf.mxu0 }
 0x11c   : > { %v978_v39 = vadd.f32 %v5052_v4, %v977_v36  ;;  %4343 = vmatprep.mubr.f32.mxu1 %v1510_v32  ;;  %v1513_v44 = vmax.f32 %v983_v35, 0.0 }
 0x11d   : > { %v4127_v40 = vpop.f32.mrf.mxu0  ;;  %4270 = vmatmul.mubr.msk.f32.gmra.mxu0 %vm396_vm0, %v378_v33  ;;  %4344 = vmatmul.mubr.f32.gmra.mxu1 %v1511_v34 }
 0x11e   : > { %v1512_v41 = vmax.f32 %v978_v39, 0.0  ;;  %4272 = vmatprep.mubr.msk.f32.mxu0 %vm396_vm0, %v379_v37  ;;  %v993_v45 = vadd.f32 %v4127_v40, %v5052_v4 }
 0x11f   : > { %v987_v46 = vpop.f32.mrf.mxu0 }
 0x120   : > { %v988_v48 = vadd.f32 %v5052_v4, %v987_v46  ;;  %4346 = vmatprep.mubr.f32.mxu1 %v1512_v41  ;;  %v1515_v52 = vmax.f32 %v993_v45, 0.0 }
 0x121   : > { %v4130_v49 = vpop.f32.mrf.mxu0  ;;  %4273 = vmatmul.mubr.msk.f32.gmra.mxu0 %vm396_vm0, %v380_v42  ;;  %4347 = vmatmul.mubr.f32.gmra.mxu1 %v1513_v44 }
 0x122   : > { %v1514_v50 = vmax.f32 %v988_v48, 0.0  ;;  %4307 = vmatprep.mubr.f32.mxu0 %v1486_v47  ;;  %v1003_v53 = vadd.f32 %v4130_v49, %v5052_v4 }
 0x123   : > { %v997_v54 = vpop.f32.mrf.mxu0 }
 0x124   : > { %v998_v1 = vadd.f32 %v5052_v4, %v997_v54  ;;  %4349 = vmatprep.mubr.f32.mxu1 %v1514_v50  ;;  %v1517_v60 = vmax.f32 %v1003_v53, 0.0 }
 0x125   : > { %v4133_v56 = vpop.f32.mrf.mxu0  ;;  %4308 = vmatmul.mubr.f32.vlgmr.msra.gmra.mxu0 %v1487_v51  ;;  %4350 = vmatmul.mubr.f32.gmra.mxu1 %v1515_v52 }
 0x126   : > { %v1516_v57 = vmax.f32 %v998_v1, 0.0  ;;  %4310 = vmatprep.mubr.f32.mxu0 %v1488_v55  ;;  %v1013_v62 = vadd.f32 %v4133_v56, %v5052_v4 }
 0x127   : > { %v1007_v0 = vpop.f32.mrf.mxu0 }
 0x128   : > { %v1008_v63 = vadd.f32 %v5052_v4, %v1007_v0  ;;  %4352 = vmatprep.mubr.f32.mxu1 %v1516_v57  ;;  %v1519_v5 = vmax.f32 %v1013_v62, 0.0 }
 0x129   : > { %v4136_v2 = vpop.f32.mrf.mxu0  ;;  %4311 = vmatmul.mubr.f32.gmra.mxu0 %v1489_v58  ;;  %4353 = vmatmul.mubr.f32.gmra.mxu1 %v1517_v60 }
 0x12a   : > { %v1518_v3 = vmax.f32 %v1008_v63, 0.0  ;;  %v1023_v6 = vadd.f32 %v4136_v2, %v5052_v4 }
 0x12b   : > { %v1017_v7 = vpop.f32.mrf.mxu0 }
 0x12c   : > { %v1018_v8 = vadd.f32 %v5052_v4, %v1017_v7  ;;  %4355 = vmatprep.mubr.f32.mxu1 %v1518_v3  ;;  %v1521_v11 = vmax.f32 %v1023_v6, 0.0 }
 0x12d   : > { %v4139_v9 = vpop.f32.mrf.mxu0  ;;  %4356 = vmatmul.mubr.f32.gmra.mxu1 %v1519_v5 }
 0x12e   : > { %v1520_v10 = vmax.f32 %v1018_v8, 0.0  ;;  %v1033_v12 = vadd.f32 %v4139_v9, %v5052_v4 }
 0x12f   : > { %v1027_v13 = vpop.f32.mrf.mxu0 }
 0x130   : > { %v1028_v14 = vadd.f32 %v5052_v4, %v1027_v13  ;;  %4358 = vmatprep.mubr.f32.mxu1 %v1520_v10  ;;  %v1523_v17 = vmax.f32 %v1033_v12, 0.0 }
 0x131   : > { %v4142_v15 = vpop.f32.mrf.mxu0  ;;  %4359 = vmatmul.mubr.f32.gmra.mxu1 %v1521_v11 }
 0x132   : > { %v1522_v16 = vmax.f32 %v1028_v14, 0.0  ;;  %v1043_v18 = vadd.f32 %v4142_v15, %v5052_v4 }
 0x133   : > { %v1037_v19 = vpop.f32.mrf.mxu0 }
 0x134   : > { %v1038_v20 = vadd.f32 %v5052_v4, %v1037_v19  ;;  %4361 = vmatprep.mubr.f32.mxu1 %v1522_v16  ;;  %v1525_v23 = vmax.f32 %v1043_v18, 0.0 }
 0x135   : > { %v4145_v21 = vpop.f32.mrf.mxu0  ;;  %4362 = vmatmul.mubr.f32.gmra.mxu1 %v1523_v17 }
 0x136   : > { %v1524_v22 = vmax.f32 %v1038_v20, 0.0  ;;  %v1053_v24 = vadd.f32 %v4145_v21, %v5052_v4 }
 0x137   : > { %v1047_v25 = vpop.f32.mrf.mxu0 }
 0x138   : > { %v1048_v26 = vadd.f32 %v5052_v4, %v1047_v25  ;;  %4364 = vmatprep.mubr.f32.mxu1 %v1524_v22  ;;  %v1527_v29 = vmax.f32 %v1053_v24, 0.0 }
 0x139   : > { %v4148_v27 = vpop.f32.mrf.mxu0  ;;  %4365 = vmatmul.mubr.f32.gmra.mxu1 %v1525_v23 }
 0x13a   : > { %v1526_v28 = vmax.f32 %v1048_v26, 0.0  ;;  %v1063_v30 = vadd.f32 %v4148_v27, %v5052_v4 }
 0x13b   : > { %v1057_v31 = vpop.f32.mrf.mxu0 }
 0x13c   : > { %v1058_v32 = vadd.f32 %v5052_v4, %v1057_v31  ;;  %4367 = vmatprep.mubr.f32.mxu1 %v1526_v28  ;;  %v1529_v35 = vmax.f32 %v1063_v30, 0.0 }
 0x13d   : > { %v4151_v33 = vpop.f32.mrf.mxu0  ;;  %4368 = vmatmul.mubr.f32.gmra.mxu1 %v1527_v29 }
 0x13e   : > { %v1528_v34 = vmax.f32 %v1058_v32, 0.0  ;;  %v1073_v36 = vadd.f32 %v4151_v33, %v5052_v4 }
 0x13f   : > { %v1067_v37 = vpop.f32.mrf.mxu0 }
 0x140   : > { %v1068_v38 = vadd.f32 %v5052_v4, %v1067_v37  ;;  %4370 = vmatprep.mubr.f32.mxu1 %v1528_v34  ;;  %v1531_v41 = vmax.f32 %v1073_v36, 0.0 }
 0x141   : > { %v4154_v39 = vpop.f32.mrf.mxu0  ;;  %4371 = vmatmul.mubr.f32.gmra.mxu1 %v1529_v35 }
 0x142   : > { %v1530_v40 = vmax.f32 %v1068_v38, 0.0  ;;  %v1083_v42 = vadd.f32 %v4154_v39, %v5052_v4 }
 0x143   : > { %v1077_v43 = vpop.f32.mrf.mxu0 }
 0x144   : > { %v1078_v44 = vadd.f32 %v5052_v4, %v1077_v43  ;;  %4373 = vmatprep.mubr.f32.mxu1 %v1530_v40  ;;  %v1533_v47 = vmax.f32 %v1083_v42, 0.0 }
 0x145   : > { %v4157_v45 = vpop.f32.mrf.mxu0  ;;  %4374 = vmatmul.mubr.f32.gmra.mxu1 %v1531_v41 }
 0x146   : > { %v1532_v46 = vmax.f32 %v1078_v44, 0.0  ;;  %v1093_v61 = vadd.f32 %v4157_v45, %v5052_v4 }
 0x147   : > { %v1087_v48 = vpop.f32.mrf.mxu0 }
 0x148   : > { %v1088_v49 = vadd.f32 %v5052_v4, %v1087_v48  ;;  %4376 = vmatprep.mubr.f32.mxu1 %v1532_v46  ;;  %v1535_v59 = vmax.f32 %v1093_v61, 0.0 }
 0x149   : > { %v4160_v50 = vpop.f32.mrf.mxu0  ;;  %4377 = vmatmul.mubr.f32.gmra.mxu1 %v1533_v47 }
 0x14a   : > { %v1534_v51 = vmax.f32 %v1088_v49, 0.0  ;;  %v1103_v52 = vadd.f32 %v4160_v50, %v5052_v4 }
 0x14b   : > { %v1097_v53 = vpop.f32.mrf.mxu0 }
 0x14c   : > { %v1098_v54 = vadd.f32 %v5052_v4, %v1097_v53  ;;  %4379 = vmatprep.mubr.f32.mxu1 %v1534_v51  ;;  %v1537_v56 = vmax.f32 %v1103_v52, 0.0 }
 0x14d   : > { %v4163_v55 = vpop.f32.mrf.mxu0  ;;  %4380 = vmatmul.mubr.f32.gmra.mxu1 %v1535_v59 }
 0x14e   : > { %v1536_v1 = vmax.f32 %v1098_v54, 0.0  ;;  %v1113_v57 = vadd.f32 %v4163_v55, %v5052_v4 }
 0x14f   : > { %v1107_v58 = vpop.f32.mrf.mxu0 }
 0x150   : > { %v1108_v60 = vadd.f32 %v5052_v4, %v1107_v58  ;;  %4382 = vmatprep.mubr.f32.mxu1 %v1536_v1  ;;  %v1539_v63 = vmax.f32 %v1113_v57, 0.0 }
 0x151   : > { %v4166_v62 = vpop.f32.mrf.mxu0  ;;  %4383 = vmatmul.mubr.f32.gmra.mxu1 %v1537_v56 }
 0x152   : > { %v1538_v0 = vmax.f32 %v1108_v60, 0.0  ;;  %v1123_v2 = vadd.f32 %v4166_v62, %v5052_v4 }
 0x153   : > { %v1117_v3 = vpop.f32.mrf.mxu0 }
 0x154   : > { %v1118_v5 = vadd.f32 %v5052_v4, %v1117_v3  ;;  %4385 = vmatprep.mubr.f32.mxu1 %v1538_v0  ;;  %v1541_v8 = vmax.f32 %v1123_v2, 0.0 }
 0x155   : > { %v4169_v6 = vpop.f32.mrf.mxu0  ;;  %4386 = vmatmul.mubr.f32.gmra.mxu1 %v1539_v63 }
 0x156   : > { %v1540_v7 = vmax.f32 %v1118_v5, 0.0  ;;  %v1133_v9 = vadd.f32 %v4169_v6, %v5052_v4 }
 0x157   : > { %v1127_v10 = vpop.f32.mrf.mxu0 }
 0x158   : > { %v1128_v11 = vadd.f32 %v5052_v4, %v1127_v10  ;;  %4388 = vmatprep.mubr.f32.mxu1 %v1540_v7  ;;  %v1543_v14 = vmax.f32 %v1133_v9, 0.0 }
 0x159   : > { %v4172_v12 = vpop.f32.mrf.mxu0  ;;  %4389 = vmatmul.mubr.f32.gmra.mxu1 %v1541_v8 }
 0x15a   : > { %v1542_v13 = vmax.f32 %v1128_v11, 0.0  ;;  %v1143_v15 = vadd.f32 %v4172_v12, %v5052_v4 }
 0x15b   : > { %v1137_v16 = vpop.f32.mrf.mxu0 }
 0x15c   : > { %v1138_v17 = vadd.f32 %v5052_v4, %v1137_v16  ;;  %4391 = vmatprep.mubr.f32.mxu1 %v1542_v13  ;;  %v1545_v20 = vmax.f32 %v1143_v15, 0.0 }
 0x15d   : > { %v4175_v18 = vpop.f32.mrf.mxu0  ;;  %4392 = vmatmul.mubr.f32.gmra.mxu1 %v1543_v14 }
 0x15e   : > { %v1544_v19 = vmax.f32 %v1138_v17, 0.0  ;;  %v1153_v21 = vadd.f32 %v4175_v18, %v5052_v4 }
 0x15f   : > { %v1147_v22 = vpop.f32.mrf.mxu0 }
 0x160   : > { %v1148_v23 = vadd.f32 %v5052_v4, %v1147_v22  ;;  %4394 = vmatprep.mubr.f32.mxu1 %v1544_v19  ;;  %v1547_v26 = vmax.f32 %v1153_v21, 0.0 }
 0x161   : > { %v4178_v24 = vpop.f32.mrf.mxu0  ;;  %4395 = vmatmul.mubr.f32.gmra.mxu1 %v1545_v20 }
 0x162   : > { %v1546_v25 = vmax.f32 %v1148_v23, 0.0  ;;  %v1163_v27 = vadd.f32 %v4178_v24, %v5052_v4 }
 0x163   : > { %v1157_v28 = vpop.f32.mrf.mxu0 }
 0x164   : > { %v1158_v29 = vadd.f32 %v5052_v4, %v1157_v28  ;;  %4397 = vmatprep.mubr.f32.mxu1 %v1546_v25  ;;  %v1549_v32 = vmax.f32 %v1163_v27, 0.0 }
 0x165   : > { %v4181_v30 = vpop.f32.mrf.mxu0  ;;  %4398 = vmatmul.mubr.f32.gmra.mxu1 %v1547_v26 }
 0x166   : > { %v1548_v31 = vmax.f32 %v1158_v29, 0.0  ;;  %v1173_v33 = vadd.f32 %v4181_v30, %v5052_v4 }
 0x167   : > { %v1167_v34 = vpop.f32.mrf.mxu0 }
 0x168   : > { %v1168_v35 = vadd.f32 %v5052_v4, %v1167_v34  ;;  %4400 = vmatprep.mubr.f32.mxu1 %v1548_v31  ;;  %v1551_v38 = vmax.f32 %v1173_v33, 0.0 }
 0x169   : > { %v4184_v36 = vpop.f32.mrf.mxu0  ;;  %4401 = vmatmul.mubr.f32.gmra.mxu1 %v1549_v32 }
 0x16a   : > { %v1550_v37 = vmax.f32 %v1168_v35, 0.0  ;;  %v1183_v39 = vadd.f32 %v4184_v36, %v5052_v4 }
 0x16b   : > { %v1177_v40 = vpop.f32.mrf.mxu0 }
 0x16c   : > { %v1178_v41 = vadd.f32 %v5052_v4, %v1177_v40  ;;  %4403 = vmatprep.mubr.f32.mxu1 %v1550_v37  ;;  %v1553_v44 = vmax.f32 %v1183_v39, 0.0 }
 0x16d   : > { %v4187_v42 = vpop.f32.mrf.mxu0  ;;  %4404 = vmatmul.mubr.f32.gmra.mxu1 %v1551_v38 }
 0x16e   : > { %v1552_v43 = vmax.f32 %v1178_v41, 0.0  ;;  %v1193_v45 = vadd.f32 %v4187_v42, %v5052_v4 }
 0x16f   : > { %v1187_v46 = vpop.f32.mrf.mxu0 }
 0x170   : > { %v1188_v47 = vadd.f32 %v5052_v4, %v1187_v46  ;;  %4406 = vmatprep.mubr.f32.mxu1 %v1552_v43  ;;  %v1555_v49 = vmax.f32 %v1193_v45, 0.0 }
 0x171   : > { %v4190_v61 = vpop.f32.mrf.mxu0  ;;  %4407 = vmatmul.mubr.f32.gmra.mxu1 %v1553_v44 }
 0x172   : > { %v1554_v48 = vmax.f32 %v1188_v47, 0.0  ;;  %v1203_v50 = vadd.f32 %v4190_v61, %v5052_v4 }
 0x173   : > { %v1197_v51 = vpop.f32.mrf.mxu0 }
 0x174   : > { %v1198_v59 = vadd.f32 %v5052_v4, %v1197_v51  ;;  %4409 = vmatprep.mubr.f32.mxu1 %v1554_v48  ;;  %v1557_v54 = vmax.f32 %v1203_v50, 0.0 }
 0x175   : > { %v4193_v52 = vpop.f32.mrf.mxu0  ;;  %4410 = vmatmul.mubr.f32.gmra.mxu1 %v1555_v49 }
 0x176   : > { %v1556_v53 = vmax.f32 %v1198_v59, 0.0  ;;  %v1213_v55 = vadd.f32 %v4193_v52, %v5052_v4 }
 0x177   : > { %v1207_v1 = vpop.f32.mrf.mxu0 }
 0x178   : > { %v1208_v56 = vadd.f32 %v5052_v4, %v1207_v1  ;;  %4412 = vmatprep.mubr.f32.mxu1 %v1556_v53  ;;  %v1559_v60 = vmax.f32 %v1213_v55, 0.0 }
 0x179   : > { %v4196_v57 = vpop.f32.mrf.mxu0  ;;  %4413 = vmatmul.mubr.f32.gmra.mxu1 %v1557_v54 }
 0x17a   : > { %v1558_v58 = vmax.f32 %v1208_v56, 0.0  ;;  %v1223_v62 = vadd.f32 %v4196_v57, %v5052_v4 }
 0x17b   : > { %v1217_v0 = vpop.f32.mrf.mxu0 }
 0x17c   : > { %v1218_v63 = vadd.f32 %v5052_v4, %v1217_v0  ;;  %4415 = vmatprep.mubr.f32.mxu1 %v1558_v58  ;;  %v1561_v5 = vmax.f32 %v1223_v62, 0.0 }
 0x17d   : > { %v4199_v2 = vpop.f32.mrf.mxu0  ;;  %4416 = vmatmul.mubr.f32.gmra.mxu1 %v1559_v60 }
 0x17e   : > { %v1560_v3 = vmax.f32 %v1218_v63, 0.0  ;;  %v1233_v6 = vadd.f32 %v4199_v2, %v5052_v4 }
 0x17f   : > { %v1227_v7 = vpop.f32.mrf.mxu0 }
 0x180   : > { %v1228_v8 = vadd.f32 %v5052_v4, %v1227_v7  ;;  %4418 = vmatprep.mubr.f32.mxu1 %v1560_v3  ;;  %v1563_v11 = vmax.f32 %v1233_v6, 0.0 }
 0x181   : > { %v4202_v9 = vpop.f32.mrf.mxu0  ;;  %4419 = vmatmul.mubr.f32.gmra.mxu1 %v1561_v5 }
 0x182   : > { %v1562_v10 = vmax.f32 %v1228_v8, 0.0  ;;  %v1243_v12 = vadd.f32 %v4202_v9, %v5052_v4 }
 0x183   : > { %v1237_v13 = vpop.f32.mrf.mxu0 }
 0x184   : > { %v1238_v14 = vadd.f32 %v5052_v4, %v1237_v13  ;;  %4421 = vmatprep.mubr.f32.mxu1 %v1562_v10  ;;  %v1565_v17 = vmax.f32 %v1243_v12, 0.0 }
 0x185   : > { %v4205_v15 = vpop.f32.mrf.mxu0  ;;  %4422 = vmatmul.mubr.f32.gmra.mxu1 %v1563_v11 }
 0x186   : > { %v1564_v16 = vmax.f32 %v1238_v14, 0.0  ;;  %v1253_v18 = vadd.f32 %v4205_v15, %v5052_v4 }
 0x187   : > { %v1247_v19 = vpop.f32.mrf.mxu0 }
 0x188   : > { %v1248_v20 = vadd.f32 %v5052_v4, %v1247_v19  ;;  %4424 = vmatprep.mubr.f32.mxu1 %v1564_v16  ;;  %v1567_v23 = vmax.f32 %v1253_v18, 0.0 }
 0x189   : > { %v4208_v21 = vpop.f32.mrf.mxu0  ;;  %4425 = vmatmul.mubr.f32.gmra.mxu1 %v1565_v17 }
 0x18a   : > { %v1566_v22 = vmax.f32 %v1248_v20, 0.0  ;;  %v1263_v24 = vadd.f32 %v4208_v21, %v5052_v4 }
 0x18b   : > { %v1257_v25 = vpop.f32.mrf.mxu0 }
 0x18c   : > { %v1258_v26 = vadd.f32 %v5052_v4, %v1257_v25  ;;  %4427 = vmatprep.mubr.f32.mxu1 %v1566_v22  ;;  %v1569_v29 = vmax.f32 %v1263_v24, 0.0 }
 0x18d   : > { %v4211_v27 = vpop.f32.mrf.mxu0  ;;  %4428 = vmatmul.mubr.f32.gmra.mxu1 %v1567_v23  ;;  %v5215_v23 = vld [vmem:[%s6175_s4] ss:$0 sm:$0xff] }
 0x18e   : > { %v1568_v28 = vmax.f32 %v1258_v26, 0.0  ;;  %v1273_v30 = vadd.f32 %v4211_v27, %v5052_v4 }
 0x18f   : > { %v1267_v31 = vpop.f32.mrf.mxu0 }
 0x190   : > { %v1268_v32 = vadd.f32 %v5052_v4, %v1267_v31  ;;  %4430 = vmatprep.mubr.f32.mxu1 %v1568_v28  ;;  %v1571_v35 = vmax.f32 %v1273_v30, 0.0 }
 0x191   : > { %v4214_v33 = vpop.f32.mrf.mxu0  ;;  %4431 = vmatmul.mubr.f32.gmra.mxu1 %v1569_v29 }
 0x192   : > { %v1570_v34 = vmax.f32 %v1268_v32, 0.0  ;;  %v1283_v36 = vadd.f32 %v4214_v33, %v5052_v4 }
 0x193   : > { %v1277_v37 = vpop.f32.mrf.mxu0 }
 0x194   : > { %v1278_v38 = vadd.f32 %v5052_v4, %v1277_v37  ;;  %4433 = vmatprep.mubr.f32.mxu1 %v1570_v34  ;;  %v1573_v41 = vmax.f32 %v1283_v36, 0.0 }
 0x195   : > { %v4217_v39 = vpop.f32.mrf.mxu0  ;;  %4434 = vmatmul.mubr.f32.gmra.mxu1 %v1571_v35 }
 0x196   : > { %v1572_v40 = vmax.f32 %v1278_v38, 0.0  ;;  %v1293_v42 = vadd.f32 %v4217_v39, %v5052_v4 }
 0x197   : > { %v1287_v43 = vpop.f32.mrf.mxu0 }
 0x198   : > { %v1288_v44 = vadd.f32 %v5052_v4, %v1287_v43  ;;  %4436 = vmatprep.mubr.f32.mxu1 %v1572_v40  ;;  %v1575_v47 = vmax.f32 %v1293_v42, 0.0 }
 0x199   : > { %v4220_v45 = vpop.f32.mrf.mxu0  ;;  %4437 = vmatmul.mubr.f32.gmra.mxu1 %v1573_v41 }
 0x19a   : > { %v1574_v46 = vmax.f32 %v1288_v44, 0.0  ;;  %v1303_v61 = vadd.f32 %v4220_v45, %v5052_v4 }
 0x19b   : > { %v1297_v48 = vpop.f32.mrf.mxu0 }
 0x19c   : > { %v1298_v49 = vadd.f32 %v5052_v4, %v1297_v48  ;;  %4439 = vmatprep.mubr.f32.mxu1 %v1574_v46  ;;  %v1577_v59 = vmax.f32 %v1303_v61, 0.0 }
 0x19d   : > { %v4223_v50 = vpop.f32.mrf.mxu0  ;;  %4440 = vmatmul.mubr.f32.gmra.mxu1 %v1575_v47 }
 0x19e   : > { %v1576_v51 = vmax.f32 %v1298_v49, 0.0  ;;  %v1313_v52 = vadd.f32 %v4223_v50, %v5052_v4 }
 0x19f   : > { %v1307_v53 = vpop.f32.mrf.mxu0 }
 0x1a0   : > { %v1308_v54 = vadd.f32 %v5052_v4, %v1307_v53  ;;  %4442 = vmatprep.mubr.f32.mxu1 %v1576_v51  ;;  %v1579_v56 = vmax.f32 %v1313_v52, 0.0 }
 0x1a1   : > { %v4226_v55 = vpop.f32.mrf.mxu0  ;;  %4443 = vmatmul.mubr.f32.gmra.mxu1 %v1577_v59 }
 0x1a2   : > { %v1578_v1 = vmax.f32 %v1308_v54, 0.0  ;;  %v1323_v57 = vadd.f32 %v4226_v55, %v5052_v4 }
 0x1a3   : > { %v1317_v58 = vpop.f32.mrf.mxu0 }
 0x1a4   : > { %v1318_v60 = vadd.f32 %v5052_v4, %v1317_v58  ;;  %4445 = vmatprep.mubr.f32.mxu1 %v1578_v1  ;;  %v1581_v63 = vmax.f32 %v1323_v57, 0.0 }
 0x1a5   : > { %v4229_v62 = vpop.f32.mrf.mxu0  ;;  %4446 = vmatmul.mubr.f32.gmra.mxu1 %v1579_v56 }
 0x1a6   : > { %v1580_v0 = vmax.f32 %v1318_v60, 0.0  ;;  %v1333_v2 = vadd.f32 %v4229_v62, %v5052_v4 }
 0x1a7   : > { %v1327_v3 = vpop.f32.mrf.mxu0 }
 0x1a8   : > { %v1328_v5 = vadd.f32 %v5052_v4, %v1327_v3  ;;  %4448 = vmatprep.mubr.f32.mxu1 %v1580_v0  ;;  %v1583_v8 = vmax.f32 %v1333_v2, 0.0 }
 0x1a9   : > { %v4232_v6 = vpop.f32.mrf.mxu0  ;;  %4449 = vmatmul.mubr.f32.gmra.mxu1 %v1581_v63 }
 0x1aa   : > { %v1582_v7 = vmax.f32 %v1328_v5, 0.0  ;;  %v1343_v9 = vadd.f32 %v4232_v6, %v5052_v4 }
 0x1ab   : > { %v1337_v10 = vpop.f32.mrf.mxu0 }
 0x1ac   : > { %v1338_v11 = vadd.f32 %v5052_v4, %v1337_v10  ;;  %4451 = vmatprep.mubr.f32.mxu1 %v1582_v7  ;;  %v1585_v14 = vmax.f32 %v1343_v9, 0.0 }
 0x1ad   : > { %v4235_v12 = vpop.f32.mrf.mxu0  ;;  %4452 = vmatmul.mubr.f32.gmra.mxu1 %v1583_v8 }
 0x1ae   : > { %v1584_v13 = vmax.f32 %v1338_v11, 0.0  ;;  %v1353_v15 = vadd.f32 %v4235_v12, %v5052_v4 }
 0x1af   : > { %v1347_v16 = vpop.f32.mrf.mxu0 }
 0x1b0   : > { %v1348_v17 = vadd.f32 %v5052_v4, %v1347_v16  ;;  %4454 = vmatprep.mubr.f32.mxu1 %v1584_v13  ;;  %v1587_v20 = vmax.f32 %v1353_v15, 0.0  ;;  %v5233_v13 = vld [vmem:[%s6173_s2] ss:$0 sm:$0xff] }
 0x1b1   : > { %v4238_v18 = vpop.f32.mrf.mxu0  ;;  %4455 = vmatmul.mubr.f32.gmra.mxu1 %v1585_v14 }
 0x1b2   : > { %v1586_v19 = vmax.f32 %v1348_v17, 0.0  ;;  %v1363_v21 = vadd.f32 %v4238_v18, %v5052_v4 }
 0x1b3   : > { %v1357_v22 = vpop.f32.mrf.mxu0 }
 0x1b4   : > { %v1358_v24 = vadd.f32 %v5052_v4, %v1357_v22  ;;  %4457 = vmatprep.mubr.f32.mxu1 %v1586_v19  ;;  %v1589_v29 = vmax.f32 %v1363_v21, 0.0 }
 0x1b5   : > { %v4241_v25 = vpop.f32.mrf.mxu0  ;;  %v4315_v26 = vpop.f32.mrf.mxu1  ;;  %4458 = vmatmul.mubr.f32.gmra.mxu1 %v1587_v20 }
 0x1b6   : > { %v1588_v27 = vmax.f32 %v1358_v24, 0.0  ;;  %v1729_v28 = vadd.f32 %v4315_v26, %v5215_v23  ;;  %v1373_v30 = vadd.f32 %v4241_v25, %v5052_v4 }
 0x1b7   : > { %v1367_v31 = vpop.f32.mrf.mxu0  ;;  %v1723_v32 = vpop.f32.mrf.mxu1 }
 0x1b8   : > { %v2347_v33 = vmax.f32 %v1729_v28, 0.0  ;;  %v1368_v34 = vadd.f32 %v5052_v4, %v1367_v31  ;;  %v1724_v35 = vadd.f32 %v5215_v23, %v1723_v32  ;;  %4460 = vmatprep.mubr.f32.mxu1 %v1588_v27  ;;  %v1591_v41 = vmax.f32 %v1373_v30, 0.0 }
 0x1b9   : > { %v4244_v36 = vpop.f32.mrf.mxu0  ;;  %v4318_v37 = vpop.f32.mrf.mxu1  ;;  %4461 = vmatmul.mubr.f32.gmra.mxu1 %v1589_v29 }
 0x1ba   : > { %v2500_v38 = vrot.slane %v2347_v33, 4  ;;  %v1590_v39 = vmax.f32 %v1368_v34, 0.0  ;;  %v2346_v40 = vmax.f32 %v1724_v35, 0.0  ;;  %v1383_v42 = vadd.f32 %v4244_v36, %v5052_v4 }
 0x1bb   : > { %v1739_v43 = vadd.f32 %v4318_v37, %v5215_v23  ;;  %v1377_v44 = vpop.f32.mrf.mxu0  ;;  %v1733_v45 = vpop.f32.mrf.mxu1 }
 0x1bc   : > { %v2501_v46 = vmax.f32 %v2347_v33, %v2500_v38  ;;  %v2494_v47 = vrot.slane %v2346_v40, 4  ;;  %v1378_v61 = vadd.f32 %v5052_v4, %v1377_v44  ;;  %4463 = vmatprep.mubr.f32.mxu1 %v1590_v39  ;;  %v1734_v49 = vadd.f32 %v5215_v23, %v1733_v45 }
 0x1bd   : > { %v2349_v48 = vmax.f32 %v1739_v43, 0.0  ;;  %v4247_v50 = vpop.f32.mrf.mxu0  ;;  %v4321_v51 = vpop.f32.mrf.mxu1  ;;  %4464 = vmatmul.mubr.f32.gmra.mxu1 %v1591_v41  ;;  %v1593_v55 = vmax.f32 %v1383_v42, 0.0 }
 0x1be   : > { %v2502_v59 = vrot.slane %v2501_v46, 2  ;;  %v2495_v52 = vmax.f32 %v2346_v40, %v2494_v47  ;;  %v1592_v53 = vmax.f32 %v1378_v61, 0.0  ;;  %v1393_v54 = vadd.f32 %v4247_v50, %v5052_v4 }
 0x1bf   : > { %v2512_v1 = vrot.slane %v2349_v48, 4  ;;  %v2348_v56 = vmax.f32 %v1734_v49, 0.0  ;;  %v1749_v57 = vadd.f32 %v4321_v51, %v5215_v23  ;;  %v1387_v58 = vpop.f32.mrf.mxu0  ;;  %v1743_v60 = vpop.f32.mrf.mxu1 }
 0x1c0   : > { %v2503_v62 = vmax.f32 %v2501_v46, %v2502_v59  ;;  %v2496_v0 = vrot.slane %v2495_v52, 2  ;;  %v1595_v63 = vmax.f32 %v1393_v54, 0.0  ;;  %v1388_v2 = vadd.f32 %v5052_v4, %v1387_v58  ;;  %4466 = vmatprep.mubr.f32.mxu1 %v1592_v53 }
 0x1c1   : > { %v2513_v3 = vmax.f32 %v2349_v48, %v2512_v1  ;;  %v2506_v5 = vrot.slane %v2348_v56, 4  ;;  %v2351_v6 = vmax.f32 %v1749_v57, 0.0  ;;  %v1744_v7 = vadd.f32 %v5215_v23, %v1743_v60  ;;  %v4250_v8 = vpop.f32.mrf.mxu0  ;;  %v4324_v9 = vpop.f32.mrf.mxu1  ;;  %4467 = vmatmul.mubr.f32.gmra.mxu1 %v1593_v55 }
 0x1c2   : > { %v2504_v10 = vrot.slane %v2503_v62, 1  ;;  %v2497_v11 = vmax.f32 %v2495_v52, %v2496_v0  ;;  %v1594_v12 = vmax.f32 %v1388_v2, 0.0  ;;  %v1403_v14 = vadd.f32 %v5233_v13, %v4250_v8 }
 0x1c3   : > { %v2514_v4 = vrot.slane %v2513_v3, 2  ;;  %v2507_v15 = vmax.f32 %v2348_v56, %v2506_v5  ;;  %v2524_v16 = vrot.slane %v2351_v6, 4  ;;  %v2350_v17 = vmax.f32 %v1744_v7, 0.0  ;;  %v1397_v18 = vpop.f32.mrf.mxu0  ;;  %v1753_v19 = vpop.f32.mrf.mxu1 }
 0x1c4   : > { %v5236_v20 = vmax.f32 %v2503_v62, %v2504_v10  ;;  %v2498_v21 = vrot.slane %v2497_v11, 1  ;;  %v1759_v22 = vadd.f32 %v4324_v9, %v5215_v23  ;;  %4469 = vmatprep.mubr.f32.mxu1 %v1594_v12  ;;  %v1597_v27 = vmax.f32 %v1403_v14, 0.0 }
 0x1c5   : > { %v2508_v24 = vrot.slane %v2507_v15, 2  ;;  %v2525_v25 = vmax.f32 %v2351_v6, %v2524_v16  ;;  %v2518_v26 = vrot.slane %v2350_v17, 4  ;;  %v4253_v28 = vpop.f32.mrf.mxu0  ;;  %v4327_v29 = vpop.f32.mrf.mxu1  ;;  %4470 = vmatmul.mubr.f32.gmra.mxu1 %v1595_v63  ;;  %v5239_v30 = vmax.f32 %v2513_v3, %v2514_v4 }
 0x1c6   : > { %v2353_v31 = vmax.f32 %v1759_v22, 0.0  ;;  %v1398_v32 = vadd.f32 %v5233_v13, %v1397_v18  ;;  %v1754_v33 = vadd.f32 %v5215_v23, %v1753_v19  ;;  %v1413_v37 = vadd.f32 %v5233_v13, %v4253_v28 }
 0x1c7   : > { %v5243_v34 = vmax.f32 %v2507_v15, %v2508_v24  ;;  %v2526_v35 = vrot.slane %v2525_v25, 2  ;;  %v2519_v36 = vmax.f32 %v2350_v17, %v2518_v26  ;;  %v1407_v38 = vpop.f32.mrf.mxu0  ;;  %v1763_v39 = vpop.f32.mrf.mxu1  ;;  %v1769_v43 = vadd.f32 %v4327_v29, %v5215_v23 }
 0x1c8   : > { %v2536_v40 = vrot.slane %v2353_v31, 4  ;;  %v1596_v41 = vmax.f32 %v1398_v32, 0.0  ;;  %v2352_v42 = vmax.f32 %v1754_v33, 0.0  ;;  %v5247_v44 = vmax.f32 %v2497_v11, %v2498_v21 }
 0x1c9   : > { %v2510_v45 = vrot.slane %v5243_v34, 1  ;;  %v2527_v46 = vmax.f32 %v2525_v25, %v2526_v35  ;;  %v2520_v47 = vrot.slane %v2519_v36, 2  ;;  %v4256_v61 = vpop.f32.mrf.mxu0  ;;  %v4330_v48 = vpop.f32.mrf.mxu1  ;;  %v2355_v51 = vmax.f32 %v1769_v43, 0.0 }
 0x1ca   : > { %v2537_v49 = vmax.f32 %v2353_v31, %v2536_v40  ;;  %v2530_v50 = vrot.slane %v2352_v42, 4  ;;  %v1408_v59 = vadd.f32 %v5233_v13, %v1407_v38  ;;  %4472 = vmatprep.mubr.f32.mxu1 %v1596_v41  ;;  %v1599_v54 = vmax.f32 %v1413_v37, 0.0 }
 0x1cb   : > { %v2528_v52 = vrot.slane %v2527_v46, 1  ;;  %v2521_v53 = vmax.f32 %v2519_v36, %v2520_v47  ;;  %v1764_v55 = vadd.f32 %v5215_v23, %v1763_v39  ;;  %4473 = vmatmul.mubr.f32.gmra.mxu1 %v1597_v27  ;;  %v1417_v1 = vpop.f32.mrf.mxu0  ;;  %v1773_v56 = vpop.f32.mrf.mxu1  ;;  %v2548_v60 = vrot.slane %v2355_v51, 4 }
 0x1cc   : > { %v2538_v57 = vrot.slane %v2537_v49, 2  ;;  %v2531_v58 = vmax.f32 %v2352_v42, %v2530_v50  ;;  %v1598_v62 = vmax.f32 %v1408_v59, 0.0  ;;  %v1423_v3 = vadd.f32 %v5233_v13, %v4256_v61 }
 0x1cd   : > { %v2529_v0 = vmax.f32 %v2527_v46, %v2528_v52  ;;  %v2522_v63 = vrot.slane %v2521_v53, 1  ;;  %v2354_v2 = vmax.f32 %v1764_v55, 0.0  ;;  %v4259_v5 = vpop.f32.mrf.mxu0  ;;  %v4333_v6 = vpop.f32.mrf.mxu1  ;;  %v2549_v9 = vmax.f32 %v2355_v51, %v2548_v60 }
 0x1ce   : > { %v2539_v7 = vmax.f32 %v2537_v49, %v2538_v57  ;;  %v2532_v8 = vrot.slane %v2531_v58, 2  ;;  %v1779_v10 = vadd.f32 %v4330_v48, %v5215_v23  ;;  %4475 = vmatprep.mubr.f32.mxu1 %v1598_v62  ;;  %v1418_v14 = vadd.f32 %v5233_v13, %v1417_v1 }
 0x1cf   : > { %v2523_v11 = vmax.f32 %v2521_v53, %v2522_v63  ;;  %v2542_v12 = vrot.slane %v2354_v2, 4  ;;  %v1774_v4 = vadd.f32 %v5215_v23, %v1773_v56  ;;  %4476 = vmatmul.mubr.f32.gmra.mxu1 %v1599_v54  ;;  %v1427_v15 = vpop.f32.mrf.mxu0  ;;  %v1783_v16 = vpop.f32.mrf.mxu1  ;;  %v2550_v19 = vrot.slane %v2549_v9, 2 }
 0x1d0   : > { %v2540_v17 = vrot.slane %v2539_v7, 1  ;;  %v2533_v18 = vmax.f32 %v2531_v58, %v2532_v8  ;;  %v2357_v21 = vmax.f32 %v1779_v10, 0.0  ;;  %v1601_v24 = vmax.f32 %v1423_v3, 0.0 }
 0x1d1   : > { %v2543_v22 = vmax.f32 %v2354_v2, %v2542_v12  ;;  %v1600_v25 = vmax.f32 %v1418_v14, 0.0  ;;  %v2356_v26 = vmax.f32 %v1774_v4, 0.0  ;;  %v4262_v27 = vpop.f32.mrf.mxu0  ;;  %v4336_v28 = vpop.f32.mrf.mxu1  ;;  %v5257_v29 = vsel %vm3366_vm1, %v2529_v0, %v2523_v11 }
 0x1d2   : > { %v2534_v31 = vrot.slane %v2533_v18, 1  ;;  %v2551_v32 = vmax.f32 %v2549_v9, %v2550_v19  ;;  %v2560_v33 = vrot.slane %v2357_v21, 4  ;;  %v1433_v37 = vadd.f32 %v5233_v13, %v4259_v5 }
 0x1d3   : > { %v2544_v35 = vrot.slane %v2543_v22, 2  ;;  %v2554_v36 = vrot.slane %v2356_v26, 4  ;;  %v1789_v38 = vadd.f32 %v4333_v6, %v5215_v23  ;;  %4478 = vmatprep.mubr.f32.mxu1 %v1600_v25  ;;  %v1437_v39 = vpop.f32.mrf.mxu0  ;;  %v1793_v40 = vpop.f32.mrf.mxu1  ;;  %v5261_v41 = vmax.f32 %v2539_v7, %v2540_v17 }
 0x1d4   : > { %v2552_v42 = vrot.slane %v2551_v32, 1  ;;  %v2561_v43 = vmax.f32 %v2357_v21, %v2560_v33  ;;  %v1428_v46 = vadd.f32 %v5233_v13, %v1427_v15  ;;  %4479 = vmatmul.mubr.f32.gmra.mxu1 %v1601_v24  ;;  %v5264_v47 = vmax.f32 %v2533_v18, %v2534_v31 }
 0x1d5   : > { %v2545_v61 = vmax.f32 %v2543_v22, %v2544_v35  ;;  %v2555_v48 = vmax.f32 %v2356_v26, %v2554_v36  ;;  %v2359_v49 = vmax.f32 %v1789_v38, 0.0  ;;  %v4265_v50 = vpop.f32.mrf.mxu0  ;;  %v4339_v51 = vpop.f32.mrf.mxu1  ;;  %v1603_v52 = vmax.f32 %v1433_v37, 0.0 }
 0x1d6   : > { %v2562_v59 = vrot.slane %v2561_v43, 2  ;;  %v1602_v53 = vmax.f32 %v1428_v46, 0.0  ;;  %v1784_v54 = vadd.f32 %v5215_v23, %v1783_v16  ;;  %v1443_v57 = vadd.f32 %v5233_v13, %v4262_v27 }
 0x1d7   : > { %v2546_v55 = vrot.slane %v2545_v61, 1  ;;  %v2556_v1 = vrot.slane %v2555_v48, 2  ;;  %v2572_v56 = vrot.slane %v2359_v49, 4  ;;  %v1447_v58 = vpop.f32.mrf.mxu0  ;;  %v1803_v60 = vpop.f32.mrf.mxu1  ;;  %v5268_v62 = vmax.f32 %v2551_v32, %v2552_v42 }
 0x1d8   : > { %v2358_v0 = vmax.f32 %v1784_v54, 0.0  ;;  %v1799_v63 = vadd.f32 %v4336_v28, %v5215_v23  ;;  %v1438_v2 = vadd.f32 %v5233_v13, %v1437_v39  ;;  %4481 = vmatprep.mubr.f32.mxu1 %v1602_v53  ;;  %v5274_v5 = vmax.f32 %v2561_v43, %v2562_v59 }
 0x1d9   : > { %v5272_v3 = vmax.f32 %v2545_v61, %v2546_v55  ;;  %v5276_v6 = vmax.f32 %v2555_v48, %v2556_v1  ;;  %v2573_v7 = vmax.f32 %v2359_v49, %v2572_v56  ;;  %4482 = vmatmul.mubr.f32.gmra.mxu1 %v1603_v52  ;;  %v4268_v8 = vpop.f32.mrf.mxu0  ;;  %v4342_v9 = vpop.f32.mrf.mxu1  ;;  %v1794_v14 = vadd.f32 %v5215_v23, %v1793_v40 }
 0x1da   : > { %v2566_v10 = vrot.slane %v2358_v0, 4  ;;  %v2361_v11 = vmax.f32 %v1799_v63, 0.0  ;;  %v1604_v12 = vmax.f32 %v1438_v2, 0.0  ;;  %v1605_v15 = vmax.f32 %v1443_v57, 0.0 }
 0x1db   : > { %v2574_v4 = vrot.slane %v2573_v7, 2  ;;  %v1453_v16 = vadd.f32 %v5233_v13, %v4265_v50  ;;  %v1809_v17 = vadd.f32 %v4339_v51, %v5215_v23  ;;  %v1457_v18 = vpop.f32.mrf.mxu0  ;;  %v1813_v19 = vpop.f32.mrf.mxu1  ;;  %v2360_v24 = vmax.f32 %v1794_v14, 0.0 }
 0x1dc   : > { %v2567_v21 = vmax.f32 %v2358_v0, %v2566_v10  ;;  %v2584_v22 = vrot.slane %v2361_v11, 4  ;;  %v1448_v25 = vadd.f32 %v5233_v13, %v1447_v58  ;;  %4484 = vmatprep.mubr.f32.mxu1 %v1604_v12  ;;  %v1804_v31 = vadd.f32 %v5215_v23, %v1803_v60 }
 0x1dd   : > { %v2575_v27 = vmax.f32 %v2573_v7, %v2574_v4  ;;  %v2363_v28 = vmax.f32 %v1809_v17, 0.0  ;;  %4485 = vmatmul.mubr.f32.gmra.mxu1 %v1605_v15  ;;  %v4271_v32 = vpop.f32.mrf.mxu0  ;;  %v4345_v33 = vpop.f32.mrf.mxu1  ;;  %v2578_v37 = vrot.slane %v2360_v24, 4  ;;  %v1607_v40 = vmax.f32 %v1453_v16, 0.0 }
 0x1de   : > { %v2568_v35 = vrot.slane %v2567_v21, 2  ;;  %v2585_v36 = vmax.f32 %v2361_v11, %v2584_v22  ;;  %v1606_v38 = vmax.f32 %v1448_v25, 0.0  ;;  %v2362_v43 = vmax.f32 %v1804_v31, 0.0 }
 0x1df   : > { %v2576_v39 = vrot.slane %v2575_v27, 1  ;;  %v2596_v42 = vrot.slane %v2363_v28, 4  ;;  %v1467_v46 = vpop.f32.mrf.mxu0  ;;  %v1823_v61 = vpop.f32.mrf.mxu1  ;;  %v2579_v50 = vmax.f32 %v2360_v24, %v2578_v37  ;;  %v1819_v51 = vadd.f32 %v4342_v9, %v5215_v23 }
 0x1e0   : > { %v2569_v48 = vmax.f32 %v2567_v21, %v2568_v35  ;;  %v2586_v49 = vrot.slane %v2585_v36, 2  ;;  %4487 = vmatprep.mubr.f32.mxu1 %v1606_v38  ;;  %v2590_v53 = vrot.slane %v2362_v43, 4  ;;  %v1463_v54 = vadd.f32 %v5233_v13, %v4268_v8 }
 0x1e1   : > { %v2577_v59 = vmax.f32 %v2575_v27, %v2576_v39  ;;  %v2597_v52 = vmax.f32 %v2363_v28, %v2596_v42  ;;  %4488 = vmatmul.mubr.f32.gmra.mxu1 %v1607_v40  ;;  %v4274_v55 = vpop.f32.mrf.mxu0  ;;  %v4348_v1 = vpop.f32.mrf.mxu1  ;;  %v2580_v58 = vrot.slane %v2579_v50, 2  ;;  %v2365_v60 = vmax.f32 %v1819_v51, 0.0 }
 0x1e2   : > { %v2570_v56 = vrot.slane %v2569_v48, 1  ;;  %v2587_v57 = vmax.f32 %v2585_v36, %v2586_v49  ;;  %v2591_v63 = vmax.f32 %v2362_v43, %v2590_v53  ;;  %v1458_v2 = vadd.f32 %v5233_v13, %v1457_v18 }
 0x1e3   : > { %v2598_v0 = vrot.slane %v2597_v52, 2  ;;  %v1814_v7 = vadd.f32 %v5215_v23, %v1813_v19  ;;  %v1833_v9 = vpop.f32.mrf.mxu1  ;;  %v2581_v12 = vmax.f32 %v2579_v50, %v2580_v58  ;;  %v2608_v14 = vrot.slane %v2365_v60, 4  ;;  %v1477_v17 = vpop.f32.mrf.mxu0 }
 0x1e4   : > { %v2571_v10 = vmax.f32 %v2569_v48, %v2570_v56  ;;  %v2588_v11 = vrot.slane %v2587_v57, 1  ;;  %v2592_v8 = vrot.slane %v2591_v63, 2  ;;  %v1608_v15 = vmax.f32 %v1458_v2, 0.0 }
 0x1e5   : > { %v2599_v4 = vmax.f32 %v2597_v52, %v2598_v0  ;;  %v2364_v16 = vmax.f32 %v1814_v7, 0.0  ;;  %v4351_v21 = vpop.f32.mrf.mxu1  ;;  %v2582_v24 = vrot.slane %v2581_v12, 1  ;;  %v1609_v25 = vmax.f32 %v1463_v54, 0.0  ;;  %v4309_v49 = vpop.f32.mrf.mxu0 }
 0x1e6   : > { %v3387_v22 = vsel %vm3366_vm1, %v2577_v59, %v2571_v10  ;;  %v2609_v27 = vmax.f32 %v2365_v60, %v2608_v14  ;;  %v2593_v18 = vmax.f32 %v2591_v63, %v2592_v8  ;;  %v1473_v19 = vadd.f32 %v5233_v13, %v4271_v32  ;;  %4490 = vmatprep.mubr.f32.mxu1 %v1608_v15 }
 0x1e7   : > { %v2600_v28 = vrot.slane %v2599_v4, 1  ;;  %v2602_v31 = vrot.slane %v2364_v16, 4  ;;  %v1843_v35 = vpop.f32.mrf.mxu1  ;;  %v2583_v36 = vmax.f32 %v2581_v12, %v2582_v24  ;;  %v1829_v38 = vadd.f32 %v4345_v33, %v5215_v23  ;;  %4491 = vmatmul.mubr.f32.gmra.mxu1 %v1609_v25 }
 0x1e8   : > { %v2610_v37 = vrot.slane %v2609_v27, 2  ;;  %v1468_v39 = vadd.f32 %v5233_v13, %v1467_v46  ;;  %v5292_v40 = vmax.f32 %v2587_v57, %v2588_v11  ;;  %v2594_v43 = vrot.slane %v2593_v18, 1 }
 0x1e9   : > { %v5294_v42 = vmax.f32 %v2599_v4, %v2600_v28  ;;  %v2603_v48 = vmax.f32 %v2364_v16, %v2602_v31  ;;  %v5296_v50 = vpop.f32.mrf.mxu1  ;;  %v5299_v32 = vsel %vm3368_vm2, %v2583_v36, %v3387_v22  ;;  %v1611_v51 = vmax.f32 %v1473_v19, 0.0 }
 0x1ea   : > { %v2367_v59 = vmax.f32 %v1829_v38, 0.0  ;;  %v1610_v52 = vmax.f32 %v1468_v39, 0.0  ;;  %v5301_v53 = vmax.f32 %v2609_v27, %v2610_v37  ;;  %v1824_v46 = vadd.f32 %v5215_v23, %v1823_v61  ;;  %v1703_v61 = vpop.f32.mrf.mxu0 }
 0x1eb   : > { %v2604_v33 = vrot.slane %v2603_v48, 2  ;;  %v1483_v54 = vadd.f32 %v5233_v13, %v4274_v55  ;;  %v5305_v56 = vpop.f32.mrf.mxu1  ;;  %v1839_v58 = vadd.f32 %v4348_v1, %v5215_v23  ;;  %v1478_v60 = vadd.f32 %v5233_v13, %v1477_v17 }
 0x1ec   : > { %v2620_v57 = vrot.slane %v2367_v59, 4  ;;  %v1834_v0 = vadd.f32 %v5215_v23, %v1833_v9  ;;  %4493 = vmatprep.mubr.f32.mxu1 %v1610_v52  ;;  %v5310_v63 = vmax.f32 %v2593_v18, %v2594_v43  ;;  %v2366_v7 = vmax.f32 %v1824_v46, 0.0 }
 0x1ed   : > { %v5312_v2 = vmax.f32 %v2603_v48, %v2604_v33  ;;  %v1709_v10 = vadd.f32 %v4309_v49, %v5215_v23  ;;  %4494 = vmatmul.mubr.f32.gmra.mxu1 %v1611_v51  ;;  %v5315_v55 = vpop.f32.mrf.mxu1  ;;  %v2369_v12 = vmax.f32 %v1839_v58, 0.0  ;;  %v1612_v14 = vmax.f32 %v1478_v60, 0.0  ;;  %v4312_v60 = vpop.f32.mrf.mxu0 }
 0x1ee   : > { %v2621_v11 = vmax.f32 %v2367_v59, %v2620_v57  ;;  %v2368_v1 = vmax.f32 %v1834_v0, 0.0  ;;  %v2614_v4 = vrot.slane %v2366_v7, 4  ;;  %v1613_v13 = vmax.f32 %v1483_v54, 0.0 }
 0x1ef   : > { %v2343_v8 = vmax.f32 %v1709_v10, 0.0  ;;  %v1849_v9 = vadd.f32 %v4351_v21, %v5215_v23  ;;  %v5318_v15 = vpop.f32.mrf.mxu1  ;;  %v2632_v17 = vrot.slane %v2369_v12, 4  ;;  %v1704_v24 = vadd.f32 %v5215_v23, %v1703_v61  ;;  %4496 = vmatprep.mubr.f32.mxu1 %v1612_v14 }
 0x1f0   : > { %v2622_v16 = vrot.slane %v2621_v11, 2  ;;  %v2626_v22 = vrot.slane %v2368_v1, 4  ;;  %v2606_v25 = vrot.slane %v5312_v2, 1  ;;  %v2615_v27 = vmax.f32 %v2366_v7, %v2614_v4 }
 0x1f1   : > { %v2476_v28 = vrot.slane %v2343_v8, 4  ;;  %v2371_v18 = vmax.f32 %v1849_v9, 0.0  ;;  %4497 = vmatmul.mubr.f32.gmra.mxu1 %v1613_v13  ;;  %v5322_v31 = vpop.f32.mrf.mxu1  ;;  %v2633_v36 = vmax.f32 %v2369_v12, %v2632_v17  ;;  %v2342_v21 = vmax.f32 %v1704_v24, 0.0 }
 0x1f2   : > { %v2623_v19 = vmax.f32 %v2621_v11, %v2622_v16  ;;  %v2627_v37 = vmax.f32 %v2368_v1, %v2626_v22  ;;  %v2616_v38 = vrot.slane %v2615_v27, 2  ;;  %v1844_v48 = vadd.f32 %v5215_v23, %v1843_v35 }
 0x1f3   : > { %v2477_v39 = vmax.f32 %v2343_v8, %v2476_v28  ;;  %v2644_v43 = vrot.slane %v2371_v18, 4  ;;  %v5325_v49 = vpop.f32.mrf.mxu1  ;;  %v2634_v59 = vrot.slane %v2633_v36, 2  ;;  %v2470_v33 = vrot.slane %v2342_v21, 4 }
 0x1f4   : > { %v2624_v51 = vrot.slane %v2623_v19, 1  ;;  %v2628_v52 = vrot.slane %v2627_v37, 2  ;;  %v2617_v46 = vmax.f32 %v2615_v27, %v2616_v38  ;;  %v2370_v58 = vmax.f32 %v1844_v48, 0.0 }
 0x1f5   : > { %v2478_v54 = vrot.slane %v2477_v39, 2  ;;  %v2645_v57 = vmax.f32 %v2371_v18, %v2644_v43  ;;  %v5327_v0 = vpop.f32.mrf.mxu1  ;;  %v2635_v10 = vmax.f32 %v2633_v36, %v2634_v59  ;;  %v2471_v11 = vmax.f32 %v2342_v21, %v2470_v33  ;;  %v1713_v21 = vpop.f32.mrf.mxu0 }
 0x1f6   : > { %v2625_v7 = vmax.f32 %v2623_v19, %v2624_v51  ;;  %v2629_v61 = vmax.f32 %v2627_v37, %v2628_v52  ;;  %v2618_v12 = vrot.slane %v2617_v46, 1  ;;  %v2638_v1 = vrot.slane %v2370_v58, 4 }
 0x1f7   : > { %v2479_v14 = vmax.f32 %v2477_v39, %v2478_v54  ;;  %v2646_v35 = vrot.slane %v2645_v57, 2  ;;  %v5329_v4 = vpop.f32.mrf.mxu1  ;;  %v2636_v13 = vrot.slane %v2635_v10, 1  ;;  %v2472_v9 = vrot.slane %v2471_v11, 2 }
 0x1f8   : > { %v2630_v8 = vrot.slane %v2629_v61, 1  ;;  %v1719_v16 = vadd.f32 %v4312_v60, %v5215_v23  ;;  %v2619_v17 = vmax.f32 %v2617_v46, %v2618_v12  ;;  %v2639_v27 = vmax.f32 %v2370_v58, %v2638_v1 }
 0x1f9   : > { %v2480_v22 = vrot.slane %v2479_v14, 1  ;;  %v2647_v24 = vmax.f32 %v2645_v57, %v2646_v35  ;;  %v5332_v28 = vpop.f32.mrf.mxu1  ;;  %v5335_v18 = vmax.f32 %v5312_v2, %v2606_v25  ;;  %v2473_v36 = vmax.f32 %v2471_v11, %v2472_v9 }
 0x1fa   : > { %v2631_v19 = vmax.f32 %v2629_v61, %v2630_v8  ;;  %v2345_v37 = vmax.f32 %v1719_v16, 0.0  ;;  %v3394_v38 = vsel %vm3366_vm1, %v2625_v7, %v2619_v17  ;;  %v5338_v39 = vmax.f32 %v2635_v10, %v2636_v13 }
 0x1fb   : > { %v2648_v43 = vrot.slane %v2647_v24, 1  ;;  %v2640_v48 = vrot.slane %v2639_v27, 2  ;;  %v5340_v51 = vpop.f32.mrf.mxu1  ;;  %v2481_v59 = vmax.f32 %v2479_v14, %v2480_v22  ;;  %v2474_v52 = vrot.slane %v2473_v36, 1 }
 0x1fc   : > { %v2488_v33 = vrot.slane %v2345_v37, 4  ;;  %v1859_v46 = vadd.f32 %v5296_v50, %v5215_v23  ;;  %v5345_v2 = vsel %vm3368_vm2, %v2631_v19, %v3394_v38  ;;  %v1714_v54 = vadd.f32 %v5215_v23, %v1713_v21 }
 0x1fd   : > { %v2641_v25 = vmax.f32 %v2639_v27, %v2640_v48  ;;  %v1854_v57 = vadd.f32 %v5215_v23, %v5305_v56  ;;  %v5350_v58 = vpop.f32.mrf.mxu1  ;;  %v2475_v60 = vmax.f32 %v2473_v36, %v2474_v52  ;;  %v1869_v61 = vadd.f32 %v5315_v55, %v5215_v23 }
 0x1fe   : > { %v2489_v7 = vmax.f32 %v2345_v37, %v2488_v33  ;;  %v2373_v10 = vmax.f32 %v1859_v46, 0.0  ;;  %v5354_v11 = vmax.f32 %v2647_v24, %v2648_v43  ;;  %v2344_v50 = vmax.f32 %v1714_v54, 0.0 }
 0x1ff   : > { %v2372_v12 = vmax.f32 %v1854_v57, 0.0  ;;  %v1864_v14 = vadd.f32 %v5215_v23, %v5318_v15  ;;  %v5358_v35 = vpop.f32.mrf.mxu1  ;;  %v2642_v1 = vrot.slane %v2641_v25, 1  ;;  %v2375_v8 = vmax.f32 %v1869_v61, 0.0 }
 0x200   : > { %v2490_v13 = vrot.slane %v2489_v7, 2  ;;  %v2656_v56 = vrot.slane %v2373_v10, 4  ;;  %v5361_v9 = vsel %vm3366_vm1, %v2481_v59, %v2475_v60  ;;  %v2482_v16 = vrot.slane %v2344_v50, 4 }
 0x201   : > { %v2650_v17 = vrot.slane %v2372_v12, 4  ;;  %v2374_v22 = vmax.f32 %v1864_v14, 0.0  ;;  %v5363_v55 = vpop.f32.mrf.mxu1  ;;  %v2668_v19 = vrot.slane %v2375_v8, 4  ;;  %v1879_v15 = vadd.f32 %v5322_v31, %v5215_v23 }
 0x202   : > { %v2491_v24 = vmax.f32 %v2489_v7, %v2490_v13  ;;  %v2657_v27 = vmax.f32 %v2373_v10, %v2656_v56  ;;  %v2483_v36 = vmax.f32 %v2344_v50, %v2482_v16  ;;  %v1874_v38 = vadd.f32 %v5215_v23, %v5325_v49 }
 0x203   : > { %v2651_v37 = vmax.f32 %v2372_v12, %v2650_v17  ;;  %v2662_v21 = vrot.slane %v2374_v22, 4  ;;  %v5369_v43 = vpop.f32.mrf.mxu1  ;;  %v5371_v48 = vmax.f32 %v2641_v25, %v2642_v1  ;;  %v2669_v52 = vmax.f32 %v2375_v8, %v2668_v19 }
 0x204   : > { %v2492_v59 = vrot.slane %v2491_v24, 1  ;;  %v2377_v33 = vmax.f32 %v1879_v15, 0.0  ;;  %v2484_v46 = vrot.slane %v2483_v36, 2  ;;  %v2376_v60 = vmax.f32 %v1874_v38, 0.0 }
 0x205   : > { %v2652_v54 = vrot.slane %v2651_v37, 2  ;;  %v2663_v57 = vmax.f32 %v2374_v22, %v2662_v21  ;;  %v5373_v7 = vpop.f32.mrf.mxu1  ;;  %v2658_v10 = vrot.slane %v2657_v27, 2  ;;  %v2670_v61 = vrot.slane %v2669_v52, 2 }
 0x206   : > { %v5375_v31 = vmax.f32 %v2491_v24, %v2492_v59  ;;  %v2680_v50 = vrot.slane %v2377_v33, 4  ;;  %v2485_v12 = vmax.f32 %v2483_v36, %v2484_v46  ;;  %v2674_v13 = vrot.slane %v2376_v60, 4 }
 0x207   : > { %v2653_v49 = vmax.f32 %v2651_v37, %v2652_v54  ;;  %v2664_v14 = vrot.slane %v2663_v57, 2  ;;  %v5377_v25 = vpop.f32.mrf.mxu1  ;;  %v2671_v1 = vmax.f32 %v2669_v52, %v2670_v61  ;;  %v1889_v8 = vadd.f32 %v5327_v0, %v5215_v23 }
 0x208   : > { %v2681_v56 = vmax.f32 %v2377_v33, %v2680_v50  ;;  %v1884_v16 = vadd.f32 %v5215_v23, %v5329_v4  ;;  %v2486_v17 = vrot.slane %v2485_v12, 1  ;;  %v2675_v19 = vmax.f32 %v2376_v60, %v2674_v13 }
 0x209   : > { %v2654_v22 = vrot.slane %v2653_v49, 1  ;;  %v2665_v24 = vmax.f32 %v2663_v57, %v2664_v14  ;;  %v5383_v15 = vpop.f32.mrf.mxu1  ;;  %v2672_v36 = vrot.slane %v2671_v1, 1  ;;  %v2379_v21 = vmax.f32 %v1889_v8, 0.0 }
 0x20a   : > { %v2682_v37 = vrot.slane %v2681_v56, 2  ;;  %v2378_v38 = vmax.f32 %v1884_v16, 0.0  ;;  %v5385_v59 = vmax.f32 %v2657_v27, %v2658_v10  ;;  %v5387_v52 = vmax.f32 %v2485_v12, %v2486_v17 }
 0x20b   : > { %v2666_v33 = vrot.slane %v2665_v24, 1  ;;  %v2676_v46 = vrot.slane %v2675_v19, 2  ;;  %v5389_v0 = vpop.f32.mrf.mxu1  ;;  %v5391_v54 = vmax.f32 %v2653_v49, %v2654_v22  ;;  %v2692_v61 = vrot.slane %v2379_v21, 4 }
 0x20c   : > { %v2683_v4 = vmax.f32 %v2681_v56, %v2682_v37  ;;  %v2686_v57 = vrot.slane %v2378_v38, 4  ;;  %v1899_v14 = vadd.f32 %v5332_v28, %v5215_v23  ;;  %v1894_v27 = vadd.f32 %v5215_v23, %v5340_v51 }
 0x20d   : > { %v2667_v60 = vmax.f32 %v2665_v24, %v2666_v33  ;;  %v2677_v50 = vmax.f32 %v2675_v19, %v2676_v46  ;;  %v5397_v10 = vpop.f32.mrf.mxu1  ;;  %v2673_v12 = vmax.f32 %v2671_v1, %v2672_v36  ;;  %v2693_v13 = vmax.f32 %v2379_v21, %v2692_v61 }
 0x20e   : > { %v2687_v8 = vmax.f32 %v2378_v38, %v2686_v57  ;;  %v1909_v49 = vadd.f32 %v5350_v58, %v5215_v23  ;;  %v2684_v16 = vrot.slane %v2683_v4, 1  ;;  %v2381_v17 = vmax.f32 %v1899_v14, 0.0 }
 0x20f   : > { %v2678_v56 = vrot.slane %v2677_v50, 1  ;;  %v2380_v22 = vmax.f32 %v1894_v27, 0.0  ;;  %v5401_v24 = vpop.f32.mrf.mxu1  ;;  %v3401_v19 = vsel %vm3366_vm1, %v2673_v12, %v2667_v60  ;;  %v2694_v28 = vrot.slane %v2693_v13, 2 }
 0x210   : > { %v2688_v37 = vrot.slane %v2687_v8, 2  ;;  %v2383_v33 = vmax.f32 %v1909_v49, 0.0  ;;  %v2704_v46 = vrot.slane %v2381_v17, 4  ;;  %v1904_v36 = vadd.f32 %v5215_v23, %v5358_v35 }
 0x211   : > { %v2679_v51 = vmax.f32 %v2677_v50, %v2678_v56  ;;  %v2698_v1 = vrot.slane %v2380_v22, 4  ;;  %v5406_v58 = vpop.f32.mrf.mxu1  ;;  %v2695_v21 = vmax.f32 %v2693_v13, %v2694_v28  ;;  %v1919_v57 = vadd.f32 %v5363_v55, %v5215_v23 }
 0x212   : > { %v2689_v38 = vmax.f32 %v2687_v8, %v2688_v37  ;;  %v2716_v61 = vrot.slane %v2383_v33, 4  ;;  %v5410_v60 = vmax.f32 %v2683_v4, %v2684_v16  ;;  %v2705_v14 = vmax.f32 %v2381_v17, %v2704_v46 }
 0x213   : > { %v2699_v27 = vmax.f32 %v2380_v22, %v2698_v1  ;;  %v2382_v50 = vmax.f32 %v1904_v36, 0.0  ;;  %v5412_v12 = vpop.f32.mrf.mxu1  ;;  %v2696_v49 = vrot.slane %v2695_v21, 1  ;;  %v2385_v26 = vmax.f32 %v1919_v57, 0.0 }
 0x214   : > { %v2690_v35 = vrot.slane %v2689_v38, 1  ;;  %v2717_v56 = vmax.f32 %v2383_v33, %v2716_v61  ;;  %v5415_v13 = vsel %vm3368_vm2, %v2679_v51, %v3401_v19  ;;  %v2706_v8 = vrot.slane %v2705_v14, 2 }
 0x215   : > { %v2700_v28 = vrot.slane %v2699_v27, 2  ;;  %v2710_v55 = vrot.slane %v2382_v50, 4  ;;  %v5417_v37 = vpop.f32.mrf.mxu1  ;;  %v5419_v4 = vmax.f32 %v2695_v21, %v2696_v49  ;;  %v2728_v17 = vrot.slane %v2385_v26, 4 }
 0x216   : > { %v2718_v16 = vrot.slane %v2717_v56, 2  ;;  %v2511_v22 = vmax.f32 %v5243_v34, %v2510_v45  ;;  %v5424_v46 = vmax.f32 %v2689_v38, %v2690_v35  ;;  %v2516_v19 = vrot.slane %v5239_v30, 1 }
 0x217   : > { %v2701_v33 = vmax.f32 %v2699_v27, %v2700_v28  ;;  %v2711_v1 = vmax.f32 %v2382_v50, %v2710_v55  ;;  %v5427_v51 = vpop.f32.mrf.mxu1  ;;  %v2729_v61 = vmax.f32 %v2385_v26, %v2728_v17  ;;  %v3369_v21 = vsel %vm3368_vm2, %v5387_v52, %v5361_v9 }
 0x218   : > { %v2719_v36 = vmax.f32 %v2717_v56, %v2718_v16  ;;  %v1914_v57 = vadd.f32 %v5215_v23, %v5369_v43  ;;  %v5434_v49 = vmax.f32 %v2705_v14, %v2706_v8  ;;  %v3371_v38 = vsel %vm3370_vm3, %v5375_v31, %v3369_v21 }
 0x219   : > { %v2702_v34 = vrot.slane %v2701_v33, 1  ;;  %v2712_v45 = vrot.slane %v2711_v1, 2  ;;  %v5438_v27 = vpop.f32.mrf.mxu1  ;;  %v2730_v50 = vrot.slane %v2729_v61, 2  ;;  %v2517_v35 = vmax.f32 %v5239_v30, %v2516_v19 }
 0x21a   : > { %v3373_v26 = vsel %vm3372_vm4, %v5247_v44, %v3371_v38  ;;  %v2384_v56 = vmax.f32 %v1914_v57, 0.0  ;;  %v2720_v9 = vrot.slane %v2719_v36, 1  ;;  %v1929_v14 = vadd.f32 %v5373_v7, %v5215_v23 }
 0x21b   : > { %v2713_v52 = vmax.f32 %v2711_v1, %v2712_v45  ;;  %v3375_v43 = vsel %vm3374_vm5, %v5236_v20, %v3373_v26  ;;  %v5447_v8 = vpop.f32.mrf.mxu1  ;;  %v5449_v31 = vmax.f32 %v2701_v33, %v2702_v34  ;;  %v2731_v28 = vmax.f32 %v2729_v61, %v2730_v50 }
 0x21c   : > { %v3377_v55 = vsel %vm3376_vm6, %v2511_v22, %v3375_v43  ;;  %v2722_v30 = vrot.slane %v2384_v56, 4  ;;  %v2387_v17 = vmax.f32 %v1929_v14, 0.0  ;;  %v6179_v1 = vrot.slane %v5276_v6, 1 }
 0x21d   : > { %v2714_v16 = vrot.slane %v2713_v52, 1  ;;  %v3379_v44 = vsel %vm3378_vm7, %v2517_v35, %v3377_v55  ;;  %v5456_v20 = vpop.f32.mrf.mxu1  ;;  %v2732_v21 = vrot.slane %v2731_v28, 1  ;;  %v2564_v7 = vrot.slane %v5274_v5, 1 }
 0x21e   : > { %v2559_v19 = vmax.f32 %v5276_v6, %v6179_v1  ;;  %3501 = vxpose.xlu0.b32.start [1/16] %v3379_v44, 128  ;;  %v2723_v23 = vmax.f32 %v2384_v56, %v2722_v30  ;;  %v3381_v22 = vsel %vm3368_vm2, %v5264_v47, %v5257_v29  ;;  %v2721_v33 = vmax.f32 %v2719_v36, %v2720_v9  ;;  %v5467_v6 = vld [vmem:[%s6175_s4] ss:$0 sm:$0xff] }
 0x21f   : > { %v2740_v61 = vrot.slane %v2387_v17, 4  ;;  %v3382_v57 = vsel %vm3370_vm3, %v5261_v41, %v3381_v22  ;;  %v1924_v34 = vadd.f32 %v5467_v6, %v5377_v25  ;;  %v5471_v45 = vpop.f32.mrf.mxu1  ;;  %v2715_v38 = vmax.f32 %v2713_v52, %v2714_v16 }
 0x220   : > { %v5473_v50 = vmax.f32 %v2731_v28, %v2732_v21  ;;  %v2724_v35 = vrot.slane %v2723_v23, 2  ;;  %v3383_v29 = vsel %vm3372_vm4, %v5272_v3, %v3382_v57  ;;  %v2565_v41 = vmax.f32 %v5274_v5, %v2564_v7 }
 0x221   : > { %v2741_v47 = vmax.f32 %v2387_v17, %v2740_v61  ;;  %v3384_v36 = vsel %vm3374_vm5, %v5268_v62, %v3383_v29  ;;  %v2386_v26 = vmax.f32 %v1924_v34, 0.0  ;;  %v5480_v56 = vpop.f32.mrf.mxu1  ;;  %v1939_v52 = vadd.f32 %v5467_v6, %v5383_v15 }
 0x222   : > { %v2725_v9 = vmax.f32 %v2723_v23, %v2724_v35  ;;  %v3385_v25 = vsel %vm3376_vm6, %v2559_v19, %v3384_v36  ;;  %v2612_v43 = vrot.slane %v5301_v53, 1  ;;  %v3389_v5 = vsel %vm3370_vm3, %v5292_v40, %v5299_v32 }
 0x223   : > { %v2742_v14 = vrot.slane %v2741_v47, 2  ;;  %v3386_v3 = vsel %vm3378_vm7, %v2565_v41, %v3385_v25  ;;  %v2734_v28 = vrot.slane %v2386_v26, 4  ;;  %v5490_v62 = vpop.f32.mrf.mxu1  ;;  %v2389_v30 = vmax.f32 %v1939_v52, 0.0 }
 0x224   : > { %v2726_v55 = vrot.slane %v2725_v9, 1  ;;  %3502 = vxpose.xlu0.b32.cont [2/16] %v3386_v3, 128  ;;  %v2613_v16 = vmax.f32 %v5301_v53, %v2612_v43  ;;  %v3390_v15 = vsel %vm3372_vm4, %v5310_v63, %v3389_v5  ;;  %v1934_v19 = vadd.f32 %v5467_v6, %v5389_v0 }
 0x225   : > { %v2743_v44 = vmax.f32 %v2741_v47, %v2742_v14  ;;  %v2735_v17 = vmax.f32 %v2386_v26, %v2734_v28  ;;  %v3391_v1 = vsel %vm3374_vm5, %v5294_v42, %v3390_v15  ;;  %v5499_v21 = vpop.f32.mrf.mxu1  ;;  %v2752_v32 = vrot.slane %v2389_v30, 4 }
 0x226   : > { %v2727_v40 = vmax.f32 %v2725_v9, %v2726_v55  ;;  %v3392_v23 = vsel %vm3376_vm6, %v5335_v18, %v3391_v1  ;;  %v1949_v53 = vadd.f32 %v5467_v6, %v5397_v10  ;;  %v2388_v61 = vmax.f32 %v1934_v19, 0.0 }
 0x227   : > { %v2744_v7 = vrot.slane %v2743_v44, 1  ;;  %v2736_v63 = vrot.slane %v2735_v17, 2  ;;  %v3393_v22 = vsel %vm3378_vm7, %v2613_v16, %v3392_v23  ;;  %v5506_v57 = vpop.f32.mrf.mxu1  ;;  %v3408_v42 = vsel %vm3366_vm1, %v2721_v33, %v2715_v38 }
 0x228   : > { %v2753_v0 = vmax.f32 %v2389_v30, %v2752_v32  ;;  %3503 = vxpose.xlu0.b32.cont [3/16] %v3393_v22, 128  ;;  %v2391_v34 = vmax.f32 %v1949_v53, 0.0  ;;  %v2660_v35 = vrot.slane %v5385_v59, 1  ;;  %v5511_v29 = vsel %vm3368_vm2, %v2727_v40, %v3408_v42 }
 0x229   : > { %v2737_v18 = vmax.f32 %v2735_v17, %v2736_v63  ;;  %v2746_v47 = vrot.slane %v2388_v61, 4  ;;  %v3396_v10 = vsel %vm3370_vm3, %v5338_v39, %v5345_v2  ;;  %v5516_v41 = vpop.f32.mrf.mxu1  ;;  %v5518_v36 = vmax.f32 %v2743_v44, %v2744_v7 }
 0x22a   : > { %v2754_v26 = vrot.slane %v2753_v0, 2  ;;  %v2764_v33 = vrot.slane %v2391_v34, 4  ;;  %v3397_v38 = vsel %vm3372_vm4, %v5371_v48, %v3396_v10  ;;  %v2661_v25 = vmax.f32 %v5385_v59, %v2660_v35 }
 0x22b   : > { %v2747_v9 = vmax.f32 %v2388_v61, %v2746_v47  ;;  %v3398_v52 = vsel %vm3374_vm5, %v5354_v11, %v3397_v38  ;;  %v1944_v43 = vadd.f32 %v5467_v6, %v5401_v24  ;;  %v5527_v14 = vpop.f32.mrf.mxu1  ;;  %v2738_v39 = vrot.slane %v2737_v18, 1 }
 0x22c   : > { %v2765_v2 = vmax.f32 %v2391_v34, %v2764_v33  ;;  %v3399_v3 = vsel %vm3376_vm6, %v5391_v54, %v3398_v52  ;;  %v1959_v28 = vadd.f32 %v5467_v6, %v5406_v58  ;;  %v5533_v48 = vmax.f32 %v2753_v0, %v2754_v26 }
 0x22d   : > { %v2748_v5 = vrot.slane %v2747_v9, 2  ;;  %v3400_v59 = vsel %vm3378_vm7, %v2661_v25, %v3399_v3  ;;  %v2390_v55 = vmax.f32 %v1944_v43, 0.0  ;;  %v5536_v11 = vpop.f32.mrf.mxu1  ;;  %v2708_v16 = vrot.slane %v5434_v49, 1 }
 0x22e   : > { %v2766_v30 = vrot.slane %v2765_v2, 2  ;;  %3504 = vxpose.xlu0.b32.cont [4/16] %v3400_v59, 128  ;;  %v2393_v24 = vmax.f32 %v1959_v28, 0.0  ;;  %v3403_v54 = vsel %vm3370_vm3, %v5410_v60, %v5415_v13  ;;  %v1954_v17 = vadd.f32 %v5467_v6, %v5412_v12 }
 0x22f   : > { %v2749_v15 = vmax.f32 %v2747_v9, %v2748_v5  ;;  %v2758_v44 = vrot.slane %v2390_v55, 4  ;;  %v3404_v58 = vsel %vm3372_vm4, %v5424_v46, %v3403_v54  ;;  %v5546_v1 = vpop.f32.mrf.mxu1  ;;  %v2709_v32 = vmax.f32 %v5434_v49, %v2708_v16 }
 0x230   : > { %v2767_v19 = vmax.f32 %v2765_v2, %v2766_v30  ;;  %v2776_v40 = vrot.slane %v2393_v24, 4  ;;  %v3405_v23 = vsel %vm3374_vm5, %v5419_v4, %v3404_v58  ;;  %v2392_v13 = vmax.f32 %v1954_v17, 0.0 }
 0x231   : > { %v2750_v53 = vrot.slane %v2749_v15, 1  ;;  %v2759_v7 = vmax.f32 %v2390_v55, %v2758_v44  ;;  %v3406_v60 = vsel %vm3376_vm6, %v5449_v31, %v3405_v23  ;;  %v5553_v63 = vpop.f32.mrf.mxu1  ;;  %v5555_v46 = vmax.f32 %v2737_v18, %v2738_v39 }
 0x232   : > { %v2777_v12 = vmax.f32 %v2393_v24, %v2776_v40  ;;  %v3407_v22 = vsel %vm3378_vm7, %v2709_v32, %v3406_v60  ;;  %v1969_v61 = vadd.f32 %v5467_v6, %v5417_v37  ;;  %v2768_v49 = vrot.slane %v2767_v19, 1 }
 0x233   : > { %v2760_v42 = vrot.slane %v2759_v7, 2  ;;  %3505 = vxpose.xlu0.b32.cont [5/16] %v3407_v22, 128  ;;  %v2770_v4 = vrot.slane %v2392_v13, 4  ;;  %v1964_v0 = vadd.f32 %v5467_v6, %v5427_v51  ;;  %v5562_v34 = vpop.f32.mrf.mxu1  ;;  %v2751_v31 = vmax.f32 %v2749_v15, %v2750_v53 }
 0x234   : > { %v2778_v35 = vrot.slane %v2777_v12, 2  ;;  %v2395_v47 = vmax.f32 %v1969_v61, 0.0  ;;  %v1979_v18 = vadd.f32 %v5467_v6, %v5438_v27  ;;  %v1974_v37 = vadd.f32 %v5467_v6, %v5447_v8 }
 0x235   : > { %v2761_v10 = vmax.f32 %v2759_v7, %v2760_v42  ;;  %v2771_v26 = vmax.f32 %v2392_v13, %v2770_v4  ;;  %v2394_v33 = vmax.f32 %v1964_v0, 0.0  ;;  %v5568_v38 = vpop.f32.mrf.mxu1  ;;  %v1989_v51 = vadd.f32 %v5467_v6, %v5456_v20 }
 0x236   : > { %v2779_v9 = vmax.f32 %v2777_v12, %v2778_v35  ;;  %v2788_v25 = vrot.slane %v2395_v47, 4  ;;  %v2397_v52 = vmax.f32 %v1979_v18, 0.0  ;;  %v2396_v3 = vmax.f32 %v1974_v37, 0.0 }
 0x237   : > { %v2762_v43 = vrot.slane %v2761_v10, 1  ;;  %v2772_v39 = vrot.slane %v2771_v26, 2  ;;  %v2782_v2 = vrot.slane %v2394_v33, 4  ;;  %v5572_v28 = vpop.f32.mrf.mxu1  ;;  %v2399_v55 = vmax.f32 %v1989_v51, 0.0 }
 0x238   : > { %v2780_v27 = vrot.slane %v2779_v9, 1  ;;  %v2789_v5 = vmax.f32 %v2395_v47, %v2788_v25  ;;  %v2800_v59 = vrot.slane %v2397_v52, 4  ;;  %v2794_v16 = vrot.slane %v2396_v3, 4 }
 0x239   : > { %v2763_v30 = vmax.f32 %v2761_v10, %v2762_v43  ;;  %v2773_v8 = vmax.f32 %v2771_v26, %v2772_v39  ;;  %v2783_v24 = vmax.f32 %v2394_v33, %v2782_v2  ;;  %v5574_v54 = vpop.f32.mrf.mxu1  ;;  %v2769_v15 = vmax.f32 %v2767_v19, %v2768_v49 }
 0x23a   : > { %v2790_v44 = vrot.slane %v2789_v5, 2  ;;  %v2801_v58 = vmax.f32 %v2397_v52, %v2800_v59  ;;  %v2812_v20 = vrot.slane %v2399_v55, 4  ;;  %v5576_v17 = vmax.f32 %v2779_v9, %v2780_v27 }
 0x23b   : > { %v2774_v40 = vrot.slane %v2773_v8, 1  ;;  %v2784_v32 = vrot.slane %v2783_v24, 2  ;;  %v2795_v23 = vmax.f32 %v2396_v3, %v2794_v16  ;;  %v5578_v53 = vpop.f32.mrf.mxu1  ;;  %v2756_v12 = vrot.slane %v5533_v48, 1 }
 0x23c   : > { %v2791_v7 = vmax.f32 %v2789_v5, %v2790_v44  ;;  %v2802_v60 = vrot.slane %v2801_v58, 2  ;;  %v2813_v13 = vmax.f32 %v2399_v55, %v2812_v20  ;;  %v3415_v22 = vsel %vm3366_vm1, %v2769_v15, %v2763_v30 }
 0x23d   : > { %v2775_v61 = vmax.f32 %v2773_v8, %v2774_v40  ;;  %v2785_v42 = vmax.f32 %v2783_v24, %v2784_v32  ;;  %v2796_v19 = vrot.slane %v2795_v23, 2  ;;  %v5582_v49 = vpop.f32.mrf.mxu1  ;;  %v3410_v47 = vsel %vm3370_vm3, %v5473_v50, %v5511_v29 }
 0x23e   : > { %v2792_v4 = vrot.slane %v2791_v7, 1  ;;  %v5584_v0 = vmax.f32 %v2801_v58, %v2802_v60  ;;  %v2814_v35 = vrot.slane %v2813_v13, 2  ;;  %v2757_v26 = vmax.f32 %v5533_v48, %v2756_v12 }
 0x23f   : > { %v2786_v18 = vrot.slane %v2785_v42, 1  ;;  %v2797_v10 = vmax.f32 %v2795_v23, %v2796_v19  ;;  %v3411_v33 = vsel %vm3372_vm4, %v5555_v46, %v3410_v47  ;;  %v5592_v37 = vpop.f32.mrf.mxu1  ;;  %v5595_v9 = vsel %vm3368_vm2, %v2775_v61, %v3415_v22 }
 0x240   : > { %v5597_v25 = vmax.f32 %v2813_v13, %v2814_v35  ;;  %v3412_v52 = vsel %vm3374_vm5, %v5518_v36, %v3411_v33  ;;  %v1984_v50 = vadd.f32 %v5467_v6, %v5471_v45  ;;  %v5603_v29 = vmax.f32 %v2791_v7, %v2792_v4 }
 0x241   : > { %v2798_v51 = vrot.slane %v2797_v10, 1  ;;  %v3413_v48 = vsel %vm3376_vm6, %v2751_v31, %v3412_v52  ;;  %v1999_v46 = vadd.f32 %v5467_v6, %v5480_v56  ;;  %v5608_v43 = vpop.f32.mrf.mxu1  ;;  %v5610_v39 = vmax.f32 %v2785_v42, %v2786_v18 }
 0x242   : > { %v3414_v2 = vsel %vm3378_vm7, %v2757_v26, %v3413_v48  ;;  %v2398_v3 = vmax.f32 %v1984_v50, 0.0  ;;  %v1994_v36 = vadd.f32 %v5467_v6, %v5490_v62  ;;  %v2816_v45 = vrot.slane %v5597_v25, 1 }
 0x243   : > { %3506 = vxpose.xlu0.b32.cont [6/16] %v3414_v2, 128  ;;  %v2401_v27 = vmax.f32 %v1999_v46, 0.0  ;;  %v2009_v31 = vadd.f32 %v5467_v6, %v5499_v21  ;;  %v2004_v56 = vadd.f32 %v5467_v6, %v5506_v57  ;;  %v5620_v5 = vpop.f32.mrf.mxu1  ;;  %v5622_v59 = vmax.f32 %v2797_v10, %v2798_v51 }
 0x244   : > { %v2806_v55 = vrot.slane %v2398_v3, 4  ;;  %v2400_v30 = vmax.f32 %v1994_v36, 0.0  ;;  %v2019_v8 = vadd.f32 %v5467_v6, %v5516_v41  ;;  %v2014_v15 = vadd.f32 %v5467_v6, %v5527_v14 }
 0x245   : > { %v2824_v62 = vrot.slane %v2401_v27, 4  ;;  %v2403_v24 = vmax.f32 %v2009_v31, 0.0  ;;  %v2402_v16 = vmax.f32 %v2004_v56, 0.0  ;;  %v5628_v44 = vpop.f32.mrf.mxu1  ;;  %v2029_v20 = vadd.f32 %v5467_v6, %v5536_v11 }
 0x246   : > { %v2807_v21 = vmax.f32 %v2398_v3, %v2806_v55  ;;  %v2818_v58 = vrot.slane %v2400_v30, 4  ;;  %v2405_v57 = vmax.f32 %v2019_v8, 0.0  ;;  %v2404_v7 = vmax.f32 %v2014_v15, 0.0 }
 0x247   : > { %v2825_v40 = vmax.f32 %v2401_v27, %v2824_v62  ;;  %v2836_v32 = vrot.slane %v2403_v24, 4  ;;  %v2830_v23 = vrot.slane %v2402_v16, 4  ;;  %v5632_v60 = vpop.f32.mrf.mxu1  ;;  %v2407_v22 = vmax.f32 %v2029_v20, 0.0 }
 0x248   : > { %v2808_v41 = vrot.slane %v2807_v21, 2  ;;  %v2819_v13 = vmax.f32 %v2400_v30, %v2818_v58  ;;  %v2848_v12 = vrot.slane %v2405_v57, 4  ;;  %v2842_v19 = vrot.slane %v2404_v7, 4 }
 0x249   : > { %v2826_v61 = vrot.slane %v2825_v40, 2  ;;  %v2837_v14 = vmax.f32 %v2403_v24, %v2836_v32  ;;  %v2831_v42 = vmax.f32 %v2402_v16, %v2830_v23  ;;  %v5634_v4 = vpop.f32.mrf.mxu1  ;;  %v2860_v11 = vrot.slane %v2407_v22, 4 }
 0x24a   : > { %v2809_v35 = vmax.f32 %v2807_v21, %v2808_v41  ;;  %v2820_v47 = vrot.slane %v2819_v13, 2  ;;  %v2849_v18 = vmax.f32 %v2405_v57, %v2848_v12  ;;  %v2843_v52 = vmax.f32 %v2404_v7, %v2842_v19 }
 0x24b   : > { %v2827_v10 = vmax.f32 %v2825_v40, %v2826_v61  ;;  %v2838_v26 = vrot.slane %v2837_v14, 2  ;;  %v2832_v33 = vrot.slane %v2831_v42, 2  ;;  %v5636_v50 = vpop.f32.mrf.mxu1  ;;  %v2861_v2 = vmax.f32 %v2407_v22, %v2860_v11 }
 0x24c   : > { %v2810_v51 = vrot.slane %v2809_v35, 1  ;;  %v2821_v48 = vmax.f32 %v2819_v13, %v2820_v47  ;;  %v2850_v46 = vrot.slane %v2849_v18, 2  ;;  %v2844_v31 = vrot.slane %v2843_v52, 2 }
 0x24d   : > { %v2828_v3 = vrot.slane %v2827_v10, 1  ;;  %v2839_v36 = vmax.f32 %v2837_v14, %v2838_v26  ;;  %v2833_v27 = vmax.f32 %v2831_v42, %v2832_v33  ;;  %v5638_v56 = vpop.f32.mrf.mxu1  ;;  %v2817_v55 = vmax.f32 %v5597_v25, %v2816_v45 }
 0x24e   : > { %v2811_v30 = vmax.f32 %v2809_v35, %v2810_v51  ;;  %v2822_v8 = vrot.slane %v2821_v48, 1  ;;  %v2862_v62 = vrot.slane %v2861_v2, 2  ;;  %v5641_v15 = vmax.f32 %v2849_v18, %v2850_v46 }
 0x24f   : > { %v2840_v24 = vrot.slane %v2839_v36, 1  ;;  %v2834_v16 = vrot.slane %v2833_v27, 1  ;;  %v2845_v21 = vmax.f32 %v2843_v52, %v2844_v31  ;;  %v5643_v58 = vpop.f32.mrf.mxu1  ;;  %v5645_v57 = vmax.f32 %v2827_v10, %v2828_v3 }
 0x250   : > { %v2823_v20 = vmax.f32 %v2821_v48, %v2822_v8  ;;  %v5647_v40 = vmax.f32 %v2861_v2, %v2862_v62  ;;  %v2804_v32 = vrot.slane %v5584_v0, 1  ;;  %v3422_v23 = vsel %vm3366_vm1, %v2817_v55, %v2811_v30 }
 0x251   : > { %v5651_v25 = vmax.f32 %v2839_v36, %v2840_v24  ;;  %v2846_v45 = vrot.slane %v2845_v21, 1  ;;  %v3417_v7 = vsel %vm3370_vm3, %v5576_v17, %v5595_v9  ;;  %v5656_v41 = vpop.f32.mrf.mxu1  ;;  %v5661_v12 = vmax.f32 %v2833_v27, %v2834_v16 }
 0x252   : > { %v5659_v13 = vsel %vm3368_vm2, %v2823_v20, %v3422_v23  ;;  %v2864_v22 = vrot.slane %v5647_v40, 1  ;;  %v3418_v61 = vsel %vm3372_vm4, %v5610_v39, %v3417_v7  ;;  %v2805_v14 = vmax.f32 %v5584_v0, %v2804_v32 }
 0x253   : > { %v3419_v42 = vsel %vm3374_vm5, %v5603_v29, %v3418_v61  ;;  %v2024_v17 = vadd.f32 %v5467_v6, %v5546_v1  ;;  %v2039_v9 = vadd.f32 %v5467_v6, %v5553_v63  ;;  %v5673_v19 = vpop.f32.mrf.mxu1  ;;  %v5675_v35 = vmax.f32 %v2845_v21, %v2846_v45 }
 0x254   : > { %v3420_v47 = vsel %vm3376_vm6, %v5622_v59, %v3419_v42  ;;  %v2034_v39 = vadd.f32 %v5467_v6, %v5562_v34  ;;  %v2049_v0 = vadd.f32 %v5467_v6, %v5568_v38  ;;  %v2044_v63 = vadd.f32 %v5467_v6, %v5572_v28 }
 0x255   : > { %v3421_v29 = vsel %vm3378_vm7, %v2805_v14, %v3420_v47  ;;  %v2406_v18 = vmax.f32 %v2024_v17, 0.0  ;;  %v2409_v1 = vmax.f32 %v2039_v9, 0.0  ;;  %v5686_v11 = vpop.f32.mrf.mxu1  ;;  %v2059_v59 = vadd.f32 %v5467_v6, %v5574_v54 }
 0x256   : > { %3507 = vxpose.xlu0.b32.cont [7/16] %v3421_v29, 128  ;;  %v2408_v10 = vmax.f32 %v2034_v39, 0.0  ;;  %v2411_v26 = vmax.f32 %v2049_v0, 0.0  ;;  %v2054_v34 = vadd.f32 %v5467_v6, %v5578_v53  ;;  %v2410_v52 = vmax.f32 %v2044_v63, 0.0 }
 0x257   : > { %v2854_v33 = vrot.slane %v2406_v18, 4  ;;  %v2872_v38 = vrot.slane %v2409_v1, 4  ;;  %v2069_v51 = vadd.f32 %v5467_v6, %v5582_v49  ;;  %v5694_v48 = vpop.f32.mrf.mxu1  ;;  %v2413_v2 = vmax.f32 %v2059_v59, 0.0 }
 0x258   : > { %v2866_v28 = vrot.slane %v2408_v10, 4  ;;  %v2884_v46 = vrot.slane %v2411_v26, 4  ;;  %v2412_v3 = vmax.f32 %v2054_v34, 0.0  ;;  %v2878_v31 = vrot.slane %v2410_v52, 4 }
 0x259   : > { %v2855_v36 = vmax.f32 %v2406_v18, %v2854_v33  ;;  %v2873_v27 = vmax.f32 %v2409_v1, %v2872_v38  ;;  %v2415_v55 = vmax.f32 %v2069_v51, 0.0  ;;  %v5696_v54 = vpop.f32.mrf.mxu1  ;;  %v2896_v8 = vrot.slane %v2413_v2, 4 }
 0x25a   : > { %v2867_v30 = vmax.f32 %v2408_v10, %v2866_v28  ;;  %v2885_v53 = vmax.f32 %v2411_v26, %v2884_v46  ;;  %v2890_v62 = vrot.slane %v2412_v3, 4  ;;  %v2879_v21 = vmax.f32 %v2410_v52, %v2878_v31 }
 0x25b   : > { %v2856_v24 = vrot.slane %v2855_v36, 2  ;;  %v2874_v16 = vrot.slane %v2873_v27, 2  ;;  %v2908_v49 = vrot.slane %v2415_v55, 4  ;;  %v5698_v20 = vpop.f32.mrf.mxu1  ;;  %v2897_v45 = vmax.f32 %v2413_v2, %v2896_v8 }
 0x25c   : > { %v2868_v32 = vrot.slane %v2867_v30, 2  ;;  %v2886_v23 = vrot.slane %v2885_v53, 2  ;;  %v2891_v7 = vmax.f32 %v2412_v3, %v2890_v62  ;;  %v2880_v42 = vrot.slane %v2879_v21, 2 }
 0x25d   : > { %v2857_v61 = vmax.f32 %v2855_v36, %v2856_v24  ;;  %v2875_v14 = vmax.f32 %v2873_v27, %v2874_v16  ;;  %v2909_v17 = vmax.f32 %v2415_v55, %v2908_v49  ;;  %v5700_v9 = vpop.f32.mrf.mxu1  ;;  %v2898_v0 = vrot.slane %v2897_v45, 2 }
 0x25e   : > { %v2869_v47 = vmax.f32 %v2867_v30, %v2868_v32  ;;  %v2887_v39 = vmax.f32 %v2885_v53, %v2886_v23  ;;  %v2892_v29 = vrot.slane %v2891_v7, 2  ;;  %v2881_v63 = vmax.f32 %v2879_v21, %v2880_v42 }
 0x25f   : > { %v2858_v18 = vrot.slane %v2857_v61, 1  ;;  %v2876_v1 = vrot.slane %v2875_v14, 1  ;;  %v2910_v10 = vrot.slane %v2909_v17, 2  ;;  %v5702_v26 = vpop.f32.mrf.mxu1  ;;  %v2865_v59 = vmax.f32 %v5647_v40, %v2864_v22 }
 0x260   : > { %v2870_v34 = vrot.slane %v2869_v47, 1  ;;  %v2888_v33 = vrot.slane %v2887_v39, 1  ;;  %v2893_v38 = vmax.f32 %v2891_v7, %v2892_v29  ;;  %v2882_v51 = vrot.slane %v2881_v63, 1 }
 0x261   : > { %v2859_v52 = vmax.f32 %v2857_v61, %v2858_v18  ;;  %v5705_v28 = vmax.f32 %v2897_v45, %v2898_v0  ;;  %v5707_v46 = vmax.f32 %v2909_v17, %v2910_v10  ;;  %v5709_v2 = vpop.f32.mrf.mxu1  ;;  %v5711_v3 = vmax.f32 %v2875_v14, %v2876_v1 }
 0x262   : > { %v2871_v36 = vmax.f32 %v2869_v47, %v2870_v34  ;;  %v2894_v27 = vrot.slane %v2893_v38, 1  ;;  %v2852_v31 = vrot.slane %v5641_v15, 1  ;;  %v5715_v40 = vmax.f32 %v2887_v39, %v2888_v33 }
 0x263   : > { %v3429_v55 = vsel %vm3366_vm1, %v2865_v59, %v2859_v52  ;;  %v5717_v22 = vmax.f32 %v2881_v63, %v2882_v51  ;;  %v3424_v30 = vsel %vm3370_vm3, %v5645_v57, %v5659_v13  ;;  %v5722_v53 = vpop.f32.mrf.mxu1  ;;  %v2912_v24 = vrot.slane %v5707_v46, 1 }
 0x264   : > { %v5725_v8 = vsel %vm3368_vm2, %v2871_v36, %v3429_v55  ;;  %v5727_v62 = vmax.f32 %v2893_v38, %v2894_v27  ;;  %v3425_v16 = vsel %vm3372_vm4, %v5661_v12, %v3424_v30  ;;  %v2853_v21 = vmax.f32 %v5641_v15, %v2852_v31 }
 0x265   : > { %v3426_v49 = vsel %vm3374_vm5, %v5651_v25, %v3425_v16  ;;  %v2064_v57 = vadd.f32 %v5467_v6, %v5592_v37  ;;  %v2079_v13 = vadd.f32 %v5467_v6, %v5608_v43  ;;  %v5739_v32 = vpop.f32.mrf.mxu1  ;;  %v2074_v45 = vadd.f32 %v5467_v6, %v5620_v5 }
 0x266   : > { %v3427_v23 = vsel %vm3376_vm6, %v5675_v35, %v3426_v49  ;;  %v2089_v15 = vadd.f32 %v5467_v6, %v5628_v44  ;;  %v2084_v25 = vadd.f32 %v5467_v6, %v5632_v60  ;;  %v2099_v43 = vadd.f32 %v5467_v6, %v5634_v4 }
 0x267   : > { %v3428_v12 = vsel %vm3378_vm7, %v2853_v21, %v3427_v23  ;;  %v2414_v37 = vmax.f32 %v2064_v57, 0.0  ;;  %v2417_v7 = vmax.f32 %v2079_v13, 0.0  ;;  %v5752_v61 = vpop.f32.mrf.mxu1  ;;  %v2416_v35 = vmax.f32 %v2074_v45, 0.0 }
 0x268   : > { %3508 = vxpose.xlu0.b32.cont [8/16] %v3428_v12, 128  ;;  %v2419_v14 = vmax.f32 %v2089_v15, 0.0  ;;  %v2418_v42 = vmax.f32 %v2084_v25, 0.0  ;;  %v2094_v5 = vadd.f32 %v5467_v6, %v5636_v50  ;;  %v2421_v47 = vmax.f32 %v2099_v43, 0.0 }
 0x269   : > { %v2902_v44 = vrot.slane %v2414_v37, 4  ;;  %v2920_v17 = vrot.slane %v2417_v7, 4  ;;  %v2109_v60 = vadd.f32 %v5467_v6, %v5638_v56  ;;  %v5758_v39 = vpop.f32.mrf.mxu1  ;;  %v2914_v0 = vrot.slane %v2416_v35, 4 }
 0x26a   : > { %v2932_v29 = vrot.slane %v2419_v14, 4  ;;  %v2926_v4 = vrot.slane %v2418_v42, 4  ;;  %v2420_v18 = vmax.f32 %v2094_v5, 0.0  ;;  %v2944_v10 = vrot.slane %v2421_v47, 4 }
 0x26b   : > { %v2903_v1 = vmax.f32 %v2414_v37, %v2902_v44  ;;  %v2921_v63 = vmax.f32 %v2417_v7, %v2920_v17  ;;  %v2423_v59 = vmax.f32 %v2109_v60, 0.0  ;;  %v5760_v34 = vpop.f32.mrf.mxu1  ;;  %v2915_v33 = vmax.f32 %v2416_v35, %v2914_v0 }
 0x26c   : > { %v2933_v50 = vmax.f32 %v2419_v14, %v2932_v29  ;;  %v2927_v38 = vmax.f32 %v2418_v42, %v2926_v4  ;;  %v2938_v52 = vrot.slane %v2420_v18, 4  ;;  %v2945_v27 = vmax.f32 %v2421_v47, %v2944_v10 }
 0x26d   : > { %v2904_v51 = vrot.slane %v2903_v1, 2  ;;  %v2922_v36 = vrot.slane %v2921_v63, 2  ;;  %v2956_v56 = vrot.slane %v2423_v59, 4  ;;  %v5762_v31 = vpop.f32.mrf.mxu1  ;;  %v2916_v55 = vrot.slane %v2915_v33, 2 }
 0x26e   : > { %v2934_v30 = vrot.slane %v2933_v50, 2  ;;  %v2928_v16 = vrot.slane %v2927_v38, 2  ;;  %v2939_v21 = vmax.f32 %v2420_v18, %v2938_v52  ;;  %v2946_v13 = vrot.slane %v2945_v27, 2 }
 0x26f   : > { %v2905_v49 = vmax.f32 %v2903_v1, %v2904_v51  ;;  %v2923_v57 = vmax.f32 %v2921_v63, %v2922_v36  ;;  %v2957_v23 = vmax.f32 %v2423_v59, %v2956_v56  ;;  %v5764_v45 = vpop.f32.mrf.mxu1  ;;  %v2917_v15 = vmax.f32 %v2915_v33, %v2916_v55 }
 0x270   : > { %v2935_v25 = vmax.f32 %v2933_v50, %v2934_v30  ;;  %v2929_v12 = vmax.f32 %v2927_v38, %v2928_v16  ;;  %v2940_v37 = vrot.slane %v2939_v21, 2  ;;  %v2913_v7 = vmax.f32 %v5707_v46, %v2912_v24 }
 0x271   : > { %v2906_v43 = vrot.slane %v2905_v49, 1  ;;  %v2924_v35 = vrot.slane %v2923_v57, 1  ;;  %v2958_v14 = vrot.slane %v2957_v23, 2  ;;  %v5767_v42 = vpop.f32.mrf.mxu1  ;;  %v2918_v5 = vrot.slane %v2917_v15, 1 }
 0x272   : > { %v2936_v44 = vrot.slane %v2935_v25, 1  ;;  %v2930_v17 = vrot.slane %v2929_v12, 1  ;;  %v2941_v47 = vmax.f32 %v2939_v21, %v2940_v37  ;;  %v5769_v0 = vmax.f32 %v2945_v27, %v2946_v13 }
 0x273   : > { %v2907_v60 = vmax.f32 %v2905_v49, %v2906_v43  ;;  %v5771_v29 = vmax.f32 %v2957_v23, %v2958_v14  ;;  %v2900_v4 = vrot.slane %v5705_v28, 1  ;;  %v5774_v18 = vpop.f32.mrf.mxu1  ;;  %v5776_v1 = vmax.f32 %v2923_v57, %v2924_v35 }
 0x274   : > { %v2919_v46 = vmax.f32 %v2917_v15, %v2918_v5  ;;  %v5778_v24 = vmax.f32 %v2935_v25, %v2936_v44  ;;  %v2942_v63 = vrot.slane %v2941_v47, 1  ;;  %v5781_v59 = vmax.f32 %v2929_v12, %v2930_v17 }
 0x275   : > { %v3436_v10 = vsel %vm3366_vm1, %v2913_v7, %v2907_v60  ;;  %v2960_v33 = vrot.slane %v5771_v29, 1  ;;  %v3431_v50 = vsel %vm3370_vm3, %v5711_v3, %v5725_v8  ;;  %v5787_v38 = vpop.f32.mrf.mxu1  ;;  %v2901_v51 = vmax.f32 %v5705_v28, %v2900_v4 }
 0x276   : > { %v5790_v52 = vsel %vm3368_vm2, %v2919_v46, %v3436_v10  ;;  %v3432_v36 = vsel %vm3372_vm4, %v5717_v22, %v3431_v50  ;;  %v2104_v27 = vadd.f32 %v5467_v6, %v5643_v58  ;;  %v5797_v56 = vmax.f32 %v2941_v47, %v2942_v63 }
 0x277   : > { %v3433_v55 = vsel %vm3374_vm5, %v5715_v40, %v3432_v36  ;;  %v2119_v3 = vadd.f32 %v5467_v6, %v5656_v41  ;;  %v2114_v8 = vadd.f32 %v5467_v6, %v5673_v19  ;;  %v5805_v30 = vpop.f32.mrf.mxu1  ;;  %v2129_v58 = vadd.f32 %v5467_v6, %v5686_v11 }
 0x278   : > { %v3434_v28 = vsel %vm3376_vm6, %v5727_v62, %v3433_v55  ;;  %v2422_v22 = vmax.f32 %v2104_v27, 0.0  ;;  %v2124_v16 = vadd.f32 %v5467_v6, %v5694_v48  ;;  %v2139_v41 = vadd.f32 %v5467_v6, %v5696_v54 }
 0x279   : > { %v3435_v40 = vsel %vm3378_vm7, %v2901_v51, %v3434_v28  ;;  %v2425_v21 = vmax.f32 %v2119_v3, 0.0  ;;  %v2424_v49 = vmax.f32 %v2114_v8, 0.0  ;;  %v5816_v19 = vpop.f32.mrf.mxu1  ;;  %v2427_v13 = vmax.f32 %v2129_v58, 0.0 }
 0x27a   : > { %3509 = vxpose.xlu0.b32.cont [9/16] %v3435_v40, 128  ;;  %v2950_v57 = vrot.slane %v2422_v22, 4  ;;  %v2426_v62 = vmax.f32 %v2124_v16, 0.0  ;;  %v2134_v23 = vadd.f32 %v5467_v6, %v5698_v20  ;;  %v2429_v25 = vmax.f32 %v2139_v41, 0.0 }
 0x27b   : > { %v2968_v11 = vrot.slane %v2425_v21, 4  ;;  %v2962_v15 = vrot.slane %v2424_v49, 4  ;;  %v2149_v48 = vadd.f32 %v5467_v6, %v5700_v9  ;;  %v5822_v12 = vpop.f32.mrf.mxu1  ;;  %v2980_v7 = vrot.slane %v2427_v13, 4 }
 0x27c   : > { %v2951_v37 = vmax.f32 %v2422_v22, %v2950_v57  ;;  %v2974_v54 = vrot.slane %v2426_v62, 4  ;;  %v2428_v43 = vmax.f32 %v2134_v23, 0.0  ;;  %v2992_v5 = vrot.slane %v2429_v25, 4 }
 0x27d   : > { %v2969_v35 = vmax.f32 %v2425_v21, %v2968_v11  ;;  %v2963_v14 = vmax.f32 %v2424_v49, %v2962_v15  ;;  %v2431_v44 = vmax.f32 %v2149_v48, 0.0  ;;  %v5824_v17 = vpop.f32.mrf.mxu1  ;;  %v2981_v20 = vmax.f32 %v2427_v13, %v2980_v7 }
 0x27e   : > { %v2952_v47 = vrot.slane %v2951_v37, 2  ;;  %v2975_v60 = vmax.f32 %v2426_v62, %v2974_v54  ;;  %v2986_v4 = vrot.slane %v2428_v43, 4  ;;  %v2993_v10 = vmax.f32 %v2429_v25, %v2992_v5 }
 0x27f   : > { %v2970_v46 = vrot.slane %v2969_v35, 2  ;;  %v2964_v63 = vrot.slane %v2963_v14, 2  ;;  %v3004_v9 = vrot.slane %v2431_v44, 4  ;;  %v5826_v50 = vpop.f32.mrf.mxu1  ;;  %v2982_v36 = vrot.slane %v2981_v20, 2 }
 0x280   : > { %v2953_v51 = vmax.f32 %v2951_v37, %v2952_v47  ;;  %v2976_v27 = vrot.slane %v2975_v60, 2  ;;  %v2987_v55 = vmax.f32 %v2428_v43, %v2986_v4  ;;  %v2994_v28 = vrot.slane %v2993_v10, 2 }
 0x281   : > { %v2971_v3 = vmax.f32 %v2969_v35, %v2970_v46  ;;  %v2965_v8 = vmax.f32 %v2963_v14, %v2964_v63  ;;  %v3005_v22 = vmax.f32 %v2431_v44, %v3004_v9  ;;  %v5828_v58 = vpop.f32.mrf.mxu1  ;;  %v2983_v40 = vmax.f32 %v2981_v20, %v2982_v36 }
 0x282   : > { %v2954_v16 = vrot.slane %v2953_v51, 1  ;;  %v2977_v21 = vmax.f32 %v2975_v60, %v2976_v27  ;;  %v2988_v49 = vrot.slane %v2987_v55, 2  ;;  %v2961_v41 = vmax.f32 %v5771_v29, %v2960_v33 }
 0x283   : > { %v2972_v57 = vrot.slane %v2971_v3, 1  ;;  %v2966_v13 = vrot.slane %v2965_v8, 1  ;;  %v3006_v62 = vrot.slane %v3005_v22, 2  ;;  %v5831_v23 = vpop.f32.mrf.mxu1  ;;  %v2984_v15 = vrot.slane %v2983_v40, 1 }
 0x284   : > { %v2955_v11 = vmax.f32 %v2953_v51, %v2954_v16  ;;  %v2978_v25 = vrot.slane %v2977_v21, 1  ;;  %v2989_v48 = vmax.f32 %v2987_v55, %v2988_v49  ;;  %v5833_v7 = vmax.f32 %v2993_v10, %v2994_v28 }
 0x285   : > { %v2967_v37 = vmax.f32 %v2965_v8, %v2966_v13  ;;  %v5835_v54 = vmax.f32 %v3005_v22, %v3006_v62  ;;  %v2948_v43 = vrot.slane %v5769_v0, 1  ;;  %v5838_v35 = vpop.f32.mrf.mxu1  ;;  %v5841_v33 = vmax.f32 %v2971_v3, %v2972_v57 }
 0x286   : > { %v3443_v29 = vsel %vm3366_vm1, %v2961_v41, %v2955_v11  ;;  %v5843_v14 = vmax.f32 %v2983_v40, %v2984_v15  ;;  %v2990_v5 = vrot.slane %v2989_v48, 1  ;;  %v5848_v47 = vmax.f32 %v2977_v21, %v2978_v25 }
 0x287   : > { %v5846_v44 = vsel %vm3368_vm2, %v2967_v37, %v3443_v29  ;;  %v3008_v20 = vrot.slane %v5835_v54, 1  ;;  %v3438_v60 = vsel %vm3370_vm3, %v5776_v1, %v5790_v52  ;;  %v2949_v4 = vmax.f32 %v5769_v0, %v2948_v43  ;;  %v5861_v9 = vpop.f32.mrf.mxu1 }
 0x288   : > { %v3439_v46 = vsel %vm3372_vm4, %v5781_v59, %v3438_v60  ;;  %v2144_v63 = vadd.f32 %v5467_v6, %v5702_v26  ;;  %v2159_v10 = vadd.f32 %v5467_v6, %v5709_v2  ;;  %v5863_v51 = vmax.f32 %v2989_v48, %v2990_v5 }
 0x289   : > { %v3440_v36 = vsel %vm3374_vm5, %v5778_v24, %v3439_v46  ;;  %v2154_v1 = vadd.f32 %v5467_v6, %v5722_v53  ;;  %v2169_v0 = vadd.f32 %v5467_v6, %v5739_v32  ;;  %v2164_v2 = vadd.f32 %v5467_v6, %v5752_v61 }
 0x28a   : > { %v3441_v59 = vsel %vm3376_vm6, %v5797_v56, %v3440_v36  ;;  %v2430_v26 = vmax.f32 %v2144_v63, 0.0  ;;  %v2433_v52 = vmax.f32 %v2159_v10, 0.0  ;;  %v2179_v24 = vadd.f32 %v5467_v6, %v5758_v39 }
 0x28b   : > { %v3442_v27 = vsel %vm3378_vm7, %v2949_v4, %v3441_v59  ;;  %v2432_v55 = vmax.f32 %v2154_v1, 0.0  ;;  %v2435_v3 = vmax.f32 %v2169_v0, 0.0  ;;  %v2434_v28 = vmax.f32 %v2164_v2, 0.0  ;;  %v5880_v56 = vpop.f32.mrf.mxu1 }
 0x28c   : > { %3510 = vxpose.xlu0.b32.cont [10/16] %v3442_v27, 128  ;;  %v2998_v53 = vrot.slane %v2430_v26, 4  ;;  %v3016_v8 = vrot.slane %v2433_v52, 4  ;;  %v2174_v32 = vadd.f32 %v5467_v6, %v5760_v34  ;;  %v2437_v40 = vmax.f32 %v2179_v24, 0.0 }
 0x28d   : > { %v3010_v22 = vrot.slane %v2432_v55, 4  ;;  %v3028_v16 = vrot.slane %v2435_v3, 4  ;;  %v2189_v61 = vadd.f32 %v5467_v6, %v5762_v31  ;;  %v3022_v41 = vrot.slane %v2434_v28, 4  ;;  %v5884_v37 = vpop.f32.mrf.mxu1 }
 0x28e   : > { %v2999_v21 = vmax.f32 %v2430_v26, %v2998_v53  ;;  %v3017_v49 = vmax.f32 %v2433_v52, %v3016_v8  ;;  %v2436_v57 = vmax.f32 %v2174_v32, 0.0  ;;  %v3040_v62 = vrot.slane %v2437_v40, 4 }
 0x28f   : > { %v3011_v39 = vmax.f32 %v2432_v55, %v3010_v22  ;;  %v3029_v13 = vmax.f32 %v2435_v3, %v3028_v16  ;;  %v2439_v11 = vmax.f32 %v2189_v61, 0.0  ;;  %v3023_v48 = vmax.f32 %v2434_v28, %v3022_v41  ;;  %v5886_v2 = vpop.f32.mrf.mxu1 }
 0x290   : > { %v3000_v15 = vrot.slane %v2999_v21, 2  ;;  %v3018_v25 = vrot.slane %v3017_v49, 2  ;;  %v3034_v34 = vrot.slane %v2436_v57, 4  ;;  %v3041_v5 = vmax.f32 %v2437_v40, %v3040_v62 }
 0x291   : > { %v3012_v43 = vrot.slane %v3011_v39, 2  ;;  %v3030_v29 = vrot.slane %v3029_v13, 2  ;;  %v3052_v60 = vrot.slane %v2439_v11, 4  ;;  %v3024_v31 = vrot.slane %v3023_v48, 2  ;;  %v5902_v41 = vpop.f32.mrf.mxu1 }
 0x292   : > { %v3001_v4 = vmax.f32 %v2999_v21, %v3000_v15  ;;  %v3019_v6 = vmax.f32 %v3017_v49, %v3018_v25  ;;  %v3035_v46 = vmax.f32 %v2436_v57, %v3034_v34  ;;  %v3042_v36 = vrot.slane %v3041_v5, 2 }
 0x293   : > { %v3013_v63 = vmax.f32 %v3011_v39, %v3012_v43  ;;  %v3031_v10 = vmax.f32 %v3029_v13, %v3030_v29  ;;  %v3053_v1 = vmax.f32 %v2439_v11, %v3052_v60  ;;  %v3025_v26 = vmax.f32 %v3023_v48, %v3024_v31 }
 0x294   : > { %v3002_v0 = vrot.slane %v3001_v4, 1  ;;  %v3020_v59 = vrot.slane %v3019_v6, 1  ;;  %v3036_v52 = vrot.slane %v3035_v46, 2  ;;  %v3009_v27 = vmax.f32 %v5835_v54, %v3008_v20 }
 0x295   : > { %v3014_v55 = vrot.slane %v3013_v63, 1  ;;  %v3032_v3 = vrot.slane %v3031_v10, 1  ;;  %v3054_v24 = vrot.slane %v3053_v1, 2  ;;  %v3026_v8 = vrot.slane %v3025_v26, 1 }
 0x296   : > { %v3003_v53 = vmax.f32 %v3001_v4, %v3002_v0  ;;  %v5889_v28 = vmax.f32 %v3041_v5, %v3042_v36  ;;  %v3037_v32 = vmax.f32 %v3035_v46, %v3036_v52  ;;  %v5891_v22 = vmax.f32 %v3019_v6, %v3020_v59  ;;  %v5935_v5 = vpop.f32.mrf.mxu1 }
 0x297   : > { %v3015_v16 = vmax.f32 %v3013_v63, %v3014_v55  ;;  %v5893_v40 = vmax.f32 %v3053_v1, %v3054_v24  ;;  %v2996_v61 = vrot.slane %v5833_v7, 1  ;;  %v5897_v49 = vmax.f32 %v3031_v10, %v3032_v3 }
 0x298   : > { %v3450_v21 = vsel %vm3366_vm1, %v3009_v27, %v3003_v53  ;;  %v3038_v54 = vrot.slane %v3037_v32, 1  ;;  %v3445_v20 = vsel %vm3370_vm3, %v5841_v33, %v5846_v44  ;;  %v5907_v39 = vmax.f32 %v3025_v26, %v3026_v8  ;;  %v5918_v33 = vld [vmem:[%s6175_s4] ss:$0 sm:$0xff]  ;;  %v5943_v26 = vpop.f32.mrf.mxu1 }
 0x299   : > { %v5905_v57 = vsel %vm3368_vm2, %v3015_v16, %v3450_v21  ;;  %v3056_v13 = vrot.slane %v5893_v40, 1  ;;  %v3446_v62 = vsel %vm3372_vm4, %v5848_v47, %v3445_v20  ;;  %v2997_v11 = vmax.f32 %v5833_v7, %v2996_v61 }
 0x29a   : > { %v3447_v15 = vsel %vm3374_vm5, %v5843_v14, %v3446_v62  ;;  %v2184_v44 = vadd.f32 %v5918_v33, %v5764_v45  ;;  %v2199_v25 = vadd.f32 %v5918_v33, %v5767_v42  ;;  %v5924_v48 = vmax.f32 %v3037_v32, %v3038_v54  ;;  %v5945_v62 = vpop.f32.mrf.mxu1 }
 0x29b   : > { %v3448_v47 = vsel %vm3376_vm6, %v5863_v51, %v3447_v15  ;;  %v2194_v7 = vadd.f32 %v5918_v33, %v5774_v18  ;;  %v2209_v14 = vadd.f32 %v5918_v33, %v5787_v38  ;;  %v2204_v45 = vadd.f32 %v5918_v33, %v5805_v30 }
 0x29c   : > { %v3449_v34 = vsel %vm3378_vm7, %v2997_v11, %v3448_v47  ;;  %v2438_v43 = vmax.f32 %v2184_v44, 0.0  ;;  %v2441_v29 = vmax.f32 %v2199_v25, 0.0  ;;  %v2219_v51 = vadd.f32 %v5918_v33, %v5816_v19 }
 0x29d   : > { %3511 = vxpose.xlu0.b32.cont [11/16] %v3449_v34, 128  ;;  %v2440_v42 = vmax.f32 %v2194_v7, 0.0  ;;  %v2443_v60 = vmax.f32 %v2209_v14, 0.0  ;;  %v2214_v18 = vadd.f32 %v5918_v33, %v5822_v12  ;;  %v2442_v6 = vmax.f32 %v2204_v45, 0.0 }
 0x29e   : > { %v3046_v4 = vrot.slane %v2438_v43, 4  ;;  %v3064_v38 = vrot.slane %v2441_v29, 4  ;;  %v2229_v31 = vadd.f32 %v5918_v33, %v5824_v17  ;;  %v2445_v30 = vmax.f32 %v2219_v51, 0.0 }
 0x29f   : > { %v3058_v46 = vrot.slane %v2440_v42, 4  ;;  %v3076_v63 = vrot.slane %v2443_v60, 4  ;;  %v2444_v10 = vmax.f32 %v2214_v18, 0.0  ;;  %v3070_v0 = vrot.slane %v2442_v6, 4 }
 0x2a0   : > { %v3047_v36 = vmax.f32 %v2438_v43, %v3046_v4  ;;  %v3065_v1 = vmax.f32 %v2441_v29, %v3064_v38  ;;  %v2447_v59 = vmax.f32 %v2229_v31, 0.0  ;;  %v3088_v27 = vrot.slane %v2445_v30, 4  ;;  %v5952_v38 = vpop.f32.mrf.mxu1 }
 0x2a1   : > { %v3059_v19 = vmax.f32 %v2440_v42, %v3058_v46  ;;  %v3077_v52 = vmax.f32 %v2443_v60, %v3076_v63  ;;  %v3082_v12 = vrot.slane %v2444_v10, 4  ;;  %v3071_v24 = vmax.f32 %v2442_v6, %v3070_v0 }
 0x2a2   : > { %v3048_v55 = vrot.slane %v3047_v36, 2  ;;  %v3066_v3 = vrot.slane %v3065_v1, 2  ;;  %v3100_v53 = vrot.slane %v2447_v59, 4  ;;  %v3089_v32 = vmax.f32 %v2445_v30, %v3088_v27 }
 0x2a3   : > { %v3060_v8 = vrot.slane %v3059_v19, 2  ;;  %v3078_v17 = vrot.slane %v3077_v52, 2  ;;  %v3083_v16 = vmax.f32 %v2444_v10, %v3082_v12  ;;  %v3072_v54 = vrot.slane %v3071_v24, 2 }
 0x2a4   : > { %v3049_v61 = vmax.f32 %v3047_v36, %v3048_v55  ;;  %v3067_v21 = vmax.f32 %v3065_v1, %v3066_v3  ;;  %v3101_v20 = vmax.f32 %v2447_v59, %v3100_v53  ;;  %v3090_v44 = vrot.slane %v3089_v32, 2 }
 0x2a5   : > { %v3061_v11 = vmax.f32 %v3059_v19, %v3060_v8  ;;  %v3079_v15 = vmax.f32 %v3077_v52, %v3078_v17  ;;  %v3084_v25 = vrot.slane %v3083_v16, 2  ;;  %v3073_v14 = vmax.f32 %v3071_v24, %v3072_v54 }
 0x2a6   : > { %v3050_v47 = vrot.slane %v3049_v61, 1  ;;  %v3068_v7 = vrot.slane %v3067_v21, 1  ;;  %v3102_v34 = vrot.slane %v3101_v20, 2  ;;  %v3057_v43 = vmax.f32 %v5893_v40, %v3056_v13 }
 0x2a7   : > { %v3062_v29 = vrot.slane %v3061_v11, 1  ;;  %v3080_v45 = vrot.slane %v3079_v15, 1  ;;  %v3085_v42 = vmax.f32 %v3083_v16, %v3084_v25  ;;  %v3074_v51 = vrot.slane %v3073_v14, 1 }
 0x2a8   : > { %v3051_v60 = vmax.f32 %v3049_v61, %v3050_v47  ;;  %v5948_v18 = vmax.f32 %v3089_v32, %v3090_v44  ;;  %v5950_v4 = vmax.f32 %v3101_v20, %v3102_v34  ;;  %v5954_v6 = vmax.f32 %v3067_v21, %v3068_v7 }
 0x2a9   : > { %v3063_v31 = vmax.f32 %v3061_v11, %v3062_v29  ;;  %v3086_v46 = vrot.slane %v3085_v42, 1  ;;  %v3044_v63 = vrot.slane %v5889_v28, 1  ;;  %v5958_v40 = vmax.f32 %v3079_v15, %v3080_v45 }
 0x2aa   : > { %v3457_v30 = vsel %vm3366_vm1, %v3057_v43, %v3051_v60  ;;  %v5960_v13 = vmax.f32 %v3073_v14, %v3074_v51  ;;  %v3452_v10 = vsel %vm3370_vm3, %v5891_v22, %v5905_v57  ;;  %v3104_v0 = vrot.slane %v5950_v4, 1  ;;  %v5980_v57 = vpop.f32.mrf.mxu1 }
 0x2ab   : > { %v5966_v36 = vsel %vm3368_vm2, %v3063_v31, %v3457_v30  ;;  %v5968_v1 = vmax.f32 %v3085_v42, %v3086_v46  ;;  %v3453_v59 = vsel %vm3372_vm4, %v5907_v39, %v3452_v10  ;;  %v3045_v19 = vmax.f32 %v5889_v28, %v3044_v63 }
 0x2ac   : > { %v3454_v52 = vsel %vm3374_vm5, %v5897_v49, %v3453_v59  ;;  %v2224_v27 = vadd.f32 %v5918_v33, %v5826_v50  ;;  %v2239_v22 = vadd.f32 %v5918_v33, %v5828_v58  ;;  %v2234_v55 = vadd.f32 %v5918_v33, %v5831_v23  ;;  %v5997_v32 = vpop.f32.mrf.mxu1 }
 0x2ad   : > { %v3455_v12 = vsel %vm3376_vm6, %v5924_v48, %v3454_v52  ;;  %v2249_v28 = vadd.f32 %v5918_v33, %v5838_v35  ;;  %v2244_v49 = vadd.f32 %v5918_v33, %v5861_v9  ;;  %v2259_v58 = vadd.f32 %v5918_v33, %v5880_v56 }
 0x2ae   : > { %v3456_v39 = vsel %vm3378_vm7, %v3045_v19, %v3455_v12  ;;  %v2446_v50 = vmax.f32 %v2224_v27, 0.0  ;;  %v2449_v3 = vmax.f32 %v2239_v22, 0.0  ;;  %v2448_v24 = vmax.f32 %v2234_v55, 0.0  ;;  %v4489_v29 = vpop.f32.mrf.mxu1 }
 0x2af   : > { %3512 = vxpose.xlu0.b32.cont [12/16] %v3456_v39, 128  ;;  %v2451_v53 = vmax.f32 %v2249_v28, 0.0  ;;  %v2450_v48 = vmax.f32 %v2244_v49, 0.0  ;;  %v2254_v23 = vadd.f32 %v5918_v33, %v5884_v37  ;;  %v2453_v35 = vmax.f32 %v2259_v58, 0.0 }
 0x2b0   : > { %v3094_v8 = vrot.slane %v2446_v50, 4  ;;  %v3112_v17 = vrot.slane %v2449_v3, 4  ;;  %v2269_v9 = vadd.f32 %v5918_v33, %v5886_v2  ;;  %v3106_v16 = vrot.slane %v2448_v24, 4  ;;  %v6000_v55 = vpop.f32.mrf.mxu1 }
 0x2b1   : > { %v3124_v61 = vrot.slane %v2451_v53, 4  ;;  %v3118_v21 = vrot.slane %v2450_v48, 4  ;;  %v2452_v54 = vmax.f32 %v2254_v23, 0.0  ;;  %v3136_v11 = vrot.slane %v2453_v35, 4 }
 0x2b2   : > { %v3095_v56 = vmax.f32 %v2446_v50, %v3094_v8  ;;  %v3113_v20 = vmax.f32 %v2449_v3, %v3112_v17  ;;  %v2455_v15 = vmax.f32 %v2269_v9, 0.0  ;;  %v3107_v44 = vmax.f32 %v2448_v24, %v3106_v16  ;;  %v6018_v16 = vpop.f32.mrf.mxu1 }
 0x2b3   : > { %v3125_v25 = vmax.f32 %v2451_v53, %v3124_v61  ;;  %v3119_v47 = vmax.f32 %v2450_v48, %v3118_v21  ;;  %v3130_v37 = vrot.slane %v2452_v54, 4  ;;  %v3137_v34 = vmax.f32 %v2453_v35, %v3136_v11 }
 0x2b4   : > { %v3096_v7 = vrot.slane %v3095_v56, 2  ;;  %v3114_v14 = vrot.slane %v3113_v20, 2  ;;  %v3148_v43 = vrot.slane %v2455_v15, 4  ;;  %v3108_v2 = vrot.slane %v3107_v44, 2 }
 0x2b5   : > { %v3126_v45 = vrot.slane %v3125_v25, 2  ;;  %v3120_v42 = vrot.slane %v3119_v47, 2  ;;  %v3131_v60 = vmax.f32 %v2452_v54, %v3130_v37  ;;  %v3138_v46 = vrot.slane %v3137_v34, 2 }
 0x2b6   : > { %v3097_v51 = vmax.f32 %v3095_v56, %v3096_v7  ;;  %v3115_v31 = vmax.f32 %v3113_v20, %v3114_v14  ;;  %v3149_v63 = vmax.f32 %v2455_v15, %v3148_v43  ;;  %v3109_v30 = vmax.f32 %v3107_v44, %v3108_v2 }
 0x2b7   : > { %v3127_v10 = vmax.f32 %v3125_v25, %v3126_v45  ;;  %v3121_v59 = vmax.f32 %v3119_v47, %v3120_v42  ;;  %v3132_v19 = vrot.slane %v3131_v60, 2  ;;  %v3105_v52 = vmax.f32 %v5950_v4, %v3104_v0  ;;  %v6045_v47 = vpop.f32.mrf.mxu1 }
 0x2b8   : > { %v3098_v27 = vrot.slane %v3097_v51, 1  ;;  %v3116_v22 = vrot.slane %v3115_v31, 1  ;;  %v3150_v12 = vrot.slane %v3149_v63, 2  ;;  %v3110_v28 = vrot.slane %v3109_v30, 1 }
 0x2b9   : > { %v3128_v49 = vrot.slane %v3127_v10, 1  ;;  %v3122_v39 = vrot.slane %v3121_v59, 1  ;;  %v3133_v50 = vmax.f32 %v3131_v60, %v3132_v19  ;;  %v6002_v58 = vmax.f32 %v3137_v34, %v3138_v46  ;;  %v4495_v46 = vpop.f32.mrf.mxu1 }
 0x2ba   : > { %v3099_v3 = vmax.f32 %v3097_v51, %v3098_v27  ;;  %v6004_v24 = vmax.f32 %v3149_v63, %v3150_v12  ;;  %v3092_v53 = vrot.slane %v5948_v18, 1  ;;  %v6007_v48 = vmax.f32 %v3115_v31, %v3116_v22 }
 0x2bb   : > { %v3111_v23 = vmax.f32 %v3109_v30, %v3110_v28  ;;  %v6009_v4 = vmax.f32 %v3127_v10, %v3128_v49  ;;  %v3134_v0 = vrot.slane %v3133_v50, 1  ;;  %v6012_v17 = vmax.f32 %v3121_v59, %v3122_v39 }
 0x2bc   : > { %v3464_v8 = vsel %vm3366_vm1, %v3105_v52, %v3099_v3  ;;  %v3152_v35 = vrot.slane %v6004_v24, 1  ;;  %v3459_v9 = vsel %vm3370_vm3, %v5954_v6, %v5966_v36  ;;  %v3093_v21 = vmax.f32 %v5948_v18, %v3092_v53  ;;  %v2323_v53 = vpop.f32.mrf.mxu1 }
 0x2bd   : > { %v6021_v61 = vsel %vm3368_vm2, %v3111_v23, %v3464_v8  ;;  %v3460_v54 = vsel %vm3372_vm4, %v5960_v13, %v3459_v9  ;;  %v2264_v56 = vadd.f32 %v5918_v33, %v5902_v41  ;;  %v6028_v20 = vmax.f32 %v3133_v50, %v3134_v0 }
 0x2be   : > { %v3461_v11 = vsel %vm3374_vm5, %v5958_v40, %v3460_v54  ;;  %v2279_v6 = vadd.f32 %v5918_v33, %v5935_v5  ;;  %v2274_v36 = vadd.f32 %v5918_v33, %v5943_v26  ;;  %v2289_v13 = vadd.f32 %v5918_v33, %v5945_v62 }
 0x2bf   : > { %v3462_v18 = vsel %vm3376_vm6, %v5968_v1, %v3461_v11  ;;  %v2454_v15 = vmax.f32 %v2264_v56, 0.0  ;;  %v2284_v41 = vadd.f32 %v5918_v33, %v5952_v38  ;;  %v2299_v5 = vadd.f32 %v5918_v33, %v5980_v57 }
 0x2c0   : > { %v3463_v44 = vsel %vm3378_vm7, %v3093_v21, %v3462_v18  ;;  %v2457_v25 = vmax.f32 %v2279_v6, 0.0  ;;  %v2456_v40 = vmax.f32 %v2274_v36, 0.0  ;;  %v2459_v37 = vmax.f32 %v2289_v13, 0.0 }
 0x2c1   : > { %3513 = vxpose.xlu0.b32.cont [13/16] %v3463_v44, 128  ;;  %v3142_v26 = vrot.slane %v2454_v15, 4  ;;  %v2458_v1 = vmax.f32 %v2284_v41, 0.0  ;;  %v2294_v7 = vadd.f32 %v5918_v33, %v5997_v32  ;;  %v2461_v34 = vmax.f32 %v2299_v5, 0.0 }
 0x2c2   : > { %v3160_v62 = vrot.slane %v2457_v25, 4  ;;  %v3154_v14 = vrot.slane %v2456_v40, 4  ;;  %v2309_v38 = vadd.f32 %v5918_v33, %v4489_v29  ;;  %v3172_v2 = vrot.slane %v2459_v37, 4 }
 0x2c3   : > { %v3143_v43 = vmax.f32 %v2454_v15, %v3142_v26  ;;  %v3166_v45 = vrot.slane %v2458_v1, 4  ;;  %v2460_v42 = vmax.f32 %v2294_v7, 0.0  ;;  %v3184_v51 = vrot.slane %v2461_v34, 4 }
 0x2c4   : > { %v3161_v60 = vmax.f32 %v2457_v25, %v3160_v62  ;;  %v3155_v57 = vmax.f32 %v2456_v40, %v3154_v14  ;;  %v2463_v31 = vmax.f32 %v2309_v38, 0.0  ;;  %v3173_v30 = vmax.f32 %v2459_v37, %v3172_v2  ;;  %v4498_v40 = vpop.f32.mrf.mxu1 }
 0x2c5   : > { %v3144_v63 = vrot.slane %v3143_v43, 2  ;;  %v3167_v10 = vmax.f32 %v2458_v1, %v3166_v45  ;;  %v3178_v59 = vrot.slane %v2460_v42, 4  ;;  %v3185_v52 = vmax.f32 %v2461_v34, %v3184_v51 }
 0x2c6   : > { %v3162_v19 = vrot.slane %v3161_v60, 2  ;;  %v3156_v32 = vrot.slane %v3155_v57, 2  ;;  %v3196_v27 = vrot.slane %v2463_v31, 4  ;;  %v3174_v12 = vrot.slane %v3173_v30, 2 }
 0x2c7   : > { %v3145_v22 = vmax.f32 %v3143_v43, %v3144_v63  ;;  %v3168_v29 = vrot.slane %v3167_v10, 2  ;;  %v3179_v28 = vmax.f32 %v2460_v42, %v3178_v59  ;;  %v3186_v50 = vrot.slane %v3185_v52, 2 }
 0x2c8   : > { %v3163_v49 = vmax.f32 %v3161_v60, %v3162_v19  ;;  %v3157_v39 = vmax.f32 %v3155_v57, %v3156_v32  ;;  %v3197_v3 = vmax.f32 %v2463_v31, %v3196_v27  ;;  %v3175_v0 = vmax.f32 %v3173_v30, %v3174_v12 }
 0x2c9   : > { %v3146_v23 = vrot.slane %v3145_v22, 1  ;;  %v3169_v8 = vmax.f32 %v3167_v10, %v3168_v29  ;;  %v3180_v9 = vrot.slane %v3179_v28, 2  ;;  %v3153_v21 = vmax.f32 %v6004_v24, %v3152_v35 }
 0x2ca   : > { %v3164_v54 = vrot.slane %v3163_v49, 1  ;;  %v3158_v56 = vrot.slane %v3157_v39, 1  ;;  %v3198_v11 = vrot.slane %v3197_v3, 2  ;;  %v3176_v36 = vrot.slane %v3175_v0, 1 }
 0x2cb   : > { %v3147_v6 = vmax.f32 %v3145_v22, %v3146_v23  ;;  %v3170_v18 = vrot.slane %v3169_v8, 1  ;;  %v3181_v15 = vmax.f32 %v3179_v28, %v3180_v9  ;;  %v6051_v41 = vmax.f32 %v3185_v52, %v3186_v50 }
 0x2cc   : > { %v3159_v13 = vmax.f32 %v3157_v39, %v3158_v56  ;;  %v3199_v44 = vmax.f32 %v3197_v3, %v3198_v11  ;;  %v3140_v25 = vrot.slane %v6002_v58, 1  ;;  %v3165_v26 = vmax.f32 %v3163_v49, %v3164_v54 }
 0x2cd   : > { %v3471_v5 = vsel %vm3366_vm1, %v3153_v21, %v3147_v6  ;;  %v6055_v37 = vmax.f32 %v3175_v0, %v3176_v36  ;;  %v3182_v24 = vrot.slane %v3181_v15, 1  ;;  %v3171_v1 = vmax.f32 %v3169_v8, %v3170_v18 }
 0x2ce   : > { %v3472_v35 = vsel %vm3368_vm2, %v3159_v13, %v3471_v5  ;;  %v3200_v7 = vrot.slane %v3199_v44, 1  ;;  %v3466_v62 = vsel %vm3370_vm3, %v6007_v48, %v6021_v61  ;;  %v3141_v14 = vmax.f32 %v6002_v58, %v3140_v25  ;;  %v2333_v61 = vpop.f32.mrf.mxu1 }
 0x2cf   : > { %v3467_v34 = vsel %vm3372_vm4, %v6012_v17, %v3466_v62  ;;  %v2304_v38 = vadd.f32 %v5918_v33, %v6000_v55  ;;  %v2319_v43 = vadd.f32 %v5918_v33, %v6018_v16  ;;  %v3183_v2 = vmax.f32 %v3181_v15, %v3182_v24 }
 0x2d0   : > { %v3468_v45 = vsel %vm3374_vm5, %v6009_v4, %v3467_v34  ;;  %v2314_v42 = vadd.f32 %v5918_v33, %v6045_v47  ;;  %v2329_v48 = vadd.f32 %v5918_v33, %v4495_v46  ;;  %v2324_v55 = vadd.f32 %v5918_v33, %v2323_v53 }
 0x2d1   : > { %v3469_v58 = vsel %vm3376_vm6, %v6028_v20, %v3468_v45  ;;  %v2462_v17 = vmax.f32 %v2304_v38, 0.0  ;;  %v2465_v60 = vmax.f32 %v2319_v43, 0.0  ;;  %v2339_v31 = vadd.f32 %v5918_v33, %v4498_v40 }
 0x2d2   : > { %v3470_v57 = vsel %vm3378_vm7, %v3141_v14, %v3469_v58  ;;  %v2464_v16 = vmax.f32 %v2314_v42, 0.0  ;;  %v2467_v51 = vmax.f32 %v2329_v48, 0.0  ;;  %v2466_v47 = vmax.f32 %v2324_v55, 0.0 }
 0x2d3   : > { %3514 = vxpose.xlu0.b32.cont [14/16] %v3470_v57, 128  ;;  %v3190_v4 = vrot.slane %v2462_v17, 4  ;;  %v3208_v63 = vrot.slane %v2465_v60, 4  ;;  %v2334_v46 = vadd.f32 %v5918_v33, %v2333_v61  ;;  %v3201_v30 = vmax.f32 %v3199_v44, %v3200_v7 }
 0x2d4   : > { %v3202_v10 = vrot.slane %v2464_v16, 4  ;;  %v3220_v59 = vrot.slane %v2467_v51, 4  ;;  %v2469_v20 = vmax.f32 %v2339_v31, 0.0  ;;  %v3214_v52 = vrot.slane %v2466_v47, 4 }
 0x2d5   : > { %v3191_v19 = vmax.f32 %v2462_v17, %v3190_v4  ;;  %v3209_v32 = vmax.f32 %v2465_v60, %v3208_v63  ;;  %v2468_v27 = vmax.f32 %v2334_v46, 0.0  ;;  %v3188_v28 = vrot.slane %v6051_v41, 1 }
 0x2d6   : > { %v3203_v22 = vmax.f32 %v2464_v16, %v3202_v10  ;;  %v3221_v12 = vmax.f32 %v2467_v51, %v3220_v59  ;;  %v3232_v29 = vrot.slane %v2469_v20, 4  ;;  %v3215_v50 = vmax.f32 %v2466_v47, %v3214_v52 }
 0x2d7   : > { %v3192_v49 = vrot.slane %v3191_v19, 2  ;;  %v3210_v39 = vrot.slane %v3209_v32, 2  ;;  %v3226_v3 = vrot.slane %v2468_v27, 4  ;;  %v3473_v0 = vsel %vm3370_vm3, %v3165_v26, %v3472_v35 }
 0x2d8   : > { %v3204_v53 = vrot.slane %v3203_v22, 2  ;;  %v3222_v23 = vrot.slane %v3221_v12, 2  ;;  %v3233_v33 = vmax.f32 %v2469_v20, %v3232_v29  ;;  %v3216_v21 = vrot.slane %v3215_v50, 2 }
 0x2d9   : > { %v3193_v8 = vmax.f32 %v3191_v19, %v3192_v49  ;;  %v3211_v9 = vmax.f32 %v3209_v32, %v3210_v39  ;;  %v3227_v54 = vmax.f32 %v2468_v27, %v3226_v3  ;;  %v3474_v36 = vsel %vm3372_vm4, %v3171_v1, %v3473_v0 }
 0x2da   : > { %v3205_v56 = vmax.f32 %v3203_v22, %v3204_v53  ;;  %v3223_v11 = vmax.f32 %v3221_v12, %v3222_v23  ;;  %v3234_v6 = vrot.slane %v3233_v33, 2  ;;  %v3217_v13 = vmax.f32 %v3215_v50, %v3216_v21 }
 0x2db   : > { %v3194_v18 = vrot.slane %v3193_v8, 1  ;;  %v3212_v15 = vrot.slane %v3211_v9, 1  ;;  %v3228_v44 = vrot.slane %v3227_v54, 2  ;;  %v3189_v24 = vmax.f32 %v6051_v41, %v3188_v28 }
 0x2dc   : > { %v3206_v25 = vrot.slane %v3205_v56, 1  ;;  %v3224_v40 = vrot.slane %v3223_v11, 1  ;;  %v3235_v5 = vmax.f32 %v3233_v33, %v3234_v6  ;;  %v3218_v26 = vrot.slane %v3217_v13, 1 }
 0x2dd   : > { %v3195_v7 = vmax.f32 %v3193_v8, %v3194_v18  ;;  %v3229_v35 = vmax.f32 %v3227_v54, %v3228_v44  ;;  %v3475_v62 = vsel %vm3374_vm5, %v6055_v37, %v3474_v36  ;;  %v3213_v14 = vmax.f32 %v3211_v9, %v3212_v15 }
 0x2de   : > { %v3207_v34 = vmax.f32 %v3205_v56, %v3206_v25  ;;  %v3476_v38 = vsel %vm3376_vm6, %v3183_v2, %v3475_v62  ;;  %v3236_v1 = vrot.slane %v3235_v5, 1  ;;  %v3219_v45 = vmax.f32 %v3217_v13, %v3218_v26 }
 0x2df   : > { %v3478_v43 = vsel %vm3366_vm1, %v3201_v30, %v3195_v7  ;;  %v3230_v42 = vrot.slane %v3229_v35, 1  ;;  %v3477_v48 = vsel %vm3378_vm7, %v3189_v24, %v3476_v38  ;;  %v3225_v61 = vmax.f32 %v3223_v11, %v3224_v40 }
 0x2e0   : > { %v3479_v41 = vsel %vm3368_vm2, %v3207_v34, %v3478_v43  ;;  %3515 = vxpose.xlu0.b32.cont [15/16] %v3477_v48, 128  ;;  %v3237_v60 = vmax.f32 %v3235_v5, %v3236_v1 }
 0x2e1   : > { %v3231_v58 = vmax.f32 %v3229_v35, %v3230_v42  ;;  %v3480_v37 = vsel %vm3370_vm3, %v3213_v14, %v3479_v41 }
 0x2e2   : > { %v3481_v17 = vsel %vm3372_vm4, %v3219_v45, %v3480_v37 }
 0x2e3   : > { %v3482_v2 = vsel %vm3374_vm5, %v3225_v61, %v3481_v17 }
 0x2e4   : > { %v3483_v55 = vsel %vm3376_vm6, %v3231_v58, %v3482_v2 }
 0x2e5   : > { %v3484_v57 = vsel %vm3378_vm7, %v3237_v60, %v3483_v55 }
 0x2e6   : > { %3516 = vxpose.xlu0.b32.end [16/16] %v3484_v57, 128 }
 0x326   : > { %v3517_v16 = vpop.trf.xlu0 }
 0x327   : > { %3533 = vst [vmem:[%s6097_s14] sm:$0xff] %v3517_v16 }
 0x32a   : > { %v3518_v51 = vpop.trf.xlu0 }
 0x32b   : > { %3534 = vst [vmem:[%s6097_s14 + $0x8] sm:$0xff] %v3518_v51 }
 0x32e   : > { %v3519_v31 = vpop.trf.xlu0 }
 0x32f   : > { %3535 = vst [vmem:[%s6097_s14 + $0x10] sm:$0xff] %v3519_v31 }
 0x332   : > { %v3520_v4 = vpop.trf.xlu0 }
 0x333   : > { %3536 = vst [vmem:[%s6097_s14 + $0x18] sm:$0xff] %v3520_v4 }
 0x336   : > { %v3521_v63 = vpop.trf.xlu0 }
 0x337   : > { %3537 = vst [vmem:[%s6097_s14 + $0x20] sm:$0xff] %v3521_v63 }
 0x33a   : > { %v3522_v47 = vpop.trf.xlu0 }
 0x33b   : > { %3538 = vst [vmem:[%s6097_s14 + $0x28] sm:$0xff] %v3522_v47 }
 0x33e   : > { %v3523_v46 = vpop.trf.xlu0 }
 0x33f   : > { %3539 = vst [vmem:[%s6097_s14 + $0x30] sm:$0xff] %v3523_v46 }
 0x342   : > { %v3524_v30 = vpop.trf.xlu0 }
 0x343   : > { %3540 = vst [vmem:[%s6097_s14 + $0x38] sm:$0xff] %v3524_v30 }
 0x346   : > { %v3525_v10 = vpop.trf.xlu0 }
 0x347   : > { %3541 = vst [vmem:[%s6097_s14 + $0x40] sm:$0xff] %v3525_v10 }
 0x34a   : > { %v3526_v59 = vpop.trf.xlu0 }
 0x34b   : > { %3542 = vst [vmem:[%s6097_s14 + $0x48] sm:$0xff] %v3526_v59 }
 0x34e   : > { %v3527_v20 = vpop.trf.xlu0 }
 0x34f   : > { %3543 = vst [vmem:[%s6097_s14 + $0x50] sm:$0xff] %v3527_v20 }
 0x352   : > { %v3528_v19 = vpop.trf.xlu0 }
 0x353   : > { %3544 = vst [vmem:[%s6097_s14 + $0x58] sm:$0xff] %v3528_v19 }
 0x356   : > { %v3529_v32 = vpop.trf.xlu0 }
 0x357   : > { %3545 = vst [vmem:[%s6097_s14 + $0x60] sm:$0xff] %v3529_v32 }
 0x35a   : > { %v3530_v52 = vpop.trf.xlu0 }
 0x35b   : > { %3546 = vst [vmem:[%s6097_s14 + $0x68] sm:$0xff] %v3530_v52 }
 0x35e   : > { %v3531_v27 = vpop.trf.xlu0 }
 0x35f   : > { %3547 = vst [vmem:[%s6097_s14 + $0x70] sm:$0xff] %v3531_v27 }
 0x362   : > { %v3532_v22 = vpop.trf.xlu0 }
 0x363   : > { %3548 = vst [vmem:[%s6097_s14 + $0x78] sm:$0xff] %v3532_v22 }
 0x364   : > { %4604 = shalt.err (!%p4601_p5)
}
 0x365   : > { %s4605_s9 = scalar_lea.hbm %s6119_s25, 2048  ;;  %s4609_s12 = scalar_lea.hbm %s6176_s5, 4096 }
 0x366   : > { %p4606_p6 = scmp.ne.s32.totalorder %s6119_s25, %s4605_s9  ;;  %p4610_p10 = scmp.lt.s32.totalorder %s6119_s25, %s6176_s5 }
 0x367   : > { %p4611_p11 = scmp.lt.s32.totalorder %s4609_s12, %s4605_s9 }
 0x368   : > { %p4607_p7 = pnand %p4606_p6, %p4742_p4 }
 0x369   : > { %p4612_p12 = por %p4611_p11, %p4610_p10 }
 0x36a   : > { %p4608_p9 = pneg %p4607_p7 }
 0x36c   : > { %p4613_p13 = pnand %p4612_p12, %p4608_p9 }
 0x36e   : > { %4616 = shalt.err (!%p4613_p13)
}
 0x36f   : > { %s4670_s15 = smov 128   ;;  %s4671_s17 = smov 8  }
 0x370   : > { %4531 = dma.vmem_to_hbm [thread:$0]  (%p4742_p4), %s6121_s16, 2048, %s6119_s25, %s6126_s27, %s4670_s15, %s4670_s15, %s4671_s17  }
 0x371 PF: > { %p4537_p0 = scmp.ge.s32.totalorder %s4667_s23, 2  ;;  %s3579_s24 = sand.u32 1, %s4647_s18  }
 0x372   : > { %s3580_s29 = scalar_lea.sflag [#allocation3], %s3579_s24 }
 0x373   : > { %p4534_p1 = pnand %p4537_p0, %p4749_p8 }
 0x375   : > { %p4535_p2 = pneg %p4534_p1 }
 0x377   : > { %4642 = dma.done.wait (%p4535_p2), %s3580_s29, 2048  }
 0x378   : > { %4644 = vsyncadd (%p4535_p2), %s3580_s29, 4294965248  ;;  %s18_s23 = sadd.s32 1, %s4667_s23   ;;  %s6180_s18 = smov %s4651_s19 }
 0x379   : > { %p15_p3 = scmp.ge.s32.totalorder %s18_s23, 4   ;;  %s6181_s19 = smov %s4655_s20 }
 0x37a   : > { %s6182_s20 = smov %s4755_s6  ;;  %s6183_s21 = smov %s4663_s22 }
 0x37b   : > { %s6184_s22 = smov %s6186_s26  ;;  %17 = sbr.rel (!%p15_p3) target bundleno = 4 (0x4), region = 75 }
 0x380   :  { %3585 = vsyncpa [#allocation3], 1 }
 0x381   :  { %3587 = vsyncpa [#allocation3 + $0x1], 1 }

</bundles_post_ra>
